<compile_context>
chip_gen: v5e
topology: v5e:2x2
jax: 0.10.0
libtpu: 0.0.40
codegen_flags: <defaults>
</compile_context>

<pallas_src>
import functools
import math

import jax
import jax.numpy as jnp
from jax import lax
from jax.experimental import pallas as pl
from jax.experimental.pallas import tpu as pltpu

# ----------------------------- config (small) -------------------------------
B = 2
C_IN = 3
IMG = 32
PATCH = 8
HP = WP = IMG // PATCH            # 4 x 4 patch grid
T = HP * WP + 1                   # +1 cls token -> 17
D = 64                            # embed dim
HEADS = 4
DH = D // HEADS
DEPTH = 4
OUT_INDICES = (0, 1, 2, 3)
MLP_HIDDEN = 4 * D
CD = 64                           # DPT reassemble channels
N_BINS = 256

MM_DTYPE = jnp.bfloat16           # MXU input dtype; accumulation stays f32


# --------------------------- in-kernel helpers -------------------------------
def _mm(a, b):
    """MXU matmul: bf16 inputs, f32 accumulation."""
    return jnp.dot(a.astype(MM_DTYPE), b.astype(MM_DTYPE),
                   preferred_element_type=jnp.float32)


def _mm_nt(a, b):
    """a @ b.T on the MXU (contraction over the last dim of both)."""
    return lax.dot_general(a.astype(MM_DTYPE), b.astype(MM_DTYPE),
                           (((1,), (1,)), ((), ())),
                           preferred_element_type=jnp.float32)


def _ln(x, g, b, eps=1e-6):
    mean = jnp.mean(x, axis=-1, keepdims=True)
    var = jnp.mean((x - mean) ** 2, axis=-1, keepdims=True)
    return (x - mean) * lax.rsqrt(var + eps) * g + b


# ------------------------- fused transformer block ---------------------------
def _block_kernel(tok_ref, ln1g_ref, ln1b_ref, wqkv_ref, bqkv_ref,
                  wo_ref, bo_ref, ln2g_ref, ln2b_ref,
                  wfc1_ref, bfc1_ref, wfc2_ref, bfc2_ref, out_ref, *, scale):
    x = tok_ref[0]                                        # (T, D) f32

    # ---- attention branch (all heads, in VMEM) ----
    h = _ln(x, ln1g_ref[...], ln1b_ref[...])
    qkv = _mm(h, wqkv_ref[...]) + bqkv_ref[...]           # (T, 3D) f32
    wo = wo_ref[...]                                      # (D, D) bf16
    acc = jnp.zeros((T, D), jnp.float32)
    for hh in range(HEADS):                               # static unroll
        q = qkv[:, hh * DH:(hh + 1) * DH]                 # (T, DH)
        k = qkv[:, D + hh * DH:D + (hh + 1) * DH]
        v = qkv[:, 2 * D + hh * DH:2 * D + (hh + 1) * DH]
        s = _mm_nt(q, k) * scale                          # (T, T)
        s = s - jnp.max(s, axis=-1, keepdims=True)
        p = jnp.exp(s)
        p = p * pl.reciprocal(jnp.sum(p, axis=-1, keepdims=True), approx=True)
        oh = _mm(p, v)                                    # (T, DH)
        # fold the head back via the matching rows of w_o (no concat/transpose)
        acc = acc + _mm(oh, wo[hh * DH:(hh + 1) * DH, :])
    x = x + acc + bo_ref[...]

    # ---- MLP branch ----
    h = _ln(x, ln2g_ref[...], ln2b_ref[...])
    h = jax.nn.gelu(_mm(h, wfc1_ref[...]) + bfc1_ref[...], approximate=True)
    h = _mm(h, wfc2_ref[...]) + bfc2_ref[...]
    out_ref[0] = x + h


def transformer_block(tok, p):
    """tok: (B, T, D) f32 -> (B, T, D) f32, one fused kernel, grid over batch."""
    def full(shape):
        return pl.BlockSpec(shape, lambda b, _s=shape: (0,) * len(_s))

    in_specs = [
        pl.BlockSpec((1, T, D), lambda b: (b, 0, 0)),      # tokens
        full((1, D)), full((1, D)),                        # ln1 gamma/beta
        full((D, 3 * D)), full((1, 3 * D)),                # qkv
        full((D, D)), full((1, D)),                        # out proj
        full((1, D)), full((1, D)),                        # ln2 gamma/beta
        full((D, MLP_HIDDEN)), full((1, MLP_HIDDEN)),      # fc1
        full((MLP_HIDDEN, D)), full((1, D)),               # fc2
    ]
    return pl.pallas_call(
        functools.partial(_block_kernel, scale=1.0 / math.sqrt(DH)),
        out_shape=jax.ShapeDtypeStruct((B, T, D), jnp.float32),
        grid=(B,),
        in_specs=in_specs,
        out_specs=pl.BlockSpec((1, T, D), lambda b: (b, 0, 0)),
        compiler_params=pltpu.CompilerParams(dimension_semantics=("parallel",)),
    )(tok, p["ln1_g"], p["ln1_b"], p["w_qkv"], p["b_qkv"], p["w_o"], p["b_o"],
      p["ln2_g"], p["ln2_b"], p["w_fc1"], p["b_fc1"], p["w_fc2"], p["b_fc2"])


# ------------------------------ small kernels --------------------------------
_VMEM = pl.BlockSpec(memory_space=pltpu.MemorySpace.VMEM)


def _linear_kernel(x_ref, w_ref, b_ref, o_ref):
    o_ref[...] = _mm(x_ref[...], w_ref[...]) + b_ref[...]


def linear(x, w, b):
    """x: (M, K) @ w: (K, N) + b(1, N), whole problem resident in VMEM."""
    M = x.shape[0]
    N = w.shape[-1]
    return pl.pallas_call(
        _linear_kernel,
        out_shape=jax.ShapeDtypeStruct((M, N), jnp.float32),
        in_specs=[_VMEM] * 3,
        out_specs=_VMEM,
    )(x, w, b)


def _reassemble_kernel(f_ref, w_ref, b_ref, o_ref):
    for t in range(len(OUT_INDICES)):
        o_ref[t] = _mm(f_ref[t], w_ref[t]) + b_ref[t]


def reassemble(feat_stack, w_stack, b_stack):
    """All 4 DPT 1x1 reassemble projections in one kernel.
    feat_stack: (4, B*HW, D) -> (4, B*HW, CD)."""
    return pl.pallas_call(
        _reassemble_kernel,
        out_shape=jax.ShapeDtypeStruct((len(OUT_INDICES), B * HP * WP, CD),
                                       jnp.float32),
        in_specs=[_VMEM] * 3,
        out_specs=_VMEM,
    )(feat_stack, w_stack, b_stack)


def _conv_taps_kernel(t_ref, w_ref, b_ref, o_ref, *, act):
    acc = _mm(t_ref[0], w_ref[0])
    for t in range(1, 9):
        acc = acc + _mm(t_ref[t], w_ref[t])
    y = acc + b_ref[...]
    if act == "relu":
        y = jnp.maximum(y, 0.0)
    o_ref[...] = y


def _make_taps(x_nhwc):
    """Shifted-tap stack for 3x3 'same' conv: (9, B*H*W, C).  Pure layout
    plumbing in XLA; each tap keeps K = C (64) for the in-kernel matmuls."""
    Bn, H, W, C = x_nhwc.shape
    xp = jnp.pad(x_nhwc, ((0, 0), (1, 1), (1, 1), (0, 0)))
    return jnp.stack(
        [xp[:, dy:dy + H, dx:dx + W, :].reshape(Bn * H * W, C)
         for dy in range(3) for dx in range(3)], axis=0)


def conv3x3(x_nhwc, w9, b, act="relu"):
    """3x3 'same' conv as one tap-accumulation kernel. w9: (9, Cin, Cout)."""
    Bn, H, W, _ = x_nhwc.shape
    Cout = w9.shape[-1]
    taps = _make_taps(x_nhwc)
    out = pl.pallas_call(
        functools.partial(_conv_taps_kernel, act=act),
        out_shape=jax.ShapeDtypeStruct((Bn * H * W, Cout), jnp.float32),
        in_specs=[_VMEM] * 3,
        out_specs=_VMEM,
    )(taps, w9, b)
    return out.reshape(Bn, H, W, Cout)


def _cls_head_kernel(t_ref, w1_ref, b1_ref, w2_ref, b2_ref, o_ref):
    # 3x3 conv (tap accumulation) + relu
    acc = _mm(t_ref[0], w1_ref[0])
    for t in range(1, 9):
        acc = acc + _mm(t_ref[t], w1_ref[t])
    y = jnp.maximum(acc + b1_ref[...], 0.0)               # (M, CD//2)
    # 1x1 classification conv + softmax over bins (exact normalization)
    logits = _mm(y, w2_ref[...]) + b2_ref[...]             # (M, N_BINS)
    logits = logits - jnp.max(logits, axis=-1, keepdims=True)
    p = jnp.exp(logits)
    o_ref[...] = p * pl.reciprocal(jnp.sum(p, axis=-1, keepdims=True),
                                   approx=False)


# ------------------------------- model forward -------------------------------
def backbone_forward(x_nchw, p):
    """SSLVisionTransformer (small): patch-embed + cls + pos, DEPTH fused
    blocks, returns features at OUT_INDICES as (B, T, D) each."""
    Bn = x_nchw.shape[0]
    patches = x_nchw.reshape(Bn, C_IN, HP, PATCH, WP, PATCH)
    patches = patches.transpose(0, 2, 4, 1, 3, 5).reshape(
        Bn * HP * WP, C_IN * PATCH * PATCH)
    tok = linear(patches, p["patch_w"], p["patch_b"]).reshape(Bn, HP * WP, D)
    cls = jnp.broadcast_to(p["cls_token"], (Bn, 1, D))
    tok = jnp.concatenate([cls, tok], axis=1) + p["pos_embed"]   # (B, T, D)

    feats = []
    for i in range(DEPTH):
        tok = transformer_block(tok, p["blocks"][i])
        if i in OUT_INDICES:
            feats.append(tok)
    return feats


def dpt_head_forward(feats, p):
    """DPTHead (small, classify=True): batched 1x1 reassemble, top-down 3x3
    fusion convs, fused 3x3+1x1+softmax classification head.  Returns NCHW."""
    Bn = feats[0].shape[0]
    feat_stack = jnp.stack(
        [f[:, 1:, :].reshape(Bn * HP * WP, D) for f in feats], axis=0)
    maps = reassemble(feat_stack, p["reassemble_w"], p["reassemble_b"])
    maps = maps.reshape(len(OUT_INDICES), Bn, HP, WP, CD)

    y = maps[-1]
    for i, (fw, fb) in enumerate(p["fusion"]):
        m = maps[len(OUT_INDICES) - 2 - i]
        y = conv3x3(y + m, fw, fb, act="relu")

    taps = _make_taps(y)
    probs = pl.pallas_call(
        _cls_head_kernel,
        out_shape=jax.ShapeDtypeStruct((Bn * HP * WP, N_BINS), jnp.float32),
        in_specs=[_VMEM] * 5,
        out_specs=_VMEM,
    )(taps, p["head_w1"], p["head_b1"], p["head_w2"], p["head_b2"])
    # NCHW transpose happens in XLA *after* the lane-dense (256-wide) store.
    return probs.reshape(Bn, HP, WP, N_BINS).transpose(0, 3, 1, 2)


def sslae_forward(x_nchw, params):
    feats = backbone_forward(x_nchw, params["backbone"])
    return dpt_head_forward(feats, params["head"])


# ------------------------------- init ---------------------------------------
def _dense(key, shape, scale=0.02, dtype=MM_DTYPE):
    return (scale * jax.random.normal(key, shape)).astype(dtype)


def init_params(key):
    keys = iter(jax.random.split(key, 128))
    f32 = jnp.float32
    bb = {
        "patch_w": _dense(next(keys), (C_IN * PATCH * PATCH, D)),
        "patch_b": jnp.zeros((1, D), f32),
        "cls_token": _dense(next(keys), (1, 1, D), dtype=f32),
        "pos_embed": _dense(next(keys), (1, T, D), dtype=f32),
        "blocks": [],
    }
    for _ in range(DEPTH):
        bb["blocks"].append({
            "ln1_g": jnp.ones((1, D), f32),
            "ln1_b": jnp.zeros((1, D), f32),
            "w_qkv": _dense(next(keys), (D, 3 * D)),
            "b_qkv": jnp.zeros((1, 3 * D), f32),
            "w_o": _dense(next(keys), (D, D)),
            "b_o": jnp.zeros((1, D), f32),
            "ln2_g": jnp.ones((1, D), f32),
            "ln2_b": jnp.zeros((1, D), f32),
            "w_fc1": _dense(next(keys), (D, MLP_HIDDEN)),
            "b_fc1": jnp.zeros((1, MLP_HIDDEN), f32),
            "w_fc2": _dense(next(keys), (MLP_HIDDEN, D)),
            "b_fc2": jnp.zeros((1, D), f32),
        })
    head = {
        "reassemble_w": jnp.stack(
            [_dense(next(keys), (D, CD)) for _ in OUT_INDICES], axis=0),
        "reassemble_b": jnp.zeros((len(OUT_INDICES), 1, CD), f32),
        "fusion": [(_dense(next(keys), (3, 3, CD, CD)).reshape(9, CD, CD),
                    jnp.zeros((1, CD), f32))
                   for _ in range(len(OUT_INDICES) - 1)],
        "head_w1": _dense(next(keys), (3, 3, CD, CD // 2)).reshape(9, CD, CD // 2),
        "head_b1": jnp.zeros((1, CD // 2), f32),
        "head_w2": _dense(next(keys), (CD // 2, N_BINS)),
        "head_b2": jnp.zeros((1, N_BINS), f32),
    }
    return {"backbone": bb, "head": head}


# ------------------------------- main ----------------------------------------
if __name__ == "__main__":
    key = jax.random.PRNGKey(0)
    kx, kp = jax.random.split(key)
    x = jax.random.normal(kx, (B, C_IN, IMG, IMG), jnp.float32)
    params = init_params(kp)

    fwd = jax.jit(lambda inp: sslae_forward(inp, params))
    out = fwd(x)
    jax.block_until_ready(out)

    assert out.shape == (B, N_BINS, HP, WP), out.shape
    assert out.dtype == jnp.float32
    # softmax over bins should sum to ~1 at every pixel
    s = jnp.sum(out, axis=1)
    assert bool(jnp.allclose(s, jnp.ones_like(s), atol=1e-4))
    print("KERNEL_OK")
</pallas_src>

<mosaic_0001>
module attributes {stable_mosaic.version = 11 : i64} {
  func.func @_linear_kernel(%arg0: memref<32x192xf32, #tpu.memory_space<vmem>>, %arg1: memref<192x64xbf16, #tpu.memory_space<vmem>>, %arg2: memref<1x64xf32, #tpu.memory_space<vmem>>, %arg3: memref<32x64xf32, #tpu.memory_space<vmem>>) attributes {dimension_semantics = [], scalar_prefetch = 0 : i64, scratch_operands = 0 : i64, tpu.core_type = #tpu.core_type<tc>} {
    %c0 = arith.constant 0 : index
    %c0_0 = arith.constant 0 : index
    %0 = vector.load %arg0[%c0, %c0_0] : memref<32x192xf32, #tpu.memory_space<vmem>>, vector<32x192xf32>
    %c0_1 = arith.constant 0 : index
    %c0_2 = arith.constant 0 : index
    %1 = vector.load %arg1[%c0_1, %c0_2] : memref<192x64xbf16, #tpu.memory_space<vmem>>, vector<192x64xbf16>
    %2 = arith.truncf %0 : vector<32x192xf32> to vector<32x192xbf16>
    %cst = arith.constant dense<0.000000e+00> : vector<32x64xf32>
    %3 = tpu.matmul %2, %1, %cst {dimension_numbers = #tpu.dot_dimension_numbers<[1], [0], [0], [1], [0, 0, 1, 1], [], []>} : vector<32x192xbf16>, vector<192x64xbf16>, vector<32x64xf32> -> vector<32x64xf32>
    %c0_3 = arith.constant 0 : index
    %c0_4 = arith.constant 0 : index
    %4 = vector.load %arg2[%c0_3, %c0_4] : memref<1x64xf32, #tpu.memory_space<vmem>>, vector<1x64xf32>
    %5 = vector.broadcast %4 : vector<1x64xf32> to vector<32x64xf32>
    %6 = arith.addf %3, %5 : vector<32x64xf32>
    %c0_5 = arith.constant 0 : index
    %c0_6 = arith.constant 0 : index
    %7 = vector.load %arg3[%c0_5, %c0_6] : memref<32x64xf32, #tpu.memory_space<vmem>>, vector<32x64xf32>
    tpu.vector_store %arg3[%c0_5, %c0_6], %6 {strides = array<i32>} : memref<32x64xf32, #tpu.memory_space<vmem>>, vector<32x64xf32>,
    return
  }
}

module attributes {stable_mosaic.version = 11 : i64} {
  func.func @_block_kernel(%arg0: i32, %arg1: memref<1x17x64xf32, #tpu.memory_space<vmem>>, %arg2: memref<1x64xf32, #tpu.memory_space<vmem>>, %arg3: memref<1x64xf32, #tpu.memory_space<vmem>>, %arg4: memref<64x192xbf16, #tpu.memory_space<vmem>>, %arg5: memref<1x192xf32, #tpu.memory_space<vmem>>, %arg6: memref<64x64xbf16, #tpu.memory_space<vmem>>, %arg7: memref<1x64xf32, #tpu.memory_space<vmem>>, %arg8: memref<1x64xf32, #tpu.memory_space<vmem>>, %arg9: memref<1x64xf32, #tpu.memory_space<vmem>>, %arg10: memref<64x256xbf16, #tpu.memory_space<vmem>>, %arg11: memref<1x256xf32, #tpu.memory_space<vmem>>, %arg12: memref<256x64xbf16, #tpu.memory_space<vmem>>, %arg13: memref<1x64xf32, #tpu.memory_space<vmem>>, %arg14: memref<1x17x64xf32, #tpu.memory_space<vmem>>) attributes {dimension_semantics = [#tpu.dimension_semantics<parallel>], iteration_bounds = array<i64: 2>, scalar_prefetch = 0 : i64, scratch_operands = 0 : i64, tpu.core_type = #tpu.core_type<tc>, window_params = [{transform_indices = @transform_0, window_bounds = array<i64: 1, 17, 64>}, {pipeline_mode = #tpu.pipeline_mode<synchronous>, transform_indices = @transform_1, window_bounds = array<i64: 1, 64>}, {pipeline_mode = #tpu.pipeline_mode<synchronous>, transform_indices = @transform_2, window_bounds = array<i64: 1, 64>}, {pipeline_mode = #tpu.pipeline_mode<synchronous>, transform_indices = @transform_3, window_bounds = array<i64: 64, 192>}, {pipeline_mode = #tpu.pipeline_mode<synchronous>, transform_indices = @transform_4, window_bounds = array<i64: 1, 192>}, {pipeline_mode = #tpu.pipeline_mode<synchronous>, transform_indices = @transform_5, window_bounds = array<i64: 64, 64>}, {pipeline_mode = #tpu.pipeline_mode<synchronous>, transform_indices = @transform_6, window_bounds = array<i64: 1, 64>}, {pipeline_mode = #tpu.pipeline_mode<synchronous>, transform_indices = @transform_7, window_bounds = array<i64: 1, 64>}, {pipeline_mode = #tpu.pipeline_mode<synchronous>, transform_indices = @transform_8, window_bounds = array<i64: 1, 64>}, {pipeline_mode = #tpu.pipeline_mode<synchronous>, transform_indices = @transform_9, window_bounds = array<i64: 64, 256>}, {pipeline_mode = #tpu.pipeline_mode<synchronous>, transform_indices = @transform_10, window_bounds = array<i64: 1, 256>}, {pipeline_mode = #tpu.pipeline_mode<synchronous>, transform_indices = @transform_11, window_bounds = array<i64: 256, 64>}, {pipeline_mode = #tpu.pipeline_mode<synchronous>, transform_indices = @transform_12, window_bounds = array<i64: 1, 64>}, {transform_indices = @transform_13, window_bounds = array<i64: 1, 17, 64>}]} {
    %c0 = arith.constant 0 : index
    %c0_0 = arith.constant 0 : index
    %c0_1 = arith.constant 0 : index
    %0 = vector.load %arg1[%c0, %c0_0, %c0_1] : memref<1x17x64xf32, #tpu.memory_space<vmem>>, vector<1x17x64xf32>
    %1 = vector.shape_cast %0 : vector<1x17x64xf32> to vector<17x64xf32>
    %c0_2 = arith.constant 0 : index
    %c0_3 = arith.constant 0 : index
    %2 = vector.load %arg2[%c0_2, %c0_3] : memref<1x64xf32, #tpu.memory_space<vmem>>, vector<1x64xf32>
    %c0_4 = arith.constant 0 : index
    %c0_5 = arith.constant 0 : index
    %3 = vector.load %arg3[%c0_4, %c0_5] : memref<1x64xf32, #tpu.memory_space<vmem>>, vector<1x64xf32>
    %cst = arith.constant dense<0.000000e+00> : vector<17xf32>
    %4 = vector.multi_reduction <add>, %1, %cst [1] : vector<17x64xf32> to vector<17xf32>
    %5 = vector.shape_cast %4 : vector<17xf32> to vector<17x1xf32>
    %cst_6 = arith.constant 6.400000e+01 : f32
    %6 = vector.broadcast %cst_6 : f32 to vector<17x1xf32>
    %7 = arith.divf %5, %6 : vector<17x1xf32>
    %8 = vector.broadcast %7 : vector<17x1xf32> to vector<17x64xf32>
    %9 = arith.subf %1, %8 : vector<17x64xf32>
    %10 = arith.mulf %9, %9 : vector<17x64xf32>
    %cst_7 = arith.constant dense<0.000000e+00> : vector<17xf32>
    %11 = vector.multi_reduction <add>, %10, %cst_7 [1] : vector<17x64xf32> to vector<17xf32>
    %12 = vector.shape_cast %11 : vector<17xf32> to vector<17x1xf32>
    %cst_8 = arith.constant 6.400000e+01 : f32
    %13 = vector.broadcast %cst_8 : f32 to vector<17x1xf32>
    %14 = arith.divf %12, %13 : vector<17x1xf32>
    %15 = vector.broadcast %7 : vector<17x1xf32> to vector<17x64xf32>
    %16 = arith.subf %1, %15 : vector<17x64xf32>
    %cst_9 = arith.constant 9.99999997E-7 : f32
    %17 = vector.broadcast %cst_9 : f32 to vector<17x1xf32>
    %18 = arith.addf %14, %17 : vector<17x1xf32>
    %19 = math.rsqrt %18 : vector<17x1xf32>
    %20 = vector.broadcast %19 : vector<17x1xf32> to vector<17x64xf32>
    %21 = arith.mulf %16, %20 : vector<17x64xf32>
    %22 = vector.broadcast %2 : vector<1x64xf32> to vector<17x64xf32>
    %23 = arith.mulf %21, %22 : vector<17x64xf32>
    %24 = vector.broadcast %3 : vector<1x64xf32> to vector<17x64xf32>
    %25 = arith.addf %23, %24 : vector<17x64xf32>
    %c0_10 = arith.constant 0 : index
    %c0_11 = arith.constant 0 : index
    %26 = vector.load %arg4[%c0_10, %c0_11] : memref<64x192xbf16, #tpu.memory_space<vmem>>, vector<64x192xbf16>
    %27 = arith.truncf %25 : vector<17x64xf32> to vector<17x64xbf16>
    %cst_12 = arith.constant dense<0.000000e+00> : vector<17x192xf32>
    %28 = tpu.matmul %27, %26, %cst_12 {dimension_numbers = #tpu.dot_dimension_numbers<[1], [0], [0], [1], [0, 0, 1, 1], [], []>} : vector<17x64xbf16>, vector<64x192xbf16>, vector<17x192xf32> -> vector<17x192xf32>
    %c0_13 = arith.constant 0 : index
    %c0_14 = arith.constant 0 : index
    %29 = vector.load %arg5[%c0_13, %c0_14] : memref<1x192xf32, #tpu.memory_space<vmem>>, vector<1x192xf32>
    %30 = vector.broadcast %29 : vector<1x192xf32> to vector<17x192xf32>
    %31 = arith.addf %28, %30 : vector<17x192xf32>
    %c0_15 = arith.constant 0 : index
    %c0_16 = arith.constant 0 : index
    %32 = vector.load %arg6[%c0_15, %c0_16] : memref<64x64xbf16, #tpu.memory_space<vmem>>, vector<64x64xbf16>
    %cst_17 = arith.constant 0.000000e+00 : f32
    %33 = vector.broadcast %cst_17 : f32 to vector<17x64xf32>
    %34 = vector.extract_strided_slice %31 {offsets = [0, 0], sizes = [17, 16], strides = [1, 1]} : vector<17x192xf32> to vector<17x16xf32>
    %35 = vector.extract_strided_slice %31 {offsets = [0, 64], sizes = [17, 16], strides = [1, 1]} : vector<17x192xf32> to vector<17x16xf32>
    %36 = vector.extract_strided_slice %31 {offsets = [0, 128], sizes = [17, 16], strides = [1, 1]} : vector<17x192xf32> to vector<17x16xf32>
    %37 = arith.truncf %34 : vector<17x16xf32> to vector<17x16xbf16>
    %38 = arith.truncf %35 : vector<17x16xf32> to vector<17x16xbf16>
    %cst_18 = arith.constant dense<0.000000e+00> : vector<17x17xf32>
    %39 = tpu.matmul %37, %38, %cst_18 {dimension_numbers = #tpu.dot_dimension_numbers<[1], [1], [0], [0], [0, 0, 1, 0], [], []>} : vector<17x16xbf16>, vector<17x16xbf16>, vector<17x17xf32> -> vector<17x17xf32>
    %cst_19 = arith.constant 2.500000e-01 : f32
    %40 = vector.broadcast %cst_19 : f32 to vector<17x17xf32>
    %41 = arith.mulf %39, %40 : vector<17x17xf32>
    %cst_20 = arith.constant dense<0xFF800000> : vector<17xf32>
    %42 = vector.multi_reduction <maximumf>, %41, %cst_20 [1] : vector<17x17xf32> to vector<17xf32>
    %43 = vector.shape_cast %42 : vector<17xf32> to vector<17x1xf32>
    %44 = vector.broadcast %43 : vector<17x1xf32> to vector<17x17xf32>
    %45 = arith.subf %41, %44 : vector<17x17xf32>
    %46 = math.exp %45 : vector<17x17xf32>
    %cst_21 = arith.constant dense<0.000000e+00> : vector<17xf32>
    %47 = vector.multi_reduction <add>, %46, %cst_21 [1] : vector<17x17xf32> to vector<17xf32>
    %48 = vector.shape_cast %47 : vector<17xf32> to vector<17x1xf32>
    %49 = tpu.reciprocal %48 {approx = true} : vector<17x1xf32> -> vector<17x1xf32>
    %50 = vector.broadcast %49 : vector<17x1xf32> to vector<17x17xf32>
    %51 = arith.mulf %46, %50 : vector<17x17xf32>
    %52 = arith.truncf %51 : vector<17x17xf32> to vector<17x17xbf16>
    %53 = arith.truncf %36 : vector<17x16xf32> to vector<17x16xbf16>
    %cst_22 = arith.constant dense<0.000000e+00> : vector<17x16xf32>
    %54 = tpu.matmul %52, %53, %cst_22 {dimension_numbers = #tpu.dot_dimension_numbers<[1], [0], [0], [1], [0, 0, 1, 1], [], []>} : vector<17x17xbf16>, vector<17x16xbf16>, vector<17x16xf32> -> vector<17x16xf32>
    %55 = vector.extract_strided_slice %32 {offsets = [0, 0], sizes = [16, 64], strides = [1, 1]} : vector<64x64xbf16> to vector<16x64xbf16>
    %56 = arith.truncf %54 : vector<17x16xf32> to vector<17x16xbf16>
    %cst_23 = arith.constant dense<0.000000e+00> : vector<17x64xf32>
    %57 = tpu.matmul %56, %55, %cst_23 {dimension_numbers = #tpu.dot_dimension_numbers<[1], [0], [0], [1], [0, 0, 1, 1], [], []>} : vector<17x16xbf16>, vector<16x64xbf16>, vector<17x64xf32> -> vector<17x64xf32>
    %58 = arith.addf %33, %57 : vector<17x64xf32>
    %59 = vector.extract_strided_slice %31 {offsets = [0, 16], sizes = [17, 16], strides = [1, 1]} : vector<17x192xf32> to vector<17x16xf32>
    %60 = vector.extract_strided_slice %31 {offsets = [0, 80], sizes = [17, 16], strides = [1, 1]} : vector<17x192xf32> to vector<17x16xf32>
    %61 = vector.extract_strided_slice %31 {offsets = [0, 144], sizes = [17, 16], strides = [1, 1]} : vector<17x192xf32> to vector<17x16xf32>
    %62 = arith.truncf %59 : vector<17x16xf32> to vector<17x16xbf16>
    %63 = arith.truncf %60 : vector<17x16xf32> to vector<17x16xbf16>
    %cst_24 = arith.constant dense<0.000000e+00> : vector<17x17xf32>
    %64 = tpu.matmul %62, %63, %cst_24 {dimension_numbers = #tpu.dot_dimension_numbers<[1], [1], [0], [0], [0, 0, 1, 0], [], []>} : vector<17x16xbf16>, vector<17x16xbf16>, vector<17x17xf32> -> vector<17x17xf32>
    %cst_25 = arith.constant 2.500000e-01 : f32
    %65 = vector.broadcast %cst_25 : f32 to vector<17x17xf32>
    %66 = arith.mulf %64, %65 : vector<17x17xf32>
    %cst_26 = arith.constant dense<0xFF800000> : vector<17xf32>
    %67 = vector.multi_reduction <maximumf>, %66, %cst_26 [1] : vector<17x17xf32> to vector<17xf32>
    %68 = vector.shape_cast %67 : vector<17xf32> to vector<17x1xf32>
    %69 = vector.broadcast %68 : vector<17x1xf32> to vector<17x17xf32>
    %70 = arith.subf %66, %69 : vector<17x17xf32>
    %71 = math.exp %70 : vector<17x17xf32>
    %cst_27 = arith.constant dense<0.000000e+00> : vector<17xf32>
    %72 = vector.multi_reduction <add>, %71, %cst_27 [1] : vector<17x17xf32> to vector<17xf32>
    %73 = vector.shape_cast %72 : vector<17xf32> to vector<17x1xf32>
    %74 = tpu.reciprocal %73 {approx = true} : vector<17x1xf32> -> vector<17x1xf32>
    %75 = vector.broadcast %74 : vector<17x1xf32> to vector<17x17xf32>
    %76 = arith.mulf %71, %75 : vector<17x17xf32>
    %77 = arith.truncf %76 : vector<17x17xf32> to vector<17x17xbf16>
    %78 = arith.truncf %61 : vector<17x16xf32> to vector<17x16xbf16>
    %cst_28 = arith.constant dense<0.000000e+00> : vector<17x16xf32>
    %79 = tpu.matmul %77, %78, %cst_28 {dimension_numbers = #tpu.dot_dimension_numbers<[1], [0], [0], [1], [0, 0, 1, 1], [], []>} : vector<17x17xbf16>, vector<17x16xbf16>, vector<17x16xf32> -> vector<17x16xf32>
    %80 = vector.extract_strided_slice %32 {offsets = [16, 0], sizes = [16, 64], strides = [1, 1]} : vector<64x64xbf16> to vector<16x64xbf16>
    %81 = arith.truncf %79 : vector<17x16xf32> to vector<17x16xbf16>
    %cst_29 = arith.constant dense<0.000000e+00> : vector<17x64xf32>
    %82 = tpu.matmul %81, %80, %cst_29 {dimension_numbers = #tpu.dot_dimension_numbers<[1], [0], [0], [1], [0, 0, 1, 1], [], []>} : vector<17x16xbf16>, vector<16x64xbf16>, vector<17x64xf32> -> vector<17x64xf32>
    %83 = arith.addf %58, %82 : vector<17x64xf32>
    %84 = vector.extract_strided_slice %31 {offsets = [0, 32], sizes = [17, 16], strides = [1, 1]} : vector<17x192xf32> to vector<17x16xf32>
    %85 = vector.extract_strided_slice %31 {offsets = [0, 96], sizes = [17, 16], strides = [1, 1]} : vector<17x192xf32> to vector<17x16xf32>
    %86 = vector.extract_strided_slice %31 {offsets = [0, 160], sizes = [17, 16], strides = [1, 1]} : vector<17x192xf32> to vector<17x16xf32>
    %87 = arith.truncf %84 : vector<17x16xf32> to vector<17x16xbf16>
    %88 = arith.truncf %85 : vector<17x16xf32> to vector<17x16xbf16>
    %cst_30 = arith.constant dense<0.000000e+00> : vector<17x17xf32>
    %89 = tpu.matmul %87, %88, %cst_30 {dimension_numbers = #tpu.dot_dimension_numbers<[1], [1], [0], [0], [0, 0, 1, 0], [], []>} : vector<17x16xbf16>, vector<17x16xbf16>, vector<17x17xf32> -> vector<17x17xf32>
    %cst_31 = arith.constant 2.500000e-01 : f32
    %90 = vector.broadcast %cst_31 : f32 to vector<17x17xf32>
    %91 = arith.mulf %89, %90 : vector<17x17xf32>
    %cst_32 = arith.constant dense<0xFF800000> : vector<17xf32>
    %92 = vector.multi_reduction <maximumf>, %91, %cst_32 [1] : vector<17x17xf32> to vector<17xf32>
    %93 = vector.shape_cast %92 : vector<17xf32> to vector<17x1xf32>
    %94 = vector.broadcast %93 : vector<17x1xf32> to vector<17x17xf32>
    %95 = arith.subf %91, %94 : vector<17x17xf32>
    %96 = math.exp %95 : vector<17x17xf32>
    %cst_33 = arith.constant dense<0.000000e+00> : vector<17xf32>
    %97 = vector.multi_reduction <add>, %96, %cst_33 [1] : vector<17x17xf32> to vector<17xf32>
    %98 = vector.shape_cast %97 : vector<17xf32> to vector<17x1xf32>
    %99 = tpu.reciprocal %98 {approx = true} : vector<17x1xf32> -> vector<17x1xf32>
    %100 = vector.broadcast %99 : vector<17x1xf32> to vector<17x17xf32>
    %101 = arith.mulf %96, %100 : vector<17x17xf32>
    %102 = arith.truncf %101 : vector<17x17xf32> to vector<17x17xbf16>
    %103 = arith.truncf %86 : vector<17x16xf32> to vector<17x16xbf16>
    %cst_34 = arith.constant dense<0.000000e+00> : vector<17x16xf32>
    %104 = tpu.matmul %102, %103, %cst_34 {dimension_numbers = #tpu.dot_dimension_numbers<[1], [0], [0], [1], [0, 0, 1, 1], [], []>} : vector<17x17xbf16>, vector<17x16xbf16>, vector<17x16xf32> -> vector<17x16xf32>
    %105 = vector.extract_strided_slice %32 {offsets = [32, 0], sizes = [16, 64], strides = [1, 1]} : vector<64x64xbf16> to vector<16x64xbf16>
    %106 = arith.truncf %104 : vector<17x16xf32> to vector<17x16xbf16>
    %cst_35 = arith.constant dense<0.000000e+00> : vector<17x64xf32>
    %107 = tpu.matmul %106, %105, %cst_35 {dimension_numbers = #tpu.dot_dimension_numbers<[1], [0], [0], [1], [0, 0, 1, 1], [], []>} : vector<17x16xbf16>, vector<16x64xbf16>, vector<17x64xf32> -> vector<17x64xf32>
    %108 = arith.addf %83, %107 : vector<17x64xf32>
    %109 = vector.extract_strided_slice %31 {offsets = [0, 48], sizes = [17, 16], strides = [1, 1]} : vector<17x192xf32> to vector<17x16xf32>
    %110 = vector.extract_strided_slice %31 {offsets = [0, 112], sizes = [17, 16], strides = [1, 1]} : vector<17x192xf32> to vector<17x16xf32>
    %111 = vector.extract_strided_slice %31 {offsets = [0, 176], sizes = [17, 16], strides = [1, 1]} : vector<17x192xf32> to vector<17x16xf32>
    %112 = arith.truncf %109 : vector<17x16xf32> to vector<17x16xbf16>
    %113 = arith.truncf %110 : vector<17x16xf32> to vector<17x16xbf16>
    %cst_36 = arith.constant dense<0.000000e+00> : vector<17x17xf32>
    %114 = tpu.matmul %112, %113, %cst_36 {dimension_numbers = #tpu.dot_dimension_numbers<[1], [1], [0], [0], [0, 0, 1, 0], [], []>} : vector<17x16xbf16>, vector<17x16xbf16>, vector<17x17xf32> -> vector<17x17xf32>
    %cst_37 = arith.constant 2.500000e-01 : f32
    %115 = vector.broadcast %cst_37 : f32 to vector<17x17xf32>
    %116 = arith.mulf %114, %115 : vector<17x17xf32>
    %cst_38 = arith.constant dense<0xFF800000> : vector<17xf32>
    %117 = vector.multi_reduction <maximumf>, %116, %cst_38 [1] : vector<17x17xf32> to vector<17xf32>
    %118 = vector.shape_cast %117 : vector<17xf32> to vector<17x1xf32>
    %119 = vector.broadcast %118 : vector<17x1xf32> to vector<17x17xf32>
    %120 = arith.subf %116, %119 : vector<17x17xf32>
    %121 = math.exp %120 : vector<17x17xf32>
    %cst_39 = arith.constant dense<0.000000e+00> : vector<17xf32>
    %122 = vector.multi_reduction <add>, %121, %cst_39 [1] : vector<17x17xf32> to vector<17xf32>
    %123 = vector.shape_cast %122 : vector<17xf32> to vector<17x1xf32>
    %124 = tpu.reciprocal %123 {approx = true} : vector<17x1xf32> -> vector<17x1xf32>
    %125 = vector.broadcast %124 : vector<17x1xf32> to vector<17x17xf32>
    %126 = arith.mulf %121, %125 : vector<17x17xf32>
    %127 = arith.truncf %126 : vector<17x17xf32> to vector<17x17xbf16>
    %128 = arith.truncf %111 : vector<17x16xf32> to vector<17x16xbf16>
    %cst_40 = arith.constant dense<0.000000e+00> : vector<17x16xf32>
    %129 = tpu.matmul %127, %128, %cst_40 {dimension_numbers = #tpu.dot_dimension_numbers<[1], [0], [0], [1], [0, 0, 1, 1], [], []>} : vector<17x17xbf16>, vector<17x16xbf16>, vector<17x16xf32> -> vector<17x16xf32>
    %130 = vector.extract_strided_slice %32 {offsets = [48, 0], sizes = [16, 64], strides = [1, 1]} : vector<64x64xbf16> to vector<16x64xbf16>
    %131 = arith.truncf %129 : vector<17x16xf32> to vector<17x16xbf16>
    %cst_41 = arith.constant dense<0.000000e+00> : vector<17x64xf32>
    %132 = tpu.matmul %131, %130, %cst_41 {dimension_numbers = #tpu.dot_dimension_numbers<[1], [0], [0], [1], [0, 0, 1, 1], [], []>} : vector<17x16xbf16>, vector<16x64xbf16>, vector<17x64xf32> -> vector<17x64xf32>
    %133 = arith.addf %108, %132 : vector<17x64xf32>
    %134 = arith.addf %1, %133 : vector<17x64xf32>
    %c0_42 = arith.constant 0 : index
    %c0_43 = arith.constant 0 : index
    %135 = vector.load %arg7[%c0_42, %c0_43] : memref<1x64xf32, #tpu.memory_space<vmem>>, vector<1x64xf32>
    %136 = vector.broadcast %135 : vector<1x64xf32> to vector<17x64xf32>
    %137 = arith.addf %134, %136 : vector<17x64xf32>
    %c0_44 = arith.constant 0 : index
    %c0_45 = arith.constant 0 : index
    %138 = vector.load %arg8[%c0_44, %c0_45] : memref<1x64xf32, #tpu.memory_space<vmem>>, vector<1x64xf32>
    %c0_46 = arith.constant 0 : index
    %c0_47 = arith.constant 0 : index
    %139 = vector.load %arg9[%c0_46, %c0_47] : memref<1x64xf32, #tpu.memory_space<vmem>>, vector<1x64xf32>
    %cst_48 = arith.constant dense<0.000000e+00> : vector<17xf32>
    %140 = vector.multi_reduction <add>, %137, %cst_48 [1] : vector<17x64xf32> to vector<17xf32>
    %141 = vector.shape_cast %140 : vector<17xf32> to vector<17x1xf32>
    %cst_49 = arith.constant 6.400000e+01 : f32
    %142 = vector.broadcast %cst_49 : f32 to vector<17x1xf32>
    %143 = arith.divf %141, %142 : vector<17x1xf32>
    %144 = vector.broadcast %143 : vector<17x1xf32> to vector<17x64xf32>
    %145 = arith.subf %137, %144 : vector<17x64xf32>
    %146 = arith.mulf %145, %145 : vector<17x64xf32>
    %cst_50 = arith.constant dense<0.000000e+00> : vector<17xf32>
    %147 = vector.multi_reduction <add>, %146, %cst_50 [1] : vector<17x64xf32> to vector<17xf32>
    %148 = vector.shape_cast %147 : vector<17xf32> to vector<17x1xf32>
    %cst_51 = arith.constant 6.400000e+01 : f32
    %149 = vector.broadcast %cst_51 : f32 to vector<17x1xf32>
    %150 = arith.divf %148, %149 : vector<17x1xf32>
    %151 = vector.broadcast %143 : vector<17x1xf32> to vector<17x64xf32>
    %152 = arith.subf %137, %151 : vector<17x64xf32>
    %cst_52 = arith.constant 9.99999997E-7 : f32
    %153 = vector.broadcast %cst_52 : f32 to vector<17x1xf32>
    %154 = arith.addf %150, %153 : vector<17x1xf32>
    %155 = math.rsqrt %154 : vector<17x1xf32>
    %156 = vector.broadcast %155 : vector<17x1xf32> to vector<17x64xf32>
    %157 = arith.mulf %152, %156 : vector<17x64xf32>
    %158 = vector.broadcast %138 : vector<1x64xf32> to vector<17x64xf32>
    %159 = arith.mulf %157, %158 : vector<17x64xf32>
    %160 = vector.broadcast %139 : vector<1x64xf32> to vector<17x64xf32>
    %161 = arith.addf %159, %160 : vector<17x64xf32>
    %c0_53 = arith.constant 0 : index
    %c0_54 = arith.constant 0 : index
    %162 = vector.load %arg10[%c0_53, %c0_54] : memref<64x256xbf16, #tpu.memory_space<vmem>>, vector<64x256xbf16>
    %163 = arith.truncf %161 : vector<17x64xf32> to vector<17x64xbf16>
    %cst_55 = arith.constant dense<0.000000e+00> : vector<17x256xf32>
    %164 = tpu.matmul %163, %162, %cst_55 {dimension_numbers = #tpu.dot_dimension_numbers<[1], [0], [0], [1], [0, 0, 1, 1], [], []>} : vector<17x64xbf16>, vector<64x256xbf16>, vector<17x256xf32> -> vector<17x256xf32>
    %c0_56 = arith.constant 0 : index
    %c0_57 = arith.constant 0 : index
    %165 = vector.load %arg11[%c0_56, %c0_57] : memref<1x256xf32, #tpu.memory_space<vmem>>, vector<1x256xf32>
    %166 = vector.broadcast %165 : vector<1x256xf32> to vector<17x256xf32>
    %167 = arith.addf %164, %166 : vector<17x256xf32>
    %168 = arith.mulf %167, %167 : vector<17x256xf32>
    %169 = arith.mulf %167, %168 : vector<17x256xf32>
    %cst_58 = arith.constant 4.471500e-02 : f32
    %170 = vector.broadcast %cst_58 : f32 to vector<17x256xf32>
    %171 = arith.mulf %170, %169 : vector<17x256xf32>
    %172 = arith.addf %167, %171 : vector<17x256xf32>
    %cst_59 = arith.constant 0.797884583 : f32
    %173 = vector.broadcast %cst_59 : f32 to vector<17x256xf32>
    %174 = arith.mulf %173, %172 : vector<17x256xf32>
    %175 = math.tanh %174 : vector<17x256xf32>
    %cst_60 = arith.constant 1.000000e+00 : f32
    %176 = vector.broadcast %cst_60 : f32 to vector<17x256xf32>
    %177 = arith.addf %176, %175 : vector<17x256xf32>
    %cst_61 = arith.constant 5.000000e-01 : f32
    %178 = vector.broadcast %cst_61 : f32 to vector<17x256xf32>
    %179 = arith.mulf %178, %177 : vector<17x256xf32>
    %180 = arith.mulf %167, %179 : vector<17x256xf32>
    %c0_62 = arith.constant 0 : index
    %c0_63 = arith.constant 0 : index
    %181 = vector.load %arg12[%c0_62, %c0_63] : memref<256x64xbf16, #tpu.memory_space<vmem>>, vector<256x64xbf16>
    %182 = arith.truncf %180 : vector<17x256xf32> to vector<17x256xbf16>
    %cst_64 = arith.constant dense<0.000000e+00> : vector<17x64xf32>
    %183 = tpu.matmul %182, %181, %cst_64 {dimension_numbers = #tpu.dot_dimension_numbers<[1], [0], [0], [1], [0, 0, 1, 1], [], []>} : vector<17x256xbf16>, vector<256x64xbf16>, vector<17x64xf32> -> vector<17x64xf32>
    %c0_65 = arith.constant 0 : index
    %c0_66 = arith.constant 0 : index
    %184 = vector.load %arg13[%c0_65, %c0_66] : memref<1x64xf32, #tpu.memory_space<vmem>>, vector<1x64xf32>
    %185 = vector.broadcast %184 : vector<1x64xf32> to vector<17x64xf32>
    %186 = arith.addf %183, %185 : vector<17x64xf32>
    %187 = arith.addf %137, %186 : vector<17x64xf32>
    %c0_67 = arith.constant 0 : index
    %c0_68 = arith.constant 0 : index
    %c0_69 = arith.constant 0 : index
    %188 = vector.load %arg14[%c0_67, %c0_68, %c0_69] : memref<1x17x64xf32, #tpu.memory_space<vmem>>, vector<1x17x64xf32>
    %189 = vector.shape_cast %188 : vector<1x17x64xf32> to vector<17x64xf32>
    %190 = vector.shape_cast %187 : vector<17x64xf32> to vector<1x17x64xf32>
    tpu.vector_store %arg14[%c0_67, %c0_68, %c0_69], %190 {strides = array<i32>} : memref<1x17x64xf32, #tpu.memory_space<vmem>>, vector<1x17x64xf32>,
    return
  }
  func.func @transform_0(%arg0: i32) -> (i32, i32, i32) {
    %c0_i32 = arith.constant 0 : i32
    %c0_i32_0 = arith.constant 0 : i32
    %c0_i32_1 = arith.constant 0 : i32
    return %arg0, %c0_i32, %c0_i32_0 : i32, i32, i32
  }
  func.func @transform_1(%arg0: i32) -> (i32, i32) {
    %c0_i32 = arith.constant 0 : i32
    %c0_i32_0 = arith.constant 0 : i32
    %c0_i32_1 = arith.constant 0 : i32
    return %c0_i32, %c0_i32_0 : i32, i32
  }
  func.func @transform_2(%arg0: i32) -> (i32, i32) {
    %c0_i32 = arith.constant 0 : i32
    %c0_i32_0 = arith.constant 0 : i32
    %c0_i32_1 = arith.constant 0 : i32
    return %c0_i32, %c0_i32_0 : i32, i32
  }
  func.func @transform_3(%arg0: i32) -> (i32, i32) {
    %c0_i32 = arith.constant 0 : i32
    %c0_i32_0 = arith.constant 0 : i32
    %c0_i32_1 = arith.constant 0 : i32
    return %c0_i32, %c0_i32_0 : i32, i32
  }
  func.func @transform_4(%arg0: i32) -> (i32, i32) {
    %c0_i32 = arith.constant 0 : i32
    %c0_i32_0 = arith.constant 0 : i32
    %c0_i32_1 = arith.constant 0 : i32
    return %c0_i32, %c0_i32_0 : i32, i32
  }
  func.func @transform_5(%arg0: i32) -> (i32, i32) {
    %c0_i32 = arith.constant 0 : i32
    %c0_i32_0 = arith.constant 0 : i32
    %c0_i32_1 = arith.constant 0 : i32
    return %c0_i32, %c0_i32_0 : i32, i32
  }
  func.func @transform_6(%arg0: i32) -> (i32, i32) {
    %c0_i32 = arith.constant 0 : i32
    %c0_i32_0 = arith.constant 0 : i32
    %c0_i32_1 = arith.constant 0 : i32
    return %c0_i32, %c0_i32_0 : i32, i32
  }
  func.func @transform_7(%arg0: i32) -> (i32, i32) {
    %c0_i32 = arith.constant 0 : i32
    %c0_i32_0 = arith.constant 0 : i32
    %c0_i32_1 = arith.constant 0 : i32
    return %c0_i32, %c0_i32_0 : i32, i32
  }
  func.func @transform_8(%arg0: i32) -> (i32, i32) {
    %c0_i32 = arith.constant 0 : i32
    %c0_i32_0 = arith.constant 0 : i32
    %c0_i32_1 = arith.constant 0 : i32
    return %c0_i32, %c0_i32_0 : i32, i32
  }
  func.func @transform_9(%arg0: i32) -> (i32, i32) {
    %c0_i32 = arith.constant 0 : i32
    %c0_i32_0 = arith.constant 0 : i32
    %c0_i32_1 = arith.constant 0 : i32
    return %c0_i32, %c0_i32_0 : i32, i32
  }
  func.func @transform_10(%arg0: i32) -> (i32, i32) {
    %c0_i32 = arith.constant 0 : i32
    %c0_i32_0 = arith.constant 0 : i32
    %c0_i32_1 = arith.constant 0 : i32
    return %c0_i32, %c0_i32_0 : i32, i32
  }
  func.func @transform_11(%arg0: i32) -> (i32, i32) {
    %c0_i32 = arith.constant 0 : i32
    %c0_i32_0 = arith.constant 0 : i32
    %c0_i32_1 = arith.constant 0 : i32
    return %c0_i32, %c0_i32_0 : i32, i32
  }
  func.func @transform_12(%arg0: i32) -> (i32, i32) {
    %c0_i32 = arith.constant 0 : i32
    %c0_i32_0 = arith.constant 0 : i32
    %c0_i32_1 = arith.constant 0 : i32
    return %c0_i32, %c0_i32_0 : i32, i32
  }
  func.func @transform_13(%arg0: i32) -> (i32, i32, i32) {
    %c0_i32 = arith.constant 0 : i32
    %c0_i32_0 = arith.constant 0 : i32
    %c0_i32_1 = arith.constant 0 : i32
    return %arg0, %c0_i32, %c0_i32_0 : i32, i32, i32
  }
}

module attributes {stable_mosaic.version = 11 : i64} {
  func.func @_reassemble_kernel(%arg0: memref<4x32x64xf32, #tpu.memory_space<vmem>>, %arg1: memref<4x64x64xbf16, #tpu.memory_space<vmem>>, %arg2: memref<4x1x64xf32, #tpu.memory_space<vmem>>, %arg3: memref<4x32x64xf32, #tpu.memory_space<vmem>>) attributes {dimension_semantics = [], scalar_prefetch = 0 : i64, scratch_operands = 0 : i64, tpu.core_type = #tpu.core_type<tc>} {
    %c0 = arith.constant 0 : index
    %c0_0 = arith.constant 0 : index
    %c0_1 = arith.constant 0 : index
    %0 = vector.load %arg0[%c0, %c0_0, %c0_1] : memref<4x32x64xf32, #tpu.memory_space<vmem>>, vector<1x32x64xf32>
    %1 = vector.shape_cast %0 : vector<1x32x64xf32> to vector<32x64xf32>
    %c0_2 = arith.constant 0 : index
    %c0_3 = arith.constant 0 : index
    %c0_4 = arith.constant 0 : index
    %2 = vector.load %arg1[%c0_2, %c0_3, %c0_4] : memref<4x64x64xbf16, #tpu.memory_space<vmem>>, vector<1x64x64xbf16>
    %3 = vector.shape_cast %2 : vector<1x64x64xbf16> to vector<64x64xbf16>
    %4 = arith.truncf %1 : vector<32x64xf32> to vector<32x64xbf16>
    %cst = arith.constant dense<0.000000e+00> : vector<32x64xf32>
    %5 = tpu.matmul %4, %3, %cst {dimension_numbers = #tpu.dot_dimension_numbers<[1], [0], [0], [1], [0, 0, 1, 1], [], []>} : vector<32x64xbf16>, vector<64x64xbf16>, vector<32x64xf32> -> vector<32x64xf32>
    %c0_5 = arith.constant 0 : index
    %c0_6 = arith.constant 0 : index
    %c0_7 = arith.constant 0 : index
    %6 = vector.load %arg2[%c0_5, %c0_6, %c0_7] : memref<4x1x64xf32, #tpu.memory_space<vmem>>, vector<1x1x64xf32>
    %7 = vector.shape_cast %6 : vector<1x1x64xf32> to vector<1x64xf32>
    %8 = vector.broadcast %7 : vector<1x64xf32> to vector<32x64xf32>
    %9 = arith.addf %5, %8 : vector<32x64xf32>
    %c0_8 = arith.constant 0 : index
    %c0_9 = arith.constant 0 : index
    %c0_10 = arith.constant 0 : index
    %10 = vector.load %arg3[%c0_8, %c0_9, %c0_10] : memref<4x32x64xf32, #tpu.memory_space<vmem>>, vector<1x32x64xf32>
    %11 = vector.shape_cast %10 : vector<1x32x64xf32> to vector<32x64xf32>
    %12 = vector.shape_cast %9 : vector<32x64xf32> to vector<1x32x64xf32>
    tpu.vector_store %arg3[%c0_8, %c0_9, %c0_10], %12 {strides = array<i32>} : memref<4x32x64xf32, #tpu.memory_space<vmem>>, vector<1x32x64xf32>,
    %c1 = arith.constant 1 : index
    %c0_11 = arith.constant 0 : index
    %c0_12 = arith.constant 0 : index
    %13 = vector.load %arg0[%c1, %c0_11, %c0_12] : memref<4x32x64xf32, #tpu.memory_space<vmem>>, vector<1x32x64xf32>
    %14 = vector.shape_cast %13 : vector<1x32x64xf32> to vector<32x64xf32>
    %c1_13 = arith.constant 1 : index
    %c0_14 = arith.constant 0 : index
    %c0_15 = arith.constant 0 : index
    %15 = vector.load %arg1[%c1_13, %c0_14, %c0_15] : memref<4x64x64xbf16, #tpu.memory_space<vmem>>, vector<1x64x64xbf16>
    %16 = vector.shape_cast %15 : vector<1x64x64xbf16> to vector<64x64xbf16>
    %17 = arith.truncf %14 : vector<32x64xf32> to vector<32x64xbf16>
    %cst_16 = arith.constant dense<0.000000e+00> : vector<32x64xf32>
    %18 = tpu.matmul %17, %16, %cst_16 {dimension_numbers = #tpu.dot_dimension_numbers<[1], [0], [0], [1], [0, 0, 1, 1], [], []>} : vector<32x64xbf16>, vector<64x64xbf16>, vector<32x64xf32> -> vector<32x64xf32>
    %c1_17 = arith.constant 1 : index
    %c0_18 = arith.constant 0 : index
    %c0_19 = arith.constant 0 : index
    %19 = vector.load %arg2[%c1_17, %c0_18, %c0_19] : memref<4x1x64xf32, #tpu.memory_space<vmem>>, vector<1x1x64xf32>
    %20 = vector.shape_cast %19 : vector<1x1x64xf32> to vector<1x64xf32>
    %21 = vector.broadcast %20 : vector<1x64xf32> to vector<32x64xf32>
    %22 = arith.addf %18, %21 : vector<32x64xf32>
    %c1_20 = arith.constant 1 : index
    %c0_21 = arith.constant 0 : index
    %c0_22 = arith.constant 0 : index
    %23 = vector.load %arg3[%c1_20, %c0_21, %c0_22] : memref<4x32x64xf32, #tpu.memory_space<vmem>>, vector<1x32x64xf32>
    %24 = vector.shape_cast %23 : vector<1x32x64xf32> to vector<32x64xf32>
    %25 = vector.shape_cast %22 : vector<32x64xf32> to vector<1x32x64xf32>
    tpu.vector_store %arg3[%c1_20, %c0_21, %c0_22], %25 {strides = array<i32>} : memref<4x32x64xf32, #tpu.memory_space<vmem>>, vector<1x32x64xf32>,
    %c2 = arith.constant 2 : index
    %c0_23 = arith.constant 0 : index
    %c0_24 = arith.constant 0 : index
    %26 = vector.load %arg0[%c2, %c0_23, %c0_24] : memref<4x32x64xf32, #tpu.memory_space<vmem>>, vector<1x32x64xf32>
    %27 = vector.shape_cast %26 : vector<1x32x64xf32> to vector<32x64xf32>
    %c2_25 = arith.constant 2 : index
    %c0_26 = arith.constant 0 : index
    %c0_27 = arith.constant 0 : index
    %28 = vector.load %arg1[%c2_25, %c0_26, %c0_27] : memref<4x64x64xbf16, #tpu.memory_space<vmem>>, vector<1x64x64xbf16>
    %29 = vector.shape_cast %28 : vector<1x64x64xbf16> to vector<64x64xbf16>
    %30 = arith.truncf %27 : vector<32x64xf32> to vector<32x64xbf16>
    %cst_28 = arith.constant dense<0.000000e+00> : vector<32x64xf32>
    %31 = tpu.matmul %30, %29, %cst_28 {dimension_numbers = #tpu.dot_dimension_numbers<[1], [0], [0], [1], [0, 0, 1, 1], [], []>} : vector<32x64xbf16>, vector<64x64xbf16>, vector<32x64xf32> -> vector<32x64xf32>
    %c2_29 = arith.constant 2 : index
    %c0_30 = arith.constant 0 : index
    %c0_31 = arith.constant 0 : index
    %32 = vector.load %arg2[%c2_29, %c0_30, %c0_31] : memref<4x1x64xf32, #tpu.memory_space<vmem>>, vector<1x1x64xf32>
    %33 = vector.shape_cast %32 : vector<1x1x64xf32> to vector<1x64xf32>
    %34 = vector.broadcast %33 : vector<1x64xf32> to vector<32x64xf32>
    %35 = arith.addf %31, %34 : vector<32x64xf32>
    %c2_32 = arith.constant 2 : index
    %c0_33 = arith.constant 0 : index
    %c0_34 = arith.constant 0 : index
    %36 = vector.load %arg3[%c2_32, %c0_33, %c0_34] : memref<4x32x64xf32, #tpu.memory_space<vmem>>, vector<1x32x64xf32>
    %37 = vector.shape_cast %36 : vector<1x32x64xf32> to vector<32x64xf32>
    %38 = vector.shape_cast %35 : vector<32x64xf32> to vector<1x32x64xf32>
    tpu.vector_store %arg3[%c2_32, %c0_33, %c0_34], %38 {strides = array<i32>} : memref<4x32x64xf32, #tpu.memory_space<vmem>>, vector<1x32x64xf32>,
    %c3 = arith.constant 3 : index
    %c0_35 = arith.constant 0 : index
    %c0_36 = arith.constant 0 : index
    %39 = vector.load %arg0[%c3, %c0_35, %c0_36] : memref<4x32x64xf32, #tpu.memory_space<vmem>>, vector<1x32x64xf32>
    %40 = vector.shape_cast %39 : vector<1x32x64xf32> to vector<32x64xf32>
    %c3_37 = arith.constant 3 : index
    %c0_38 = arith.constant 0 : index
    %c0_39 = arith.constant 0 : index
    %41 = vector.load %arg1[%c3_37, %c0_38, %c0_39] : memref<4x64x64xbf16, #tpu.memory_space<vmem>>, vector<1x64x64xbf16>
    %42 = vector.shape_cast %41 : vector<1x64x64xbf16> to vector<64x64xbf16>
    %43 = arith.truncf %40 : vector<32x64xf32> to vector<32x64xbf16>
    %cst_40 = arith.constant dense<0.000000e+00> : vector<32x64xf32>
    %44 = tpu.matmul %43, %42, %cst_40 {dimension_numbers = #tpu.dot_dimension_numbers<[1], [0], [0], [1], [0, 0, 1, 1], [], []>} : vector<32x64xbf16>, vector<64x64xbf16>, vector<32x64xf32> -> vector<32x64xf32>
    %c3_41 = arith.constant 3 : index
    %c0_42 = arith.constant 0 : index
    %c0_43 = arith.constant 0 : index
    %45 = vector.load %arg2[%c3_41, %c0_42, %c0_43] : memref<4x1x64xf32, #tpu.memory_space<vmem>>, vector<1x1x64xf32>
    %46 = vector.shape_cast %45 : vector<1x1x64xf32> to vector<1x64xf32>
    %47 = vector.broadcast %46 : vector<1x64xf32> to vector<32x64xf32>
    %48 = arith.addf %44, %47 : vector<32x64xf32>
    %c3_44 = arith.constant 3 : index
    %c0_45 = arith.constant 0 : index
    %c0_46 = arith.constant 0 : index
    %49 = vector.load %arg3[%c3_44, %c0_45, %c0_46] : memref<4x32x64xf32, #tpu.memory_space<vmem>>, vector<1x32x64xf32>
    %50 = vector.shape_cast %49 : vector<1x32x64xf32> to vector<32x64xf32>
    %51 = vector.shape_cast %48 : vector<32x64xf32> to vector<1x32x64xf32>
    tpu.vector_store %arg3[%c3_44, %c0_45, %c0_46], %51 {strides = array<i32>} : memref<4x32x64xf32, #tpu.memory_space<vmem>>, vector<1x32x64xf32>,
    return
  }
}

module attributes {stable_mosaic.version = 11 : i64} {
  func.func @_conv_taps_kernel(%arg0: memref<9x32x64xf32, #tpu.memory_space<vmem>>, %arg1: memref<9x64x64xbf16, #tpu.memory_space<vmem>>, %arg2: memref<1x64xf32, #tpu.memory_space<vmem>>, %arg3: memref<32x64xf32, #tpu.memory_space<vmem>>) attributes {dimension_semantics = [], scalar_prefetch = 0 : i64, scratch_operands = 0 : i64, tpu.core_type = #tpu.core_type<tc>} {
    %c0 = arith.constant 0 : index
    %c0_0 = arith.constant 0 : index
    %c0_1 = arith.constant 0 : index
    %0 = vector.load %arg0[%c0, %c0_0, %c0_1] : memref<9x32x64xf32, #tpu.memory_space<vmem>>, vector<1x32x64xf32>
    %1 = vector.shape_cast %0 : vector<1x32x64xf32> to vector<32x64xf32>
    %c0_2 = arith.constant 0 : index
    %c0_3 = arith.constant 0 : index
    %c0_4 = arith.constant 0 : index
    %2 = vector.load %arg1[%c0_2, %c0_3, %c0_4] : memref<9x64x64xbf16, #tpu.memory_space<vmem>>, vector<1x64x64xbf16>
    %3 = vector.shape_cast %2 : vector<1x64x64xbf16> to vector<64x64xbf16>
    %4 = arith.truncf %1 : vector<32x64xf32> to vector<32x64xbf16>
    %cst = arith.constant dense<0.000000e+00> : vector<32x64xf32>
    %5 = tpu.matmul %4, %3, %cst {dimension_numbers = #tpu.dot_dimension_numbers<[1], [0], [0], [1], [0, 0, 1, 1], [], []>} : vector<32x64xbf16>, vector<64x64xbf16>, vector<32x64xf32> -> vector<32x64xf32>
    %c1 = arith.constant 1 : index
    %c0_5 = arith.constant 0 : index
    %c0_6 = arith.constant 0 : index
    %6 = vector.load %arg0[%c1, %c0_5, %c0_6] : memref<9x32x64xf32, #tpu.memory_space<vmem>>, vector<1x32x64xf32>
    %7 = vector.shape_cast %6 : vector<1x32x64xf32> to vector<32x64xf32>
    %c1_7 = arith.constant 1 : index
    %c0_8 = arith.constant 0 : index
    %c0_9 = arith.constant 0 : index
    %8 = vector.load %arg1[%c1_7, %c0_8, %c0_9] : memref<9x64x64xbf16, #tpu.memory_space<vmem>>, vector<1x64x64xbf16>
    %9 = vector.shape_cast %8 : vector<1x64x64xbf16> to vector<64x64xbf16>
    %10 = arith.truncf %7 : vector<32x64xf32> to vector<32x64xbf16>
    %cst_10 = arith.constant dense<0.000000e+00> : vector<32x64xf32>
    %11 = tpu.matmul %10, %9, %cst_10 {dimension_numbers = #tpu.dot_dimension_numbers<[1], [0], [0], [1], [0, 0, 1, 1], [], []>} : vector<32x64xbf16>, vector<64x64xbf16>, vector<32x64xf32> -> vector<32x64xf32>
    %12 = arith.addf %5, %11 : vector<32x64xf32>
    %c2 = arith.constant 2 : index
    %c0_11 = arith.constant 0 : index
    %c0_12 = arith.constant 0 : index
    %13 = vector.load %arg0[%c2, %c0_11, %c0_12] : memref<9x32x64xf32, #tpu.memory_space<vmem>>, vector<1x32x64xf32>
    %14 = vector.shape_cast %13 : vector<1x32x64xf32> to vector<32x64xf32>
    %c2_13 = arith.constant 2 : index
    %c0_14 = arith.constant 0 : index
    %c0_15 = arith.constant 0 : index
    %15 = vector.load %arg1[%c2_13, %c0_14, %c0_15] : memref<9x64x64xbf16, #tpu.memory_space<vmem>>, vector<1x64x64xbf16>
    %16 = vector.shape_cast %15 : vector<1x64x64xbf16> to vector<64x64xbf16>
    %17 = arith.truncf %14 : vector<32x64xf32> to vector<32x64xbf16>
    %cst_16 = arith.constant dense<0.000000e+00> : vector<32x64xf32>
    %18 = tpu.matmul %17, %16, %cst_16 {dimension_numbers = #tpu.dot_dimension_numbers<[1], [0], [0], [1], [0, 0, 1, 1], [], []>} : vector<32x64xbf16>, vector<64x64xbf16>, vector<32x64xf32> -> vector<32x64xf32>
    %19 = arith.addf %12, %18 : vector<32x64xf32>
    %c3 = arith.constant 3 : index
    %c0_17 = arith.constant 0 : index
    %c0_18 = arith.constant 0 : index
    %20 = vector.load %arg0[%c3, %c0_17, %c0_18] : memref<9x32x64xf32, #tpu.memory_space<vmem>>, vector<1x32x64xf32>
    %21 = vector.shape_cast %20 : vector<1x32x64xf32> to vector<32x64xf32>
    %c3_19 = arith.constant 3 : index
    %c0_20 = arith.constant 0 : index
    %c0_21 = arith.constant 0 : index
    %22 = vector.load %arg1[%c3_19, %c0_20, %c0_21] : memref<9x64x64xbf16, #tpu.memory_space<vmem>>, vector<1x64x64xbf16>
    %23 = vector.shape_cast %22 : vector<1x64x64xbf16> to vector<64x64xbf16>
    %24 = arith.truncf %21 : vector<32x64xf32> to vector<32x64xbf16>
    %cst_22 = arith.constant dense<0.000000e+00> : vector<32x64xf32>
    %25 = tpu.matmul %24, %23, %cst_22 {dimension_numbers = #tpu.dot_dimension_numbers<[1], [0], [0], [1], [0, 0, 1, 1], [], []>} : vector<32x64xbf16>, vector<64x64xbf16>, vector<32x64xf32> -> vector<32x64xf32>
    %26 = arith.addf %19, %25 : vector<32x64xf32>
    %c4 = arith.constant 4 : index
    %c0_23 = arith.constant 0 : index
    %c0_24 = arith.constant 0 : index
    %27 = vector.load %arg0[%c4, %c0_23, %c0_24] : memref<9x32x64xf32, #tpu.memory_space<vmem>>, vector<1x32x64xf32>
    %28 = vector.shape_cast %27 : vector<1x32x64xf32> to vector<32x64xf32>
    %c4_25 = arith.constant 4 : index
    %c0_26 = arith.constant 0 : index
    %c0_27 = arith.constant 0 : index
    %29 = vector.load %arg1[%c4_25, %c0_26, %c0_27] : memref<9x64x64xbf16, #tpu.memory_space<vmem>>, vector<1x64x64xbf16>
    %30 = vector.shape_cast %29 : vector<1x64x64xbf16> to vector<64x64xbf16>
    %31 = arith.truncf %28 : vector<32x64xf32> to vector<32x64xbf16>
    %cst_28 = arith.constant dense<0.000000e+00> : vector<32x64xf32>
    %32 = tpu.matmul %31, %30, %cst_28 {dimension_numbers = #tpu.dot_dimension_numbers<[1], [0], [0], [1], [0, 0, 1, 1], [], []>} : vector<32x64xbf16>, vector<64x64xbf16>, vector<32x64xf32> -> vector<32x64xf32>
    %33 = arith.addf %26, %32 : vector<32x64xf32>
    %c5 = arith.constant 5 : index
    %c0_29 = arith.constant 0 : index
    %c0_30 = arith.constant 0 : index
    %34 = vector.load %arg0[%c5, %c0_29, %c0_30] : memref<9x32x64xf32, #tpu.memory_space<vmem>>, vector<1x32x64xf32>
    %35 = vector.shape_cast %34 : vector<1x32x64xf32> to vector<32x64xf32>
    %c5_31 = arith.constant 5 : index
    %c0_32 = arith.constant 0 : index
    %c0_33 = arith.constant 0 : index
    %36 = vector.load %arg1[%c5_31, %c0_32, %c0_33] : memref<9x64x64xbf16, #tpu.memory_space<vmem>>, vector<1x64x64xbf16>
    %37 = vector.shape_cast %36 : vector<1x64x64xbf16> to vector<64x64xbf16>
    %38 = arith.truncf %35 : vector<32x64xf32> to vector<32x64xbf16>
    %cst_34 = arith.constant dense<0.000000e+00> : vector<32x64xf32>
    %39 = tpu.matmul %38, %37, %cst_34 {dimension_numbers = #tpu.dot_dimension_numbers<[1], [0], [0], [1], [0, 0, 1, 1], [], []>} : vector<32x64xbf16>, vector<64x64xbf16>, vector<32x64xf32> -> vector<32x64xf32>
    %40 = arith.addf %33, %39 : vector<32x64xf32>
    %c6 = arith.constant 6 : index
    %c0_35 = arith.constant 0 : index
    %c0_36 = arith.constant 0 : index
    %41 = vector.load %arg0[%c6, %c0_35, %c0_36] : memref<9x32x64xf32, #tpu.memory_space<vmem>>, vector<1x32x64xf32>
    %42 = vector.shape_cast %41 : vector<1x32x64xf32> to vector<32x64xf32>
    %c6_37 = arith.constant 6 : index
    %c0_38 = arith.constant 0 : index
    %c0_39 = arith.constant 0 : index
    %43 = vector.load %arg1[%c6_37, %c0_38, %c0_39] : memref<9x64x64xbf16, #tpu.memory_space<vmem>>, vector<1x64x64xbf16>
    %44 = vector.shape_cast %43 : vector<1x64x64xbf16> to vector<64x64xbf16>
    %45 = arith.truncf %42 : vector<32x64xf32> to vector<32x64xbf16>
    %cst_40 = arith.constant dense<0.000000e+00> : vector<32x64xf32>
    %46 = tpu.matmul %45, %44, %cst_40 {dimension_numbers = #tpu.dot_dimension_numbers<[1], [0], [0], [1], [0, 0, 1, 1], [], []>} : vector<32x64xbf16>, vector<64x64xbf16>, vector<32x64xf32> -> vector<32x64xf32>
    %47 = arith.addf %40, %46 : vector<32x64xf32>
    %c7 = arith.constant 7 : index
    %c0_41 = arith.constant 0 : index
    %c0_42 = arith.constant 0 : index
    %48 = vector.load %arg0[%c7, %c0_41, %c0_42] : memref<9x32x64xf32, #tpu.memory_space<vmem>>, vector<1x32x64xf32>
    %49 = vector.shape_cast %48 : vector<1x32x64xf32> to vector<32x64xf32>
    %c7_43 = arith.constant 7 : index
    %c0_44 = arith.constant 0 : index
    %c0_45 = arith.constant 0 : index
    %50 = vector.load %arg1[%c7_43, %c0_44, %c0_45] : memref<9x64x64xbf16, #tpu.memory_space<vmem>>, vector<1x64x64xbf16>
    %51 = vector.shape_cast %50 : vector<1x64x64xbf16> to vector<64x64xbf16>
    %52 = arith.truncf %49 : vector<32x64xf32> to vector<32x64xbf16>
    %cst_46 = arith.constant dense<0.000000e+00> : vector<32x64xf32>
    %53 = tpu.matmul %52, %51, %cst_46 {dimension_numbers = #tpu.dot_dimension_numbers<[1], [0], [0], [1], [0, 0, 1, 1], [], []>} : vector<32x64xbf16>, vector<64x64xbf16>, vector<32x64xf32> -> vector<32x64xf32>
    %54 = arith.addf %47, %53 : vector<32x64xf32>
    %c8 = arith.constant 8 : index
    %c0_47 = arith.constant 0 : index
    %c0_48 = arith.constant 0 : index
    %55 = vector.load %arg0[%c8, %c0_47, %c0_48] : memref<9x32x64xf32, #tpu.memory_space<vmem>>, vector<1x32x64xf32>
    %56 = vector.shape_cast %55 : vector<1x32x64xf32> to vector<32x64xf32>
    %c8_49 = arith.constant 8 : index
    %c0_50 = arith.constant 0 : index
    %c0_51 = arith.constant 0 : index
    %57 = vector.load %arg1[%c8_49, %c0_50, %c0_51] : memref<9x64x64xbf16, #tpu.memory_space<vmem>>, vector<1x64x64xbf16>
    %58 = vector.shape_cast %57 : vector<1x64x64xbf16> to vector<64x64xbf16>
    %59 = arith.truncf %56 : vector<32x64xf32> to vector<32x64xbf16>
    %cst_52 = arith.constant dense<0.000000e+00> : vector<32x64xf32>
    %60 = tpu.matmul %59, %58, %cst_52 {dimension_numbers = #tpu.dot_dimension_numbers<[1], [0], [0], [1], [0, 0, 1, 1], [], []>} : vector<32x64xbf16>, vector<64x64xbf16>, vector<32x64xf32> -> vector<32x64xf32>
    %61 = arith.addf %54, %60 : vector<32x64xf32>
    %c0_53 = arith.constant 0 : index
    %c0_54 = arith.constant 0 : index
    %62 = vector.load %arg2[%c0_53, %c0_54] : memref<1x64xf32, #tpu.memory_space<vmem>>, vector<1x64xf32>
    %63 = vector.broadcast %62 : vector<1x64xf32> to vector<32x64xf32>
    %64 = arith.addf %61, %63 : vector<32x64xf32>
    %cst_55 = arith.constant 0.000000e+00 : f32
    %65 = vector.broadcast %cst_55 : f32 to vector<32x64xf32>
    %66 = arith.maximumf %64, %65 : vector<32x64xf32>
    %c0_56 = arith.constant 0 : index
    %c0_57 = arith.constant 0 : index
    %67 = vector.load %arg3[%c0_56, %c0_57] : memref<32x64xf32, #tpu.memory_space<vmem>>, vector<32x64xf32>
    tpu.vector_store %arg3[%c0_56, %c0_57], %66 {strides = array<i32>} : memref<32x64xf32, #tpu.memory_space<vmem>>, vector<32x64xf32>,
    return
  }
}

module attributes {stable_mosaic.version = 11 : i64} {
  func.func @_cls_head_kernel(%arg0: memref<9x32x64xf32, #tpu.memory_space<vmem>>, %arg1: memref<9x64x32xbf16, #tpu.memory_space<vmem>>, %arg2: memref<1x32xf32, #tpu.memory_space<vmem>>, %arg3: memref<32x256xbf16, #tpu.memory_space<vmem>>, %arg4: memref<1x256xf32, #tpu.memory_space<vmem>>, %arg5: memref<32x256xf32, #tpu.memory_space<vmem>>) attributes {dimension_semantics = [], scalar_prefetch = 0 : i64, scratch_operands = 0 : i64, tpu.core_type = #tpu.core_type<tc>} {
    %c0 = arith.constant 0 : index
    %c0_0 = arith.constant 0 : index
    %c0_1 = arith.constant 0 : index
    %0 = vector.load %arg0[%c0, %c0_0, %c0_1] : memref<9x32x64xf32, #tpu.memory_space<vmem>>, vector<1x32x64xf32>
    %1 = vector.shape_cast %0 : vector<1x32x64xf32> to vector<32x64xf32>
    %c0_2 = arith.constant 0 : index
    %c0_3 = arith.constant 0 : index
    %c0_4 = arith.constant 0 : index
    %2 = vector.load %arg1[%c0_2, %c0_3, %c0_4] : memref<9x64x32xbf16, #tpu.memory_space<vmem>>, vector<1x64x32xbf16>
    %3 = vector.shape_cast %2 : vector<1x64x32xbf16> to vector<64x32xbf16>
    %4 = arith.truncf %1 : vector<32x64xf32> to vector<32x64xbf16>
    %cst = arith.constant dense<0.000000e+00> : vector<32x32xf32>
    %5 = tpu.matmul %4, %3, %cst {dimension_numbers = #tpu.dot_dimension_numbers<[1], [0], [0], [1], [0, 0, 1, 1], [], []>} : vector<32x64xbf16>, vector<64x32xbf16>, vector<32x32xf32> -> vector<32x32xf32>
    %c1 = arith.constant 1 : index
    %c0_5 = arith.constant 0 : index
    %c0_6 = arith.constant 0 : index
    %6 = vector.load %arg0[%c1, %c0_5, %c0_6] : memref<9x32x64xf32, #tpu.memory_space<vmem>>, vector<1x32x64xf32>
    %7 = vector.shape_cast %6 : vector<1x32x64xf32> to vector<32x64xf32>
    %c1_7 = arith.constant 1 : index
    %c0_8 = arith.constant 0 : index
    %c0_9 = arith.constant 0 : index
    %8 = vector.load %arg1[%c1_7, %c0_8, %c0_9] : memref<9x64x32xbf16, #tpu.memory_space<vmem>>, vector<1x64x32xbf16>
    %9 = vector.shape_cast %8 : vector<1x64x32xbf16> to vector<64x32xbf16>
    %10 = arith.truncf %7 : vector<32x64xf32> to vector<32x64xbf16>
    %cst_10 = arith.constant dense<0.000000e+00> : vector<32x32xf32>
    %11 = tpu.matmul %10, %9, %cst_10 {dimension_numbers = #tpu.dot_dimension_numbers<[1], [0], [0], [1], [0, 0, 1, 1], [], []>} : vector<32x64xbf16>, vector<64x32xbf16>, vector<32x32xf32> -> vector<32x32xf32>
    %12 = arith.addf %5, %11 : vector<32x32xf32>
    %c2 = arith.constant 2 : index
    %c0_11 = arith.constant 0 : index
    %c0_12 = arith.constant 0 : index
    %13 = vector.load %arg0[%c2, %c0_11, %c0_12] : memref<9x32x64xf32, #tpu.memory_space<vmem>>, vector<1x32x64xf32>
    %14 = vector.shape_cast %13 : vector<1x32x64xf32> to vector<32x64xf32>
    %c2_13 = arith.constant 2 : index
    %c0_14 = arith.constant 0 : index
    %c0_15 = arith.constant 0 : index
    %15 = vector.load %arg1[%c2_13, %c0_14, %c0_15] : memref<9x64x32xbf16, #tpu.memory_space<vmem>>, vector<1x64x32xbf16>
    %16 = vector.shape_cast %15 : vector<1x64x32xbf16> to vector<64x32xbf16>
    %17 = arith.truncf %14 : vector<32x64xf32> to vector<32x64xbf16>
    %cst_16 = arith.constant dense<0.000000e+00> : vector<32x32xf32>
    %18 = tpu.matmul %17, %16, %cst_16 {dimension_numbers = #tpu.dot_dimension_numbers<[1], [0], [0], [1], [0, 0, 1, 1], [], []>} : vector<32x64xbf16>, vector<64x32xbf16>, vector<32x32xf32> -> vector<32x32xf32>
    %19 = arith.addf %12, %18 : vector<32x32xf32>
    %c3 = arith.constant 3 : index
    %c0_17 = arith.constant 0 : index
    %c0_18 = arith.constant 0 : index
    %20 = vector.load %arg0[%c3, %c0_17, %c0_18] : memref<9x32x64xf32, #tpu.memory_space<vmem>>, vector<1x32x64xf32>
    %21 = vector.shape_cast %20 : vector<1x32x64xf32> to vector<32x64xf32>
    %c3_19 = arith.constant 3 : index
    %c0_20 = arith.constant 0 : index
    %c0_21 = arith.constant 0 : index
    %22 = vector.load %arg1[%c3_19, %c0_20, %c0_21] : memref<9x64x32xbf16, #tpu.memory_space<vmem>>, vector<1x64x32xbf16>
    %23 = vector.shape_cast %22 : vector<1x64x32xbf16> to vector<64x32xbf16>
    %24 = arith.truncf %21 : vector<32x64xf32> to vector<32x64xbf16>
    %cst_22 = arith.constant dense<0.000000e+00> : vector<32x32xf32>
    %25 = tpu.matmul %24, %23, %cst_22 {dimension_numbers = #tpu.dot_dimension_numbers<[1], [0], [0], [1], [0, 0, 1, 1], [], []>} : vector<32x64xbf16>, vector<64x32xbf16>, vector<32x32xf32> -> vector<32x32xf32>
    %26 = arith.addf %19, %25 : vector<32x32xf32>
    %c4 = arith.constant 4 : index
    %c0_23 = arith.constant 0 : index
    %c0_24 = arith.constant 0 : index
    %27 = vector.load %arg0[%c4, %c0_23, %c0_24] : memref<9x32x64xf32, #tpu.memory_space<vmem>>, vector<1x32x64xf32>
    %28 = vector.shape_cast %27 : vector<1x32x64xf32> to vector<32x64xf32>
    %c4_25 = arith.constant 4 : index
    %c0_26 = arith.constant 0 : index
    %c0_27 = arith.constant 0 : index
    %29 = vector.load %arg1[%c4_25, %c0_26, %c0_27] : memref<9x64x32xbf16, #tpu.memory_space<vmem>>, vector<1x64x32xbf16>
    %30 = vector.shape_cast %29 : vector<1x64x32xbf16> to vector<64x32xbf16>
    %31 = arith.truncf %28 : vector<32x64xf32> to vector<32x64xbf16>
    %cst_28 = arith.constant dense<0.000000e+00> : vector<32x32xf32>
    %32 = tpu.matmul %31, %30, %cst_28 {dimension_numbers = #tpu.dot_dimension_numbers<[1], [0], [0], [1], [0, 0, 1, 1], [], []>} : vector<32x64xbf16>, vector<64x32xbf16>, vector<32x32xf32> -> vector<32x32xf32>
    %33 = arith.addf %26, %32 : vector<32x32xf32>
    %c5 = arith.constant 5 : index
    %c0_29 = arith.constant 0 : index
    %c0_30 = arith.constant 0 : index
    %34 = vector.load %arg0[%c5, %c0_29, %c0_30] : memref<9x32x64xf32, #tpu.memory_space<vmem>>, vector<1x32x64xf32>
    %35 = vector.shape_cast %34 : vector<1x32x64xf32> to vector<32x64xf32>
    %c5_31 = arith.constant 5 : index
    %c0_32 = arith.constant 0 : index
    %c0_33 = arith.constant 0 : index
    %36 = vector.load %arg1[%c5_31, %c0_32, %c0_33] : memref<9x64x32xbf16, #tpu.memory_space<vmem>>, vector<1x64x32xbf16>
    %37 = vector.shape_cast %36 : vector<1x64x32xbf16> to vector<64x32xbf16>
    %38 = arith.truncf %35 : vector<32x64xf32> to vector<32x64xbf16>
    %cst_34 = arith.constant dense<0.000000e+00> : vector<32x32xf32>
    %39 = tpu.matmul %38, %37, %cst_34 {dimension_numbers = #tpu.dot_dimension_numbers<[1], [0], [0], [1], [0, 0, 1, 1], [], []>} : vector<32x64xbf16>, vector<64x32xbf16>, vector<32x32xf32> -> vector<32x32xf32>
    %40 = arith.addf %33, %39 : vector<32x32xf32>
    %c6 = arith.constant 6 : index
    %c0_35 = arith.constant 0 : index
    %c0_36 = arith.constant 0 : index
    %41 = vector.load %arg0[%c6, %c0_35, %c0_36] : memref<9x32x64xf32, #tpu.memory_space<vmem>>, vector<1x32x64xf32>
    %42 = vector.shape_cast %41 : vector<1x32x64xf32> to vector<32x64xf32>
    %c6_37 = arith.constant 6 : index
    %c0_38 = arith.constant 0 : index
    %c0_39 = arith.constant 0 : index
    %43 = vector.load %arg1[%c6_37, %c0_38, %c0_39] : memref<9x64x32xbf16, #tpu.memory_space<vmem>>, vector<1x64x32xbf16>
    %44 = vector.shape_cast %43 : vector<1x64x32xbf16> to vector<64x32xbf16>
    %45 = arith.truncf %42 : vector<32x64xf32> to vector<32x64xbf16>
    %cst_40 = arith.constant dense<0.000000e+00> : vector<32x32xf32>
    %46 = tpu.matmul %45, %44, %cst_40 {dimension_numbers = #tpu.dot_dimension_numbers<[1], [0], [0], [1], [0, 0, 1, 1], [], []>} : vector<32x64xbf16>, vector<64x32xbf16>, vector<32x32xf32> -> vector<32x32xf32>
    %47 = arith.addf %40, %46 : vector<32x32xf32>
    %c7 = arith.constant 7 : index
    %c0_41 = arith.constant 0 : index
    %c0_42 = arith.constant 0 : index
    %48 = vector.load %arg0[%c7, %c0_41, %c0_42] : memref<9x32x64xf32, #tpu.memory_space<vmem>>, vector<1x32x64xf32>
    %49 = vector.shape_cast %48 : vector<1x32x64xf32> to vector<32x64xf32>
    %c7_43 = arith.constant 7 : index
    %c0_44 = arith.constant 0 : index
    %c0_45 = arith.constant 0 : index
    %50 = vector.load %arg1[%c7_43, %c0_44, %c0_45] : memref<9x64x32xbf16, #tpu.memory_space<vmem>>, vector<1x64x32xbf16>
    %51 = vector.shape_cast %50 : vector<1x64x32xbf16> to vector<64x32xbf16>
    %52 = arith.truncf %49 : vector<32x64xf32> to vector<32x64xbf16>
    %cst_46 = arith.constant dense<0.000000e+00> : vector<32x32xf32>
    %53 = tpu.matmul %52, %51, %cst_46 {dimension_numbers = #tpu.dot_dimension_numbers<[1], [0], [0], [1], [0, 0, 1, 1], [], []>} : vector<32x64xbf16>, vector<64x32xbf16>, vector<32x32xf32> -> vector<32x32xf32>
    %54 = arith.addf %47, %53 : vector<32x32xf32>
    %c8 = arith.constant 8 : index
    %c0_47 = arith.constant 0 : index
    %c0_48 = arith.constant 0 : index
    %55 = vector.load %arg0[%c8, %c0_47, %c0_48] : memref<9x32x64xf32, #tpu.memory_space<vmem>>, vector<1x32x64xf32>
    %56 = vector.shape_cast %55 : vector<1x32x64xf32> to vector<32x64xf32>
    %c8_49 = arith.constant 8 : index
    %c0_50 = arith.constant 0 : index
    %c0_51 = arith.constant 0 : index
    %57 = vector.load %arg1[%c8_49, %c0_50, %c0_51] : memref<9x64x32xbf16, #tpu.memory_space<vmem>>, vector<1x64x32xbf16>
    %58 = vector.shape_cast %57 : vector<1x64x32xbf16> to vector<64x32xbf16>
    %59 = arith.truncf %56 : vector<32x64xf32> to vector<32x64xbf16>
    %cst_52 = arith.constant dense<0.000000e+00> : vector<32x32xf32>
    %60 = tpu.matmul %59, %58, %cst_52 {dimension_numbers = #tpu.dot_dimension_numbers<[1], [0], [0], [1], [0, 0, 1, 1], [], []>} : vector<32x64xbf16>, vector<64x32xbf16>, vector<32x32xf32> -> vector<32x32xf32>
    %61 = arith.addf %54, %60 : vector<32x32xf32>
    %c0_53 = arith.constant 0 : index
    %c0_54 = arith.constant 0 : index
    %62 = vector.load %arg2[%c0_53, %c0_54] : memref<1x32xf32, #tpu.memory_space<vmem>>, vector<1x32xf32>
    %63 = vector.broadcast %62 : vector<1x32xf32> to vector<32x32xf32>
    %64 = arith.addf %61, %63 : vector<32x32xf32>
    %cst_55 = arith.constant 0.000000e+00 : f32
    %65 = vector.broadcast %cst_55 : f32 to vector<32x32xf32>
    %66 = arith.maximumf %64, %65 : vector<32x32xf32>
    %c0_56 = arith.constant 0 : index
    %c0_57 = arith.constant 0 : index
    %67 = vector.load %arg3[%c0_56, %c0_57] : memref<32x256xbf16, #tpu.memory_space<vmem>>, vector<32x256xbf16>
    %68 = arith.truncf %66 : vector<32x32xf32> to vector<32x32xbf16>
    %cst_58 = arith.constant dense<0.000000e+00> : vector<32x256xf32>
    %69 = tpu.matmul %68, %67, %cst_58 {dimension_numbers = #tpu.dot_dimension_numbers<[1], [0], [0], [1], [0, 0, 1, 1], [], []>} : vector<32x32xbf16>, vector<32x256xbf16>, vector<32x256xf32> -> vector<32x256xf32>
    %c0_59 = arith.constant 0 : index
    %c0_60 = arith.constant 0 : index
    %70 = vector.load %arg4[%c0_59, %c0_60] : memref<1x256xf32, #tpu.memory_space<vmem>>, vector<1x256xf32>
    %71 = vector.broadcast %70 : vector<1x256xf32> to vector<32x256xf32>
    %72 = arith.addf %69, %71 : vector<32x256xf32>
    %cst_61 = arith.constant dense<0xFF800000> : vector<32xf32>
    %73 = vector.multi_reduction <maximumf>, %72, %cst_61 [1] : vector<32x256xf32> to vector<32xf32>
    %74 = vector.shape_cast %73 : vector<32xf32> to vector<32x1xf32>
    %75 = vector.broadcast %74 : vector<32x1xf32> to vector<32x256xf32>
    %76 = arith.subf %72, %75 : vector<32x256xf32>
    %77 = math.exp %76 : vector<32x256xf32>
    %cst_62 = arith.constant dense<0.000000e+00> : vector<32xf32>
    %78 = vector.multi_reduction <add>, %77, %cst_62 [1] : vector<32x256xf32> to vector<32xf32>
    %79 = vector.shape_cast %78 : vector<32xf32> to vector<32x1xf32>
    %80 = tpu.reciprocal %79 : vector<32x1xf32> -> vector<32x1xf32>
    %81 = vector.broadcast %80 : vector<32x1xf32> to vector<32x256xf32>
    %82 = arith.mulf %77, %81 : vector<32x256xf32>
    %c0_63 = arith.constant 0 : index
    %c0_64 = arith.constant 0 : index
    %83 = vector.load %arg5[%c0_63, %c0_64] : memref<32x256xf32, #tpu.memory_space<vmem>>, vector<32x256xf32>
    tpu.vector_store %arg5[%c0_63, %c0_64], %82 {strides = array<i32>} : memref<32x256xf32, #tpu.memory_space<vmem>>, vector<32x256xf32>,
    return
  }
}

</mosaic_0001>

<bundles_post_ra>
// kernel: _lambda_.10
= control target key start
LH: loop header
LB: loop body
LE: loop exit
PB: predicated region body
PF: predicated region fallthrough
CT: control target
= control target key end

     0   :  { %vm127_vm0 = vcmask 523264   ;;  %s352_s1 = inlined_call_operand.vmem [shape: bf16[192,64], index: 1, kind: input, shape index: {}]   ;;  %s353_s0 = inlined_call_operand.vmem [shape: f32[32,192], index: 0, kind: input, shape index: {}]   ;;  %s354_s2 = inlined_call_operand.vmem [shape: f32[1,64], index: 2, kind: input, shape index: {}]   ;;  %s355_s3 = inlined_call_operand.vmem [shape: f32[32,64], index: 3, kind: output, shape index: {}]  }
   0x1   :  { %v237_v0 = vld [vmem:[%s352_s1 + $0x38] sm:$0xff]  ;;  %v236_v2 = vld [vmem:[%s352_s1 + $0x30] sm:$0xff]  ;;  %v235_v4 = vld [vmem:[%s352_s1 + $0x28] sm:$0xff] }
   0x2   :  { %v241_v1 = vld [vmem:[%s352_s1 + $0x58] sm:$0xff]  ;;  %134 = vmatpush.bf16.msra.mxu0 %v237_v0  ;;  %242 = vmatpush.bf16.msra.mxu2 %v237_v0  ;;  %v240_v3 = vld [vmem:[%s352_s1 + $0x50] sm:$0xff]  ;;  %v239_v5 = vld [vmem:[%s352_s1 + $0x48] sm:$0xff] }
   0x3   :  { %157 = vmatpush.bf16.msra.mxu1 %v241_v1  ;;  %v234_v6 = vld [vmem:[%s352_s1 + $0x20] sm:$0xff]  ;;  %v16_v8 = vld [vmem:[%s353_s0 + $0x8] sm:$0xff]  ;;  %v18_v9 = vld [vmem:[%s353_s0 + $0x18] sm:$0xff] }
   0x4   :  { %v238_v7 = vld [vmem:[%s352_s1 + $0x40] sm:$0xff]  ;;  %v48_v10 = vpack.c.bf16 %v18_v9, %v16_v8  ;;  %v233_v11 = vld [vmem:[%s352_s1 + $0x18] sm:$0xff]  ;;  %v232_v12 = vld [vmem:[%s352_s1 + $0x10] sm:$0xff] }
   0x5   :  { %v231_v13 = vld [vmem:[%s352_s1 + $0x8] sm:$0xff]  ;;  %v230_v14 = vld [vmem:[%s352_s1] sm:$0xff]  ;;  %v17_v16 = vld [vmem:[%s353_s0 + $0x10] sm:$0xff] }
   0x6   :  { %135 = vmatpush.bf16.msra.mxu0 %v236_v2  ;;  %243 = vmatpush.bf16.msra.mxu2 %v236_v2  ;;  %v15_v15 = vld [vmem:[%s353_s0] sm:$0xff]  ;;  %v21_v18 = vld [vmem:[%s353_s0 + $0x30] sm:$0xff]  ;;  %v20_v19 = vld [vmem:[%s353_s0 + $0x28] sm:$0xff] }
   0x7   :  { %158 = vmatpush.bf16.msra.mxu1 %v240_v3  ;;  %v19_v17 = vld [vmem:[%s353_s0 + $0x20] sm:$0xff]  ;;  %v22_v20 = vld [vmem:[%s353_s0 + $0x38] sm:$0xff]  ;;  %v47_v21 = vpack.c.bf16 %v17_v16, %v15_v15 }
   0x8   :  { %v49_v22 = vpack.c.bf16 %v21_v18, %v19_v17  ;;  %v50_v23 = vpack.c.bf16 %v22_v20, %v20_v19  ;;  %v250_v26 = vld [vmem:[%s354_s2] ss:$0 sm:$0xff] }
   0xa   :  { %136 = vmatpush.bf16.msra.mxu0 %v235_v4  ;;  %244 = vmatpush.bf16.msra.mxu2 %v235_v4 }
   0xb   :  { %159 = vmatpush.bf16.msra.mxu1 %v239_v5 }
   0xe   :  { %137 = vmatpush.bf16.msra.mxu0 %v234_v6  ;;  %245 = vmatpush.bf16.msra.mxu2 %v234_v6 }
   0xf   :  { %160 = vmatpush.bf16.msra.mxu1 %v238_v7 }
  0x12   :  { %228 = vmatmul.msk.bf16.vlgmr.msra.gmra.mxu1 %vm127_vm0, %v48_v10  ;;  %138 = vmatpush.bf16.msra.mxu0 %v233_v11 }
  0x13   :  { %246 = vmatpush.bf16.msra.mxu2 %v233_v11 }
  0x16   :  { %139 = vmatpush.bf16.msra.mxu0 %v232_v12 }
  0x17   :  { %247 = vmatpush.bf16.msra.mxu2 %v232_v12 }
  0x1a   :  { %140 = vmatpush.bf16.msra.mxu0 %v231_v13 }
  0x1b   :  { %248 = vmatpush.bf16.msra.mxu2 %v231_v13 }
  0x1e   :  { %141 = vmatpush.bf16.msra.mxu0 %v230_v14 }
  0x1f   :  { %249 = vmatpush.bf16.msra.mxu2 %v230_v14 }
  0x21   :  { %142 = vmatmul.bf16.vlgmr.msra.gmra.mxu0 %v47_v21 }
  0x22   :  { %147 = vmatmul.bf16.vlgmr.msra.gmra.mxu2 %v49_v22  ;;  %229 = vmatmul.msk.bf16.gmra.mxu1 %vm127_vm0, %v50_v23 }
  0x8f   :  { %v162_v24 = vpop.f32.mrf.mxu1 }
  0x97   :  { %v164_v25 = vpop.f32.mrf.mxu1 }
  0x9e   :  { %v143_v27 = vpop.f32.mrf.mxu0 }
  0x9f   :  { %v144_v28 = vadd.f32 %v250_v26, %v143_v27  ;;  %v167_v30 = vpop.f32.mrf.mxu1 }
  0xa1   :  { %v163_v29 = vadd.f32 %v162_v24, %v144_v28 }
  0xa3   :  { %172 = vst.msk [vmem:[%s355_s3] sm:$0xff] %vm127_vm0, %v163_v29 }
  0xa5   :  { %v148_v31 = vpop.f32.mrf.mxu2 }
  0xa6   :  { %v149_v32 = vadd.f32 %v250_v26, %v148_v31  ;;  %v145_v33 = vpop.f32.mrf.mxu0 }
  0xa7   :  { %v146_v34 = vadd.f32 %v250_v26, %v145_v33  ;;  %v169_v39 = vpop.f32.mrf.mxu1 }
  0xa8   :  { %v168_v35 = vadd.f32 %v167_v30, %v149_v32 }
  0xa9   :  { %v165_v36 = vadd.f32 %v164_v25, %v146_v34 }
  0xaa   :  { %174 = vst.msk [vmem:[%s355_s3 + $0x10] sm:$0xff] %vm127_vm0, %v168_v35 }
  0xab   :  { %173 = vst.msk [vmem:[%s355_s3 + $0x8] sm:$0xff] %vm127_vm0, %v165_v36 }
  0xad   :  { %v150_v37 = vpop.f32.mrf.mxu2 }
  0xae   :  { %v151_v38 = vadd.f32 %v250_v26, %v150_v37 }
  0xb0   :  { %v170_v40 = vadd.f32 %v169_v39, %v151_v38 }
  0xb2   :  { %175 = vst.msk [vmem:[%s355_s3 + $0x18] sm:$0xff] %vm127_vm0, %v170_v40 }

// kernel: _lambda_.15
= control target key start
LH: loop header
LB: loop body
LE: loop exit
PB: predicated region body
PF: predicated region fallthrough
CT: control target
= control target key end

     0   :  { %vm57_vm0 = vcmask 523264   ;;  %s659_s1 = inlined_call_operand.vmem [shape: bf16[4,64,64], index: 1, kind: input, shape index: {}]   ;;  %s660_s0 = inlined_call_operand.vmem [shape: f32[4,32,64], index: 0, kind: input, shape index: {}]   ;;  %s661_s2 = inlined_call_operand.vmem [shape: f32[4,1,64], index: 2, kind: input, shape index: {}]   ;;  %s662_s3 = inlined_call_operand.vmem [shape: f32[4,32,64], index: 3, kind: output, shape index: {}]  }
   0x1   :  { %v442_v0 = vld [vmem:[%s659_s1 + $0x18] sm:$0xff]  ;;  %v441_v4 = vld [vmem:[%s659_s1 + $0x10] sm:$0xff]  ;;  %v440_v8 = vld [vmem:[%s659_s1 + $0x8] sm:$0xff] }
   0x2   :  { %v446_v1 = vld [vmem:[%s659_s1 + $0x38] sm:$0xff]  ;;  %68 = vmatpush.bf16.msra.mxu0 %v442_v0  ;;  %v445_v5 = vld [vmem:[%s659_s1 + $0x30] sm:$0xff]  ;;  %v444_v9 = vld [vmem:[%s659_s1 + $0x28] sm:$0xff] }
   0x3   :  { %v450_v2 = vld [vmem:[%s659_s1 + $0x58] sm:$0xff]  ;;  %142 = vmatpush.bf16.msra.mxu1 %v446_v1  ;;  %v449_v6 = vld [vmem:[%s659_s1 + $0x50] sm:$0xff]  ;;  %v448_v10 = vld [vmem:[%s659_s1 + $0x48] sm:$0xff] }
   0x4   :  { %v454_v3 = vld [vmem:[%s659_s1 + $0x78] sm:$0xff]  ;;  %217 = vmatpush.bf16.msra.mxu2 %v450_v2  ;;  %v453_v7 = vld [vmem:[%s659_s1 + $0x70] sm:$0xff]  ;;  %v452_v11 = vld [vmem:[%s659_s1 + $0x68] sm:$0xff] }
   0x5   :  { %292 = vmatpush.bf16.msra.mxu3 %v454_v3  ;;  %v439_v12 = vld [vmem:[%s659_s1] sm:$0xff]  ;;  %v16_v15 = vld [vmem:[%s660_s0 + $0x8] sm:$0xff]  ;;  %v17_v28 = vld [vmem:[%s660_s0 + $0x10] sm:$0xff] }
   0x6   :  { %69 = vmatpush.bf16.msra.mxu0 %v441_v4  ;;  %v443_v13 = vld [vmem:[%s659_s1 + $0x20] sm:$0xff]  ;;  %v335_v19 = vld [vmem:[%s660_s0 + $0x28] sm:$0xff]  ;;  %v18_v29 = vld [vmem:[%s660_s0 + $0x18] sm:$0xff] }
   0x7   :  { %143 = vmatpush.bf16.msra.mxu1 %v445_v5  ;;  %v15_v14 = vld [vmem:[%s660_s0] sm:$0xff]  ;;  %v370_v21 = vld [vmem:[%s660_s0 + $0x48] sm:$0xff]  ;;  %v336_v30 = vld [vmem:[%s660_s0 + $0x30] sm:$0xff]  ;;  %v28_v36 = vpack.c.bf16 %v18_v29, %v17_v28 }
   0x8   :  { %218 = vmatpush.bf16.msra.mxu2 %v449_v6  ;;  %v447_v16 = vld [vmem:[%s659_s1 + $0x40] sm:$0xff]  ;;  %v405_v23 = vld [vmem:[%s660_s0 + $0x68] sm:$0xff]  ;;  %v27_v24 = vpack.c.bf16 %v16_v15, %v15_v14  ;;  %v337_v31 = vld [vmem:[%s660_s0 + $0x38] sm:$0xff] }
   0x9   :  { %293 = vmatpush.bf16.msra.mxu3 %v453_v7  ;;  %v451_v17 = vld [vmem:[%s659_s1 + $0x60] sm:$0xff]  ;;  %v371_v32 = vld [vmem:[%s660_s0 + $0x50] sm:$0xff]  ;;  %v372_v33 = vld [vmem:[%s660_s0 + $0x58] sm:$0xff]  ;;  %v102_v37 = vpack.c.bf16 %v337_v31, %v336_v30 }
   0xa   :  { %v334_v18 = vld [vmem:[%s660_s0 + $0x20] sm:$0xff]  ;;  %70 = vmatpush.bf16.msra.mxu0 %v440_v8  ;;  %v406_v34 = vld [vmem:[%s660_s0 + $0x70] sm:$0xff]  ;;  %v407_v35 = vld [vmem:[%s660_s0 + $0x78] sm:$0xff]  ;;  %v177_v38 = vpack.c.bf16 %v372_v33, %v371_v32 }
   0xb   :  { %v369_v20 = vld [vmem:[%s660_s0 + $0x40] sm:$0xff]  ;;  %144 = vmatpush.bf16.msra.mxu1 %v444_v9  ;;  %v101_v25 = vpack.c.bf16 %v335_v19, %v334_v18  ;;  %v252_v39 = vpack.c.bf16 %v407_v35, %v406_v34 }
   0xc   :  { %v404_v22 = vld [vmem:[%s660_s0 + $0x60] sm:$0xff]  ;;  %219 = vmatpush.bf16.msra.mxu2 %v448_v10  ;;  %v176_v26 = vpack.c.bf16 %v370_v21, %v369_v20 }
   0xd   :  { %294 = vmatpush.bf16.msra.mxu3 %v452_v11  ;;  %v251_v27 = vpack.c.bf16 %v405_v23, %v404_v22  ;;  %v455_v40 = vld [vmem:[%s661_s2] ss:$0 sm:$0xff]  ;;  %v456_v41 = vld [vmem:[%s661_s2 + $0x1] ss:$0 sm:$0xff]  ;;  %v457_v46 = vld [vmem:[%s661_s2 + $0x2] ss:$0 sm:$0xff] }
   0xe   :  { %71 = vmatpush.bf16.msra.mxu0 %v439_v12  ;;  %v458_v47 = vld [vmem:[%s661_s2 + $0x3] ss:$0 sm:$0xff] }
   0xf   :  { %145 = vmatpush.bf16.msra.mxu1 %v443_v13 }
  0x10   :  { %220 = vmatpush.bf16.msra.mxu2 %v447_v16 }
  0x11   :  { %295 = vmatpush.bf16.msra.mxu3 %v451_v17  ;;  %332 = vmatmul.msk.bf16.vlgmr.msra.gmra.mxu0 %vm57_vm0, %v27_v24 }
  0x12   :  { %363 = vmatmul.msk.bf16.vlgmr.msra.gmra.mxu1 %vm57_vm0, %v101_v25 }
  0x13   :  { %398 = vmatmul.msk.bf16.vlgmr.msra.gmra.mxu2 %vm57_vm0, %v176_v26 }
  0x14   :  { %433 = vmatmul.msk.bf16.vlgmr.msra.gmra.mxu3 %vm57_vm0, %v251_v27 }
  0x21   :  { %333 = vmatmul.msk.bf16.gmra.mxu0 %vm57_vm0, %v28_v36 }
  0x22   :  { %364 = vmatmul.msk.bf16.gmra.mxu1 %vm57_vm0, %v102_v37 }
  0x23   :  { %399 = vmatmul.msk.bf16.gmra.mxu2 %vm57_vm0, %v177_v38 }
  0x24   :  { %434 = vmatmul.msk.bf16.gmra.mxu3 %vm57_vm0, %v252_v39 }
  0x8e   :  { %v73_v42 = vpop.f32.mrf.mxu0 }
  0x8f   :  { %v147_v43 = vpop.f32.mrf.mxu1  ;;  %v74_v44 = vadd.f32 %v455_v40, %v73_v42 }
  0x90   :  { %v148_v45 = vadd.f32 %v456_v41, %v147_v43 }
  0x91   :  { %83 = vst.msk [vmem:[%s662_s3] sm:$0xff] %vm57_vm0, %v74_v44 }
  0x92   :  { %365 = vst.msk [vmem:[%s662_s3 + $0x20] sm:$0xff] %vm57_vm0, %v148_v45 }
  0x96   :  { %v222_v48 = vpop.f32.mrf.mxu2  ;;  %v75_v52 = vpop.f32.mrf.mxu0 }
  0x97   :  { %v297_v49 = vpop.f32.mrf.mxu3  ;;  %v223_v50 = vadd.f32 %v457_v46, %v222_v48  ;;  %v149_v53 = vpop.f32.mrf.mxu1  ;;  %v76_v54 = vadd.f32 %v455_v40, %v75_v52 }
  0x98   :  { %v298_v51 = vadd.f32 %v458_v47, %v297_v49  ;;  %v150_v55 = vadd.f32 %v456_v41, %v149_v53 }
  0x99   :  { %400 = vst.msk [vmem:[%s662_s3 + $0x40] sm:$0xff] %vm57_vm0, %v223_v50 }
  0x9a   :  { %435 = vst.msk [vmem:[%s662_s3 + $0x60] sm:$0xff] %vm57_vm0, %v298_v51 }
  0x9b   :  { %84 = vst.msk [vmem:[%s662_s3 + $0x8] sm:$0xff] %vm57_vm0, %v76_v54 }
  0x9c   :  { %366 = vst.msk [vmem:[%s662_s3 + $0x28] sm:$0xff] %vm57_vm0, %v150_v55 }
  0x9e   :  { %v224_v56 = vpop.f32.mrf.mxu2  ;;  %v78_v60 = vpop.f32.mrf.mxu0 }
  0x9f   :  { %v299_v57 = vpop.f32.mrf.mxu3  ;;  %v225_v58 = vadd.f32 %v457_v46, %v224_v56  ;;  %v152_v61 = vpop.f32.mrf.mxu1  ;;  %v79_v62 = vadd.f32 %v455_v40, %v78_v60 }
  0xa0   :  { %v300_v59 = vadd.f32 %v458_v47, %v299_v57  ;;  %v153_v63 = vadd.f32 %v456_v41, %v152_v61 }
  0xa1   :  { %401 = vst.msk [vmem:[%s662_s3 + $0x48] sm:$0xff] %vm57_vm0, %v225_v58 }
  0xa2   :  { %436 = vst.msk [vmem:[%s662_s3 + $0x68] sm:$0xff] %vm57_vm0, %v300_v59 }
  0xa3   :  { %85 = vst.msk [vmem:[%s662_s3 + $0x10] sm:$0xff] %vm57_vm0, %v79_v62 }
  0xa4   :  { %367 = vst.msk [vmem:[%s662_s3 + $0x30] sm:$0xff] %vm57_vm0, %v153_v63 }
  0xa6   :  { %v227_v0 = vpop.f32.mrf.mxu2  ;;  %v80_v4 = vpop.f32.mrf.mxu0 }
  0xa7   :  { %v302_v1 = vpop.f32.mrf.mxu3  ;;  %v228_v2 = vadd.f32 %v457_v46, %v227_v0  ;;  %v154_v5 = vpop.f32.mrf.mxu1  ;;  %v81_v6 = vadd.f32 %v455_v40, %v80_v4 }
  0xa8   :  { %v303_v3 = vadd.f32 %v458_v47, %v302_v1  ;;  %v155_v7 = vadd.f32 %v456_v41, %v154_v5 }
  0xa9   :  { %402 = vst.msk [vmem:[%s662_s3 + $0x50] sm:$0xff] %vm57_vm0, %v228_v2 }
  0xaa   :  { %437 = vst.msk [vmem:[%s662_s3 + $0x70] sm:$0xff] %vm57_vm0, %v303_v3 }
  0xab   :  { %86 = vst.msk [vmem:[%s662_s3 + $0x18] sm:$0xff] %vm57_vm0, %v81_v6 }
  0xac   :  { %368 = vst.msk [vmem:[%s662_s3 + $0x38] sm:$0xff] %vm57_vm0, %v155_v7 }
  0xae   :  { %v229_v8 = vpop.f32.mrf.mxu2 }
  0xaf   :  { %v304_v9 = vpop.f32.mrf.mxu3  ;;  %v230_v10 = vadd.f32 %v457_v46, %v229_v8 }
  0xb0   :  { %v305_v11 = vadd.f32 %v458_v47, %v304_v9 }
  0xb1   :  { %403 = vst.msk [vmem:[%s662_s3 + $0x58] sm:$0xff] %vm57_vm0, %v230_v10 }
  0xb2   :  { %438 = vst.msk [vmem:[%s662_s3 + $0x78] sm:$0xff] %vm57_vm0, %v305_v11 }

// kernel: _lambda_.11
= control target key start
LH: loop header
LB: loop body
LE: loop exit
PB: predicated region body
PF: predicated region fallthrough
CT: control target
= control target key end

     0   :  { %s2099_s25 = smov 0   ;;  %s2537_s0 = inlined_call_operand.vmem [shape: f32[2,17,64], index: 0, kind: input, shape index: {}]   ;;  %s2538_s1 = inlined_call_operand.vmem [shape: f32[1,64], index: 1, kind: input, shape index: {}, may-alias: {1,7}]   ;;  %s2539_s2 = inlined_call_operand.vmem [shape: f32[1,64], index: 2, kind: input, shape index: {}, may-alias: {2,6,8,12}]   ;;  %s2540_s3 = inlined_call_operand.vmem [shape: bf16[64,192], index: 3, kind: input, shape index: {}]   ;;  %s2541_s4 = inlined_call_operand.vmem [shape: f32[1,192], index: 4, kind: input, shape index: {}]   ;;  %s2542_s5 = inlined_call_operand.vmem [shape: bf16[64,64], index: 5, kind: input, shape index: {}]   ;;  %s2543_s6 = inlined_call_operand.vmem [shape: f32[1,64], index: 6, kind: input, shape index: {}, may-alias: {2,6,8,12}]   ;;  %s2544_s7 = inlined_call_operand.vmem [shape: f32[1,64], index: 7, kind: input, shape index: {}, may-alias: {1,7}]   ;;  %s2545_s8 = inlined_call_operand.vmem [shape: f32[1,64], index: 8, kind: input, shape index: {}, may-alias: {2,6,8,12}]   ;;  %s2546_s9 = inlined_call_operand.vmem [shape: bf16[64,256], index: 9, kind: input, shape index: {}]   ;;  %s2547_s10 = inlined_call_operand.vmem [shape: f32[1,256], index: 10, kind: input, shape index: {}]   ;;  %s2548_s11 = inlined_call_operand.vmem [shape: bf16[256,64], index: 11, kind: input, shape index: {}]   ;;  %s2549_s12 = inlined_call_operand.vmem [shape: f32[1,64], index: 12, kind: input, shape index: {}, may-alias: {2,6,8,12}]   ;;  %s2550_s13 = inlined_call_operand.vmem [shape: f32[2,17,64], index: 13, kind: output, shape index: {}]  }
   0x1 LB: > { %s1686_s26 = sadd.s32 4294967295, %s2018_s25   ;;  %p1690_p0 = scmp.ge.s32.totalorder %s2018_s25, 1  ;;  %s2018_s25 = sphi %s2099_s25, %s23_s25  }
   0x2   : > { %p387_p1 = scmp.lt.s32.totalorder %s2018_s25, 3 }
   0x4   : > { %p388_p2 = pnand %p1690_p0, %p387_p1 }
   0x5   : > { %p431_p3 = scmp.lt.s32.totalorder (!%p388_p2), %s1686_s26, 1  ;;  %s2021_s29 = smov (!%p388_p2), 64  }
   0x6   : > { %391 = sbr.rel (%p388_p2) target bundleno = 2429 (0x97d), region = 72  ;;  %s2023_s14 = smov (!%p388_p2), 112  }
   0x7   : > { %s2024_s15 = smov (!%p388_p2), 32   ;;  %s2025_s16 = smov (!%p388_p2), 48  }
   0x8   : > { %s2026_s17 = smov (!%p388_p2), 96   ;;  %s2027_s18 = smov (!%p388_p2), 16  }
   0x9   : > { %s2028_s19 = smov (!%p388_p2), 80  }
   0xb   : > { %s2552_s26 = smov (!%p431_p3, %s1686_s26), 1  ;;  %vm447_vm0 = vcmask 523264   ;;  %vm454_vm1 = vcmask 516096   ;;  %v2020_v6 = vmov 64.0   ;;  %v1719_v28 = vld [vmem:[%s2540_s3 + $0x30] sm:$0xf] }
   0xc   : > { %s1913_s27 = smul.u32 24, %s2552_s26  ;;  %1937 = vrcp.f32 %v2020_v6  ;;  %v1878_v29 = vld [vmem:[%s2540_s3 + $0x34] sm:$0xf0]  ;;  %v1711_v31 = vld [vmem:[%s2540_s3 + $0x20] sm:$0xf]  ;;  %vm727_vm12 = vcmask 1040384  }
   0xd   : > { %v1720_v30 = vor.u32 %v1878_v29, %v1719_v28  ;;  %v1876_v32 = vld [vmem:[%s2540_s3 + $0x24] sm:$0xf0]  ;;  %v1703_v34 = vld [vmem:[%s2540_s3 + $0x10] sm:$0xf]  ;;  %v1874_v35 = vld [vmem:[%s2540_s3 + $0x14] sm:$0xf0] }
   0xe   : > { %s2115_s30 = scalar_lea.vmem %s2537_s0, %s1913_s27  ;;  %v1712_v33 = vor.u32 %v1876_v32, %v1711_v31  ;;  %v1704_v36 = vor.u32 %v1874_v35, %v1703_v34  ;;  %v1695_v39 = vld [vmem:[%s2540_s3] sm:$0xf]  ;;  %v1872_v40 = vld [vmem:[%s2540_s3 + $0x4] sm:$0xf0]  ;;  %v1877_v48 = vld [vmem:[%s2540_s3 + $0x34] sm:$0xf]  ;;  %s440_s20 = scalar_lea.vmem %s2550_s13, %s1913_s27 }
   0xf   : > { %v2118_v0 = vld [vmem:[%s2115_s30] sm:$0xff]  ;;  %v444_v1 = vld [vmem:[%s2115_s30 + $0x10] sm:$0x1]  ;;  %v2125_v4 = vld [vmem:[%s2115_s30 + $0x8] sm:$0xff]  ;;  %600 = vmatpush.bf16.msra.mxu0 %v1720_v30  ;;  %1907 = vmatpush.bf16.msra.mxu1 %v1720_v30  ;;  %v1696_v41 = vor.u32 %v1872_v40, %v1695_v39  ;;  %vm648_vm13 = vcmask 130048   ;;  %vm682_vm14 = vcmask 138240  }
  0x10   : > { %v448_v2 = vsel %vm447_vm0, %v2118_v0, 0.0  ;;  %v455_v3 = vsel %vm454_vm1, %v444_v1, 0.0  ;;  %v451_v5 = vsel %vm447_vm0, %v2125_v4, 0.0  ;;  %v1721_v49 = vld [vmem:[%s2540_s3 + $0x38] sm:$0xf0]  ;;  %vm689_vm15 = vcmask 131072  }
  0x11   : > { %449 = vadd.xlane.f32.xlu0 %v448_v2  ;;  %456 = vadd.xlane.f32.xlu1 %v455_v3  ;;  %v1724_v51 = vor.u32 %v1877_v48, %v1721_v49  ;;  %v1875_v52 = vld [vmem:[%s2540_s3 + $0x24] sm:$0xf]  ;;  %v1713_v53 = vld [vmem:[%s2540_s3 + $0x28] sm:$0xf0]  ;;  %v1873_v58 = vld [vmem:[%s2540_s3 + $0x14] sm:$0xf] }
  0x12   : > { %v1938_v7 = vpop.eup %1937  ;;  %v1716_v56 = vor.u32 %v1875_v52, %v1713_v53  ;;  %v1705_v59 = vld [vmem:[%s2540_s3 + $0x18] sm:$0xf0]  ;;  %v1871_v3 = vld [vmem:[%s2540_s3 + $0x4] sm:$0xf] }
  0x13   : > { %v459_v8 = vmul.f32 64.0, %v1938_v7  ;;  %vm463_vm2 = vweird.f32 %v1938_v7  ;;  %601 = vmatpush.bf16.msra.mxu0 %v1712_v33  ;;  %1908 = vmatpush.bf16.msra.mxu1 %v1712_v33  ;;  %v1708_v2 = vor.u32 %v1873_v58, %v1705_v59 }
  0x15   : > { %v460_v9 = vsub.f32 1.0, %v459_v8 }
  0x17   : > { %v461_v10 = vmul.f32 %v1938_v7, %v460_v9  ;;  %602 = vmatpush.bf16.msra.mxu0 %v1704_v36  ;;  %1909 = vmatpush.bf16.msra.mxu1 %v1704_v36  ;;  %v544_v36 = vld [vmem:[%s2541_s4] sm:$0x3] }
  0x19   : > { %452 = vadd.xlane.f32.xlu0 %v451_v5  ;;  %v462_v11 = vadd.f32 %v1938_v7, %v461_v10  ;;  %v1697_v5 = vld [vmem:[%s2540_s3 + $0x8] sm:$0xf0] }
  0x1a   : > { %v1700_v9 = vor.u32 %v1871_v3, %v1697_v5 }
  0x1b   : > { %v2129_v12 = vsel %vm463_vm2, %v1938_v7, %v462_v11  ;;  %603 = vmatpush.bf16.msra.mxu0 %v1696_v41  ;;  %1910 = vmatpush.bf16.msra.mxu1 %v1696_v41 }
  0x1f   : > { %618 = vmatpush.bf16.msrb.mxu1 %v1724_v51 }
  0x23   : > { %619 = vmatpush.bf16.msrb.mxu1 %v1716_v56 }
  0x27   : > { %620 = vmatpush.bf16.msrb.mxu1 %v1708_v2 }
  0x2b   : > { %621 = vmatpush.bf16.msrb.mxu1 %v1700_v9 }
  0x84   : > { %v450_v13 = vpop.xlane.xlu0 %449  ;;  %v457_v17 = vpop.xlane.xlu1 %456 }
  0x85   : > { %v465_v14 = vmul.f32 %v2129_v12, %v450_v13  ;;  %v467_v21 = vmul.f32 %v2129_v12, %v457_v17 }
  0x87   : > { %v2133_v15 = vsub.f32 %v2118_v0, %v465_v14  ;;  %v2143_v23 = vsub.f32 %v444_v1, %v467_v21  ;;  %v1931_v14 = vld [vmem:[%s2538_s1] ss:$0 sm:$0xff] }
  0x89   : > { %v471_v16 = vmul.f32 %v2133_v15, %v2133_v15  ;;  %v473_v26 = vmul.f32 %v2143_v23, %v2143_v23 }
  0x8b   : > { %v474_v18 = vsel %vm447_vm0, %v471_v16, 0.0  ;;  %v480_v27 = vsel %vm454_vm1, %v473_v26, 0.0 }
  0x8c   : > { %475 = vadd.xlane.f32.xlu1 %v474_v18  ;;  %v453_v19 = vpop.xlane.xlu0 %452 }
  0x8d   : > { %v466_v20 = vmul.f32 %v2129_v12, %v453_v19 }
  0x8f   : > { %v2141_v22 = vsub.f32 %v2125_v4, %v466_v20 }
  0x91   : > { %v472_v24 = vmul.f32 %v2141_v22, %v2141_v22 }
  0x93   : > { %v477_v25 = vsel %vm447_vm0, %v472_v24, 0.0  ;;  %v1932_v24 = vld [vmem:[%s2539_s2] ss:$0 sm:$0xff] }
  0x94   : > { %478 = vadd.xlane.f32.xlu2 %v477_v25 }
  0x9c   : > { %481 = vadd.xlane.f32.xlu2 %v480_v27 }
  0xff   : > { %v476_v37 = vpop.xlane.xlu1 %475 }
 0x100   : > { %v483_v38 = vmul.f32 %v476_v37, %v2129_v12  ;;  %v546_v37 = vperm.slane %v544_v36, 0 }
 0x102   : > { %v486_v42 = vadd.f32 1e-06, %v483_v38 }
 0x104   : > { %1939 = vrsqrt.f32 %v486_v42  ;;  %vm495_vm4 = vweird.f32 %v486_v42 }
 0x107   : > { %v479_v43 = vpop.xlane.xlu2 %478 }
 0x108   : > { %v484_v44 = vmul.f32 %v479_v43, %v2129_v12 }
 0x10a   : > { %v1940_v45 = vpop.eup %1939  ;;  %v487_v46 = vadd.f32 1e-06, %v484_v44 }
 0x10b   : > { %v490_v47 = vmul.f32 %v1940_v45, %v486_v42  ;;  %vm496_vm3 = vweird.f32 %v1940_v45 }
 0x10c   : > { %1941 = vrsqrt.f32 %v487_v46  ;;  %vm497_vm5 = vmor %vm495_vm4, %vm496_vm3  ;;  %vm505_vm7 = vweird.f32 %v487_v46 }
 0x10d   : > { %v491_v50 = vmul.f32 %v1940_v45, %v490_v47  ;;  %v547_v47 = vperm.slane %v544_v36, 1 }
 0x10f   : > { %v492_v54 = vmul.f32 0.5, %v491_v50  ;;  %v482_v55 = vpop.xlane.xlu2 %481  ;;  %v2022_v50 = vmov 0  }
 0x110   : > { %v485_v57 = vmul.f32 %v482_v55, %v2129_v12  ;;  %v2224_v51 = vsel %vm727_vm12, 65535, %v2022_v50 }
 0x111   : > { %v493_v60 = vsub.f32 1.5, %v492_v54 }
 0x112   : > { %v1942_v61 = vpop.eup %1941  ;;  %v488_v62 = vadd.f32 1e-06, %v485_v57 }
 0x113   : > { %v494_v63 = vmul.f32 %v1940_v45, %v493_v60  ;;  %v500_v1 = vmul.f32 %v1942_v61, %v487_v46  ;;  %vm506_vm6 = vweird.f32 %v1942_v61 }
 0x114   : > { %1943 = vrsqrt.f32 %v488_v62  ;;  %vm507_vm8 = vmor %vm505_vm7, %vm506_vm6  ;;  %vm515_vm10 = vweird.f32 %v488_v62 }
 0x115   : > { %v501_v6 = vmul.f32 %v1942_v61, %v500_v1  ;;  %v498_v7 = vsel %vm497_vm5, %v1940_v45, %v494_v63 }
 0x116   : > { %v519_v13 = vmul.f32 %v498_v7, %v2133_v15 }
 0x117   : > { %v502_v8 = vmul.f32 0.5, %v501_v6 }
 0x118   : > { %v525_v21 = vmul.f32 %v1931_v14, %v519_v13 }
 0x119   : > { %v503_v10 = vsub.f32 1.5, %v502_v8 }
 0x11a   : > { %v1944_v11 = vpop.eup %1943  ;;  %v531_v27 = vadd.f32 %v1932_v24, %v525_v21 }
 0x11b   : > { %v504_v16 = vmul.f32 %v1942_v61, %v503_v10  ;;  %v510_v17 = vmul.f32 %v1944_v11, %v488_v62  ;;  %vm516_vm9 = vweird.f32 %v1944_v11 }
 0x11c   : > { %vm517_vm11 = vmor %vm515_vm10, %vm516_vm9 }
 0x11d   : > { %v508_v18 = vsel %vm507_vm8, %v1942_v61, %v504_v16  ;;  %v511_v19 = vmul.f32 %v1944_v11, %v510_v17 }
 0x11e   : > { %v520_v20 = vmul.f32 %v508_v18, %v2141_v22 }
 0x11f   : > { %v512_v25 = vmul.f32 0.5, %v511_v19 }
 0x120   : > { %v526_v15 = vmul.f32 %v1931_v14, %v520_v20 }
 0x121   : > { %v513_v26 = vsub.f32 1.5, %v512_v25 }
 0x122   : > { %v532_v28 = vadd.f32 %v1932_v24, %v526_v15 }
 0x123   : > { %v514_v29 = vmul.f32 %v1944_v11, %v513_v26 }
 0x124   : > { %v542_v30 = vpack.c.bf16 %v532_v28, %v531_v27  ;;  %v1879_v28 = vld [vmem:[%s2542_s5] sm:$0xff] }
 0x125   : > { %v518_v31 = vsel %vm517_vm11, %v1944_v11, %v514_v29 }
 0x126   : > { %1725 = vmatmul.msk.bf16.vlgmr.msra.gmra.mxu0 %vm447_vm0, %v542_v30  ;;  %v521_v22 = vmul.f32 %v518_v31, %v2143_v23 }
 0x128   : > { %v527_v32 = vmul.f32 %v1931_v14, %v521_v22 }
 0x12a   : > { %v533_v33 = vadd.f32 %v1932_v24, %v527_v32 }
 0x12c   : > { %v543_v34 = vpack.c.bf16 %v533_v33, %v533_v33 }
 0x12e   : > { %1726 = vmatmul.msk.bf16.vlgmr.msra.gmra.mxu1 %vm447_vm0, %v543_v34 }
 0x13e   : > { %1727 = vmatmul.msk.bf16.vlgmr.msrb.gmra.mxu1 %vm447_vm0, %v542_v30 }
 0x14e   : > { %1728 = vmatmul.msk.bf16.gmra.mxu1 %vm447_vm0, %v543_v34 }
 0x1a3   : > { %v605_v35 = vpop.f32.mrf.mxu0 }
 0x1a4   : > { %v606_v40 = vadd.f32 %v605_v35, %v546_v37 }
 0x1ab   : > { %v607_v38 = vpop.f32.mrf.mxu0  ;;  %v610_v39 = vpop.f32.mrf.mxu1 }
 0x1ac   : > { %v608_v41 = vadd.f32 %v607_v38, %v546_v37  ;;  %v611_v23 = vadd.f32 %v610_v39, %v546_v37 }
 0x1ae   : > { %v2218_v42 = vpack.c.bf16 %v608_v41, %v606_v40  ;;  %v2220_v43 = vpack.c.bf16 %v611_v23, %v611_v23 }
 0x1b0   : > { %644 = vrot.lane.b32.xlu1 %v2218_v42, %s2021_s29  ;;  %646 = vrot.lane.b32.xlu0 %v2220_v43, %s2021_s29 }
 0x1b3   : > { %v612_v44 = vpop.f32.mrf.mxu1 }
 0x1bb   : > { %v623_v45 = vpop.f32.mrf.mxu1 }
 0x1bc   : > { %v624_v55 = vadd.f32 %v623_v45, %v547_v47 }
 0x1c3   : > { %v625_v46 = vpop.f32.mrf.mxu1 }
 0x1c4   : > { %v626_v53 = vadd.f32 %v625_v46, %v547_v47 }
 0x1c6   : > { %v2230_v57 = vpack.c.bf16 %v626_v53, %v624_v55 }
 0x1cb   : > { %v628_v48 = vpop.f32.mrf.mxu1 }
 0x1cc   : > { %v629_v49 = vadd.f32 %v628_v48, %v547_v47 }
 0x1ce   : > { %v2226_v52 = vpack.c.bf16 %v629_v49, %v629_v49 }
 0x1d0   : > { %v731_v54 = vand.u32 %v2224_v51, %v2226_v52 }
 0x1d2   : > { %1911 = vmatpush.bf16.msra.mxu3 %v731_v54 }
 0x1d3   : > { %v630_v56 = vpop.f32.mrf.mxu1 }
 0x1d6   : > { %1912 = vmatpush.bf16.msra.mxu3 %v2230_v57 }
 0x222   : > { %v647_v58 = vpop.permute.xlu0 %646  ;;  %v645_v60 = vpop.permute.xlu1 %644 }
 0x223   : > { %v659_v59 = vsel %vm648_vm13, %v647_v58, 0  ;;  %v656_v61 = vsel %vm648_vm13, %v645_v60, 0 }
 0x224   : > { %667 = vmatpush.bf16.xpose.msra.mxu2 %v659_v59 }
 0x22c   : > { %668 = vmatpush.bf16.xpose.msra.mxu2 %v656_v61 }
 0x233   : > { %1729 = vmatmul.msk.bf16.vlgmr.msra.gmra.mxu2 %vm648_vm13, %v2218_v42 }
 0x234   : > { %739 = vmatpush.bf16.msrb.mxu2 %v731_v54 }
 0x238   : > { %740 = vmatpush.bf16.msrb.mxu2 %v2230_v57 }
 0x23c   : > { %914 = vmatpush.bf16.msra.mxu2 %v1879_v28 }
 0x243   : > { %1730 = vmatmul.msk.bf16.gmra.mxu2 %vm648_vm13, %v2220_v43 }
 0x2b6   : > { %v670_v62 = vpop.f32.mrf.mxu2 }
 0x2b7   : > { %v679_v63 = vmul.f32 0.25, %v670_v62 }
 0x2b9   : > { %v683_v1 = vsel %vm682_vm14, %v679_v63, -inf }
 0x2ba   : > { %684 = vmax.xlane.f32.xlu2 %v683_v1 }
 0x2be   : > { %v672_v2 = vpop.f32.mrf.mxu2 }
 0x2bf   : > { %v680_v3 = vmul.f32 0.25, %v672_v2 }
 0x2c1   : > { %v686_v5 = vsel %vm682_vm14, %v680_v3, -inf }
 0x2c2   : > { %687 = vmax.xlane.f32.xlu2 %v686_v5 }
 0x2c6   : > { %v675_v6 = vpop.f32.mrf.mxu2 }
 0x2c7   : > { %v681_v7 = vmul.f32 0.25, %v675_v6 }
 0x2c9   : > { %v690_v8 = vsel %vm689_vm15, %v681_v7, -inf }
 0x2ca   : > { %691 = vmax.xlane.f32.xlu2 %v690_v8 }
 0x2ce   : > { %v677_v9 = vpop.f32.mrf.mxu2 }
 0x32d   : > { %v685_v10 = vpop.xlane.xlu2 %684 }
 0x32e   : > { %v693_v11 = vsub.f32 %v679_v63, %v685_v10 }
 0x330   : > { %v696_v13 = vmul.f32 1.442695, %v693_v11 }
 0x332   : > { %1945 = vpow2.f32 %v696_v13 }
 0x335   : > { %v688_v14 = vpop.xlane.xlu2 %687 }
 0x336   : > { %v694_v16 = vsub.f32 %v680_v3, %v688_v14 }
 0x338   : > { %v1946_v17 = vpop.eup %1945  ;;  %v698_v18 = vmul.f32 1.442695, %v694_v16 }
 0x339   : > { %v702_v19 = vsel %vm682_vm14, %v1946_v17, 0.0 }
 0x33a   : > { %1947 = vpow2.f32 %v698_v18  ;;  %703 = vadd.xlane.f32.xlu0 %v702_v19 }
 0x33d   : > { %v692_v20 = vpop.xlane.xlu2 %691 }
 0x33e   : > { %v695_v21 = vsub.f32 %v681_v7, %v692_v20 }
 0x340   : > { %v1948_v24 = vpop.eup %1947  ;;  %v700_v25 = vmul.f32 1.442695, %v695_v21 }
 0x341   : > { %v705_v15 = vsel %vm682_vm14, %v1948_v24, 0.0 }
 0x342   : > { %1949 = vpow2.f32 %v700_v25  ;;  %706 = vadd.xlane.f32.xlu2 %v705_v15 }
 0x348   : > { %v1950_v26 = vpop.eup %1949 }
 0x349   : > { %v708_v27 = vsel %vm689_vm15, %v1950_v26, 0.0 }
 0x34a   : > { %709 = vadd.xlane.f32.xlu1 %v708_v27 }
 0x34e   : > { %753 = vrot.lane.b32.xlu0 %v2218_v42, %s2023_s14 }
 0x356   : > { %929 = vrot.lane.b32.xlu0 %v2218_v42, %s2024_s15 }
 0x35a   : > { %759 = vrot.lane.b32.xlu2 %v2220_v43, %s2025_s16 }
 0x35e   : > { %925 = vrot.lane.b32.xlu0 %v2218_v42, %s2026_s17 }
 0x362   : > { %757 = vrot.lane.b32.xlu2 %v2218_v42, %s2025_s16 }
 0x363   : > { %755 = vrot.lane.b32.xlu1 %v2220_v43, %s2023_s14 }
 0x36a   : > { %1074 = vrot.lane.b32.xlu2 %v2220_v43, %s2027_s18 }
 0x36b   : > { %1070 = vrot.lane.b32.xlu1 %v2220_v43, %s2028_s19 }
 0x372   : > { %931 = vrot.lane.b32.xlu2 %v2220_v43, %s2024_s15 }
 0x37a   : > { %1072 = vrot.lane.b32.xlu2 %v2218_v42, %s2027_s18 }
 0x382   : > { %1068 = vrot.lane.b32.xlu2 %v2218_v42, %s2028_s19 }
 0x38a   : > { %927 = vrot.lane.b32.xlu2 %v2220_v43, %s2026_s17 }
 0x3ad   : > { %v704_v29 = vpop.xlane.xlu0 %703 }
 0x3ae   : > { %1951 = vrcp.f32 %v704_v29 }
 0x3b4   : > { %v1952_v31 = vpop.eup %1951 }
 0x3b5   : > { %v707_v30 = vpop.xlane.xlu2 %706  ;;  %v714_v32 = vmul.f32 %v1952_v31, %v1946_v17 }
 0x3b6   : > { %1953 = vrcp.f32 %v707_v30 }
 0x3bc   : > { %v1954_v22 = vpop.eup %1953 }
 0x3bd   : > { %v715_v33 = vmul.f32 %v1954_v22, %v1948_v24  ;;  %v710_v34 = vpop.xlane.xlu1 %709  ;;  %v760_v35 = vpop.permute.xlu2 %759 }
 0x3be   : > { %1955 = vrcp.f32 %v710_v34  ;;  %v771_v36 = vsel %vm648_vm13, %v760_v35, 0 }
 0x3bf   : > { %779 = vmatpush.bf16.xpose.msrb.mxu3 %v771_v36  ;;  %v717_v37 = vpack.c.bf16 %v715_v33, %v714_v32 }
 0x3c0   : > { %v754_v44 = vpop.permute.xlu0 %753 }
 0x3c1   : > { %1731 = vmatmul.msk.bf16.vlgmr.msrb.gmra.mxu2 %vm682_vm14, %v717_v37 }
 0x3c4   : > { %v1956_v38 = vpop.eup %1955 }
 0x3c5   : > { %v758_v39 = vpop.permute.xlu2 %757  ;;  %v716_v40 = vmul.f32 %v1956_v38, %v1950_v26 }
 0x3c6   : > { %v768_v41 = vsel %vm648_vm13, %v758_v39, 0 }
 0x3c7   : > { %780 = vmatpush.bf16.xpose.msrb.mxu3 %v768_v41  ;;  %v718_v23 = vpack.c.bf16 %v716_v40, %v716_v40 }
 0x3c8   : > { %v930_v47 = vpop.permute.xlu0 %929 }
 0x3c9   : > { %1732 = vmatmul.msk.bf16.vlgmr.msra.gmra.mxu3 %vm682_vm14, %v718_v23  ;;  %v940_v49 = vsel %vm648_vm13, %v930_v47, 0 }
 0x3cd   : > { %v1075_v42 = vpop.permute.xlu2 %1074 }
 0x3ce   : > { %v1086_v43 = vsel %vm648_vm13, %v1075_v42, 0 }
 0x3cf   : > { %1094 = vmatpush.bf16.xpose.msrb.mxu2 %v1086_v43 }
 0x3d0   : > { %v926_v54 = vpop.permute.xlu0 %925 }
 0x3d5   : > { %v932_v45 = vpop.permute.xlu2 %931  ;;  %v756_v53 = vpop.permute.xlu1 %755 }
 0x3d6   : > { %v943_v46 = vsel %vm648_vm13, %v932_v45, 0 }
 0x3d7   : > { %951 = vmatpush.bf16.xpose.msra.mxu3 %v943_v46 }
 0x3d9   : > { %1733 = vmatmul.msk.bf16.vlgmr.msrb.gmra.mxu3 %vm648_vm13, %v754_v44 }
 0x3dd   : > { %v1073_v48 = vpop.permute.xlu2 %1072  ;;  %v1071_v16 = vpop.permute.xlu1 %1070 }
 0x3de   : > { %v1083_v50 = vsel %vm648_vm13, %v1073_v48, 0 }
 0x3df   : > { %952 = vmatpush.bf16.xpose.msra.mxu3 %v940_v49  ;;  %1095 = vmatpush.bf16.xpose.msrb.mxu2 %v1083_v50 }
 0x3e5   : > { %v1069_v55 = vpop.permute.xlu2 %1068 }
 0x3e9   : > { %1734 = vmatmul.msk.bf16.gmra.mxu3 %vm648_vm13, %v756_v53 }
 0x3ed   : > { %v928_v56 = vpop.permute.xlu2 %927 }
 0x3f9   : > { %1749 = vmatmul.msk.bf16.vlgmr.msra.gmra.mxu3 %vm648_vm13, %v926_v54 }
 0x409   : > { %1750 = vmatmul.msk.bf16.gmra.mxu3 %vm648_vm13, %v928_v56 }
 0x444   : > { %v742_v58 = vpop.f32.mrf.mxu2 }
 0x44c   : > { %v744_v59 = vpop.f32.mrf.mxu2  ;;  %v747_v60 = vpop.f32.mrf.mxu3 }
 0x44d   : > { %v751_v61 = vpack.c.bf16 %v744_v59, %v742_v58  ;;  %v752_v1 = vpack.c.bf16 %v747_v60, %v747_v60 }
 0x44f   : > { %1747 = vmatmul.msk.bf16.vlgmr.msra.gmra.mxu2 %vm648_vm13, %v751_v61 }
 0x454   : > { %v749_v62 = vpop.f32.mrf.mxu3 }
 0x45c   : > { %v782_v63 = vpop.f32.mrf.mxu3 }
 0x45d   : > { %v791_v2 = vmul.f32 0.25, %v782_v63 }
 0x45f   : > { %1748 = vmatmul.msk.bf16.gmra.mxu2 %vm648_vm13, %v752_v1  ;;  %v794_v3 = vsel %vm682_vm14, %v791_v2, -inf }
 0x460   : > { %795 = vmax.xlane.f32.xlu0 %v794_v3 }
 0x464   : > { %v784_v5 = vpop.f32.mrf.mxu3 }
 0x465   : > { %v792_v6 = vmul.f32 0.25, %v784_v5 }
 0x467   : > { %v797_v7 = vsel %vm682_vm14, %v792_v6, -inf }
 0x468   : > { %798 = vmax.xlane.f32.xlu1 %v797_v7 }
 0x46c   : > { %v787_v8 = vpop.f32.mrf.mxu3 }
 0x46d   : > { %v793_v9 = vmul.f32 0.25, %v787_v8 }
 0x46f   : > { %1759 = vmatmul.msk.bf16.vlgmr.msrb.gmra.mxu2 %vm648_vm13, %v1069_v55  ;;  %v800_v10 = vsel %vm689_vm15, %v793_v9, -inf }
 0x470   : > { %801 = vmax.xlane.f32.xlu2 %v800_v10 }
 0x474   : > { %833 = vrot.lane.b32.xlu0 %v2226_v52, %s2023_s14  ;;  %v789_v11 = vpop.f32.mrf.mxu3 }
 0x47c   : > { %v954_v13 = vpop.f32.mrf.mxu3 }
 0x47d   : > { %v2287_v14 = vmul.f32 0.25, %v954_v13 }
 0x47f   : > { %1760 = vmatmul.msk.bf16.gmra.mxu2 %vm648_vm13, %v1071_v16  ;;  %v966_v17 = vsel %vm682_vm14, %v2287_v14, -inf }
 0x480   : > { %967 = vmax.xlane.f32.xlu2 %v966_v17 }
 0x484   : > { %v956_v18 = vpop.f32.mrf.mxu3 }
 0x485   : > { %v964_v21 = vmul.f32 0.25, %v956_v18 }
 0x487   : > { %v969_v24 = vsel %vm682_vm14, %v964_v21, -inf }
 0x48c   : > { %v959_v19 = vpop.f32.mrf.mxu3 }
 0x48d   : > { %v965_v46 = vmul.f32 0.25, %v959_v19 }
 0x48f   : > { %v972_v49 = vsel %vm689_vm15, %v965_v46, -inf }
 0x494   : > { %v961_v20 = vpop.f32.mrf.mxu3 }
 0x49e   : > { %970 = vmax.xlane.f32.xlu0 %v969_v24 }
 0x4d2   : > { %v2293_v25 = vpop.f32.mrf.mxu2 }
 0x4d3   : > { %v796_v15 = vpop.xlane.xlu0 %795 }
 0x4d4   : > { %v803_v26 = vsub.f32 %v791_v2, %v796_v15 }
 0x4d6   : > { %v806_v27 = vmul.f32 1.442695, %v803_v26 }
 0x4d8   : > { %1957 = vpow2.f32 %v806_v27 }
 0x4da   : > { %v2295_v28 = vpop.f32.mrf.mxu2 }
 0x4db   : > { %v799_v29 = vpop.xlane.xlu1 %798 }
 0x4dc   : > { %v804_v30 = vsub.f32 %v792_v6, %v799_v29 }
 0x4de   : > { %v2297_v31 = vpop.eup %1957  ;;  %v808_v22 = vmul.f32 1.442695, %v804_v30 }
 0x4df   : > { %v812_v32 = vsel %vm682_vm14, %v2297_v31, 0.0 }
 0x4e0   : > { %1959 = vpow2.f32 %v808_v22  ;;  %813 = vadd.xlane.f32.xlu1 %v812_v32 }
 0x4e2   : > { %v2301_v33 = vpop.f32.mrf.mxu2 }
 0x4e3   : > { %v802_v34 = vpop.xlane.xlu2 %801 }
 0x4e4   : > { %v805_v35 = vsub.f32 %v793_v9, %v802_v34 }
 0x4e6   : > { %v2303_v36 = vpop.eup %1959  ;;  %v810_v37 = vmul.f32 1.442695, %v805_v35  ;;  %v834_v38 = vpop.permute.xlu0 %833 }
 0x4e7   : > { %v843_v39 = vand.u32 %v834_v38, %v2224_v51  ;;  %v815_v40 = vsel %vm682_vm14, %v2303_v36, 0.0 }
 0x4e8   : > { %1961 = vpow2.f32 %v810_v37  ;;  %816 = vadd.xlane.f32.xlu2 %v815_v40 }
 0x4e9   : > { %851 = vmatpush.bf16.msrb.mxu0 %v843_v39 }
 0x4ea   : > { %v923_v41 = vpop.f32.mrf.mxu2 }
 0x4ee   : > { %v2308_v23 = vpop.eup %1961 }
 0x4ef   : > { %v818_v42 = vsel %vm689_vm15, %v2308_v23, 0.0 }
 0x4f0   : > { %819 = vadd.xlane.f32.xlu2 %v818_v42 }
 0x4f2   : > { %v1097_v43 = vpop.f32.mrf.mxu2 }
 0x4f3   : > { %v1106_v44 = vmul.f32 0.25, %v1097_v43  ;;  %v968_v63 = vpop.xlane.xlu2 %967 }
 0x4f4   : > { %v975_v8 = vsub.f32 %v2287_v14, %v968_v63 }
 0x4f5   : > { %v1109_v45 = vsel %vm682_vm14, %v1106_v44, -inf }
 0x4f6   : > { %1110 = vmax.xlane.f32.xlu0 %v1109_v45  ;;  %v978_v11 = vmul.f32 1.442695, %v975_v8 }
 0x4fa   : > { %v1099_v47 = vpop.f32.mrf.mxu2 }
 0x4fb   : > { %v1107_v48 = vmul.f32 0.25, %v1099_v47 }
 0x4fd   : > { %v1112_v50 = vsel %vm682_vm14, %v1107_v48, -inf }
 0x4fe   : > { %973 = vmax.xlane.f32.xlu0 %v972_v49  ;;  %1113 = vmax.xlane.f32.xlu1 %v1112_v50 }
 0x502   : > { %v1102_v53 = vpop.f32.mrf.mxu2 }
 0x503   : > { %v1108_v61 = vmul.f32 0.25, %v1102_v53 }
 0x505   : > { %v1115_v62 = vsel %vm689_vm15, %v1108_v61, -inf }
 0x508   : > { %1146 = vrot.lane.b32.xlu2 %v2226_v52, %s2028_s19 }
 0x50a   : > { %v1104_v54 = vpop.f32.mrf.mxu2 }
 0x511   : > { %v971_v55 = vpop.xlane.xlu0 %970 }
 0x512   : > { %v976_v56 = vsub.f32 %v964_v21, %v971_v55 }
 0x514   : > { %v980_v58 = vmul.f32 1.442695, %v976_v56 }
 0x516   : > { %1963 = vpow2.f32 %v980_v58 }
 0x517   : > { %831 = vrot.lane.b32.xlu1 %v2230_v57, %s2023_s14 }
 0x51c   : > { %v2319_v59 = vpop.eup %1963 }
 0x51d   : > { %v987_v60 = vsel %vm682_vm14, %v2319_v59, 0.0 }
 0x51e   : > { %988 = vadd.xlane.f32.xlu0 %v987_v60 }
 0x531   : > { %1116 = vmax.xlane.f32.xlu2 %v1115_v62 }
 0x532   : > { %1144 = vrot.lane.b32.xlu0 %v2230_v57, %s2028_s19 }
 0x53a   : > { %1001 = vrot.lane.b32.xlu0 %v2230_v57, %s2026_s17 }
 0x553   : > { %v814_v3 = vpop.xlane.xlu1 %813 }
 0x55b   : > { %v817_v1 = vpop.xlane.xlu2 %816 }
 0x563   : > { %v820_v2 = vpop.xlane.xlu2 %819 }
 0x569   : > { %v1111_v5 = vpop.xlane.xlu0 %1110 }
 0x56a   : > { %v1118_v6 = vsub.f32 %v1106_v44, %v1111_v5 }
 0x56b   : > { %v1147_v7 = vpop.permute.xlu2 %1146 }
 0x56c   : > { %v1121_v9 = vmul.f32 1.442695, %v1118_v6  ;;  %v1156_v10 = vand.u32 %v1147_v7, %v2224_v51 }
 0x56e   : > { %1965 = vpow2.f32 %v1121_v9  ;;  %1164 = vmatpush.bf16.msrb.mxu3 %v1156_v10 }
 0x56f   : > { %1967 = vpow2.f32 %v978_v11 }
 0x571   : > { %v974_v13 = vpop.xlane.xlu0 %973  ;;  %v1114_v16 = vpop.xlane.xlu1 %1113 }
 0x572   : > { %v1119_v17 = vsub.f32 %v1107_v48, %v1114_v16  ;;  %v977_v57 = vsub.f32 %v965_v46, %v974_v13 }
 0x574   : > { %v1966_v18 = vpop.eup %1965  ;;  %v1123_v19 = vmul.f32 1.442695, %v1119_v17  ;;  %v982_v21 = vmul.f32 1.442695, %v977_v57  ;;  %v1881_v57 = vld [vmem:[%s2542_s5 + $0x10] sm:$0xff] }
 0x575   : > { %v1127_v20 = vsel %vm682_vm14, %v1966_v18, 0.0  ;;  %v1968_v24 = vpop.eup %1967 }
 0x576   : > { %1128 = vadd.xlane.f32.xlu2 %v1127_v20  ;;  %1969 = vpow2.f32 %v1123_v19  ;;  %v984_v15 = vsel %vm682_vm14, %v1968_v24, 0.0 }
 0x577   : > { %1971 = vpow2.f32 %v982_v21 }
 0x578   : > { %1973 = vrcp.f32 %v817_v1 }
 0x579   : > { %1975 = vrcp.f32 %v814_v3 }
 0x57a   : > { %1977 = vrcp.f32 %v820_v2 }
 0x57c   : > { %v1970_v14 = vpop.eup %1969 }
 0x57d   : > { %v1130_v26 = vsel %vm682_vm14, %v1970_v14, 0.0  ;;  %v1972_v27 = vpop.eup %1971 }
 0x57e   : > { %985 = vadd.xlane.f32.xlu2 %v984_v15  ;;  %1131 = vadd.xlane.f32.xlu1 %v1130_v26  ;;  %v1974_v29 = vpop.eup %1973  ;;  %v990_v30 = vsel %vm689_vm15, %v1972_v27, 0.0 }
 0x57f   : > { %v1976_v22 = vpop.eup %1975  ;;  %v825_v32 = vmul.f32 %v1974_v29, %v2303_v36 }
 0x580   : > { %v824_v34 = vmul.f32 %v1976_v22, %v2297_v31  ;;  %v1978_v38 = vpop.eup %1977 }
 0x581   : > { %v826_v39 = vmul.f32 %v1978_v38, %v2308_v23 }
 0x582   : > { %v827_v37 = vpack.c.bf16 %v825_v32, %v824_v34 }
 0x583   : > { %v828_v40 = vpack.c.bf16 %v826_v39, %v826_v39 }
 0x586   : > { %991 = vadd.xlane.f32.xlu2 %v990_v30 }
 0x589   : > { %v832_v35 = vpop.permute.xlu1 %831 }
 0x58a   : > { %852 = vmatpush.bf16.msrb.mxu0 %v832_v35 }
 0x58d   : > { %1735 = vmatmul.msk.bf16.vlgmr.msrb.gmra.mxu0 %vm682_vm14, %v827_v37 }
 0x591   : > { %v989_v41 = vpop.xlane.xlu0 %988 }
 0x597   : > { %1003 = vrot.lane.b32.xlu1 %v2226_v52, %s2026_s17  ;;  %v1880_v52 = vld [vmem:[%s2542_s5 + $0x8] sm:$0xff] }
 0x598   : > { %884 = vmatpush.bf16.msra.mxu1 %v1880_v52 }
 0x59c   : > { %1054 = vmatpush.bf16.msrb.mxu1 %v1881_v57 }
 0x59d   : > { %1736 = vmatmul.msk.bf16.gmra.mxu0 %vm682_vm14, %v828_v40 }
 0x5a4   : > { %v1145_v42 = vpop.permute.xlu0 %1144  ;;  %v1117_v36 = vpop.xlane.xlu2 %1116 }
 0x5a5   : > { %1165 = vmatpush.bf16.msrb.mxu3 %v1145_v42  ;;  %v1120_v31 = vsub.f32 %v1108_v61, %v1117_v36 }
 0x5a7   : > { %v1125_v43 = vmul.f32 1.442695, %v1120_v31  ;;  %v1933_v31 = vld [vmem:[%s2543_s6] ss:$0 sm:$0xff] }
 0x5a9   : > { %1979 = vpow2.f32 %v1125_v43 }
 0x5ac   : > { %v1002_v1 = vpop.permute.xlu0 %1001 }
 0x5af   : > { %v1980_v44 = vpop.eup %1979 }
 0x5b0   : > { %v1133_v45 = vsel %vm689_vm15, %v1980_v44, 0.0 }
 0x5c1   : > { %1134 = vadd.xlane.f32.xlu1 %v1133_v45 }
 0x5e9   : > { %v1129_v46 = vpop.xlane.xlu2 %1128 }
 0x5ea   : > { %1981 = vrcp.f32 %v1129_v46 }
 0x5f0   : > { %v1982_v47 = vpop.eup %1981 }
 0x5f1   : > { %v1132_v23 = vpop.xlane.xlu1 %1131  ;;  %v1139_v49 = vmul.f32 %v1982_v47, %v1966_v18  ;;  %v986_v54 = vpop.xlane.xlu2 %985  ;;  %v1882_v18 = vld [vmem:[%s2542_s5 + $0x18] sm:$0xff] }
 0x5f2   : > { %1983 = vrcp.f32 %v1132_v23 }
 0x5f3   : > { %1985 = vrcp.f32 %v986_v54 }
 0x5f4   : > { %1987 = vrcp.f32 %v989_v41 }
 0x5f8   : > { %v1984_v48 = vpop.eup %1983 }
 0x5f9   : > { %v1140_v50 = vmul.f32 %v1984_v48, %v1970_v14  ;;  %v1986_v58 = vpop.eup %1985  ;;  %v992_v3 = vpop.xlane.xlu2 %991 }
 0x5fa   : > { %v1988_v61 = vpop.eup %1987  ;;  %v996_v62 = vmul.f32 %v1986_v58, %v1968_v24  ;;  %1989 = vrcp.f32 %v992_v3  ;;  %v2011_v58 = vld [vmem:[%s2115_s30 + $0x10] sm:$0x1] }
 0x5fb   : > { %v1142_v53 = vpack.c.bf16 %v1140_v50, %v1139_v49  ;;  %v997_v63 = vmul.f32 %v1988_v61, %v2319_v59 }
 0x5fd   : > { %1761 = vmatmul.msk.bf16.vlgmr.msrb.gmra.mxu3 %vm682_vm14, %v1142_v53  ;;  %v999_v2 = vpack.c.bf16 %v997_v63, %v996_v62 }
 0x600   : > { %v1990_v8 = vpop.eup %1989 }
 0x601   : > { %v998_v9 = vmul.f32 %v1990_v8, %v1972_v27 }
 0x603   : > { %v1000_v10 = vpack.c.bf16 %v998_v9, %v998_v9 }
 0x609   : > { %v1004_v55 = vpop.permute.xlu1 %1003 }
 0x60a   : > { %v854_v56 = vpop.f32.mrf.mxu0  ;;  %v1013_v60 = vand.u32 %v1004_v55, %v2224_v51 }
 0x60c   : > { %1021 = vmatpush.bf16.msra.mxu0 %v1013_v60 }
 0x610   : > { %1022 = vmatpush.bf16.msra.mxu0 %v1002_v1 }
 0x612   : > { %v856_v5 = vpop.f32.mrf.mxu0 }
 0x613   : > { %v863_v6 = vpack.c.bf16 %v856_v5, %v854_v56  ;;  %1751 = vmatmul.msk.bf16.vlgmr.msra.gmra.mxu0 %vm682_vm14, %v999_v2 }
 0x614   : > { %1197 = vmatpush.bf16.msrb.mxu0 %v1882_v18  ;;  %v1889_v18 = vld [vmem:[%s2546_s9 + $0x34] sm:$0xf] }
 0x615   : > { %1741 = vmatmul.msk.bf16.vlgmr.msra.gmra.mxu1 %vm648_vm13, %v863_v6 }
 0x61a   : > { %v859_v7 = vpop.f32.mrf.mxu0 }
 0x61b   : > { %v864_v11 = vpack.c.bf16 %v859_v7, %v859_v7 }
 0x622   : > { %v861_v51 = vpop.f32.mrf.mxu0 }
 0x623   : > { %1752 = vmatmul.msk.bf16.gmra.mxu0 %vm682_vm14, %v1000_v10 }
 0x625   : > { %1742 = vmatmul.msk.bf16.gmra.mxu1 %vm648_vm13, %v864_v11 }
 0x634   : > { %v1135_v59 = vpop.xlane.xlu1 %1134 }
 0x635   : > { %1991 = vrcp.f32 %v1135_v59 }
 0x63b   : > { %v1992_v13 = vpop.eup %1991 }
 0x63c   : > { %v1141_v16 = vmul.f32 %v1992_v13, %v1980_v44 }
 0x63e   : > { %v1143_v17 = vpack.c.bf16 %v1141_v16, %v1141_v16  ;;  %v1795_v16 = vld [vmem:[%s2546_s9 + $0x30] sm:$0xf] }
 0x640   : > { %1762 = vmatmul.msk.bf16.gmra.mxu3 %vm682_vm14, %v1143_v17  ;;  %v1890_v17 = vld [vmem:[%s2546_s9 + $0x34] sm:$0xf0] }
 0x641   : > { %v1796_v57 = vor.u32 %v1890_v17, %v1795_v16 }
 0x643   : > { %1367 = vmatpush.bf16.msra.mxu1 %v1796_v57 }
 0x680   : > { %v1167_v19 = vpop.f32.mrf.mxu3 }
 0x688   : > { %v1169_v20 = vpop.f32.mrf.mxu3 }
 0x689   : > { %v1176_v21 = vpack.c.bf16 %v1169_v20, %v1167_v19  ;;  %v1797_v19 = vld [vmem:[%s2546_s9 + $0x38] sm:$0xf0] }
 0x68a   : > { %v1800_v20 = vor.u32 %v1889_v18, %v1797_v19 }
 0x68b   : > { %1767 = vmatmul.msk.bf16.vlgmr.msrb.gmra.mxu0 %vm648_vm13, %v1176_v21  ;;  %v1787_v21 = vld [vmem:[%s2546_s9 + $0x20] sm:$0xf] }
 0x68c   : > { %1385 = vmatpush.bf16.msra.mxu2 %v1800_v20 }
 0x690   : > { %v1024_v24 = vpop.f32.mrf.mxu0 }
 0x692   : > { %v886_v14 = vpop.f32.mrf.mxu1 }
 0x693   : > { %v917_v39 = vadd.f32 %v2293_v25, %v886_v14  ;;  %v1887_v14 = vld [vmem:[%s2546_s9 + $0x24] sm:$0xf] }
 0x698   : > { %v1026_v15 = vpop.f32.mrf.mxu0 }
 0x699   : > { %v1033_v26 = vpack.c.bf16 %v1026_v15, %v1024_v24  ;;  %v1888_v24 = vld [vmem:[%s2546_s9 + $0x24] sm:$0xf0] }
 0x69a   : > { %v888_v27 = vpop.f32.mrf.mxu1  ;;  %v1788_v15 = vor.u32 %v1888_v24, %v1787_v21 }
 0x69b   : > { %1757 = vmatmul.msk.bf16.vlgmr.msrb.gmra.mxu1 %vm648_vm13, %v1033_v26  ;;  %v919_v44 = vadd.f32 %v2295_v28, %v888_v27  ;;  %v1789_v26 = vld [vmem:[%s2546_s9 + $0x28] sm:$0xf0] }
 0x69c   : > { %v1792_v27 = vor.u32 %v1887_v14, %v1789_v26  ;;  %1368 = vmatpush.bf16.msra.mxu1 %v1788_v15  ;;  %v1897_v14 = vld [vmem:[%s2548_s11 + $0x30] sm:$0xff]  ;;  %v1896_v15 = vld [vmem:[%s2548_s11 + $0x28] sm:$0xff] }
 0x69d   : > { %v1905_v26 = vld [vmem:[%s2548_s11 + $0x70] sm:$0xff] }
 0x69e   : > { %1386 = vmatpush.bf16.msra.mxu2 %v1792_v27  ;;  %v1895_v27 = vld [vmem:[%s2548_s11 + $0x20] sm:$0xff] }
 0x6a0   : > { %v1029_v29 = vpop.f32.mrf.mxu0 }
 0x6a1   : > { %v1034_v32 = vpack.c.bf16 %v1029_v29, %v1029_v29  ;;  %v1779_v29 = vld [vmem:[%s2546_s9 + $0x10] sm:$0xf] }
 0x6a2   : > { %v891_v30 = vpop.f32.mrf.mxu1 }
 0x6a3   : > { %v922_v53 = vadd.f32 %v2301_v33, %v891_v30  ;;  %v1886_v30 = vld [vmem:[%s2546_s9 + $0x14] sm:$0xf0] }
 0x6a8   : > { %v1031_v22 = vpop.f32.mrf.mxu0 }
 0x6a9   : > { %v1885_v22 = vld [vmem:[%s2546_s9 + $0x14] sm:$0xf] }
 0x6aa   : > { %v893_v34 = vpop.f32.mrf.mxu1 }
 0x6ab   : > { %1758 = vmatmul.msk.bf16.gmra.mxu1 %vm648_vm13, %v1034_v32  ;;  %v1780_v32 = vor.u32 %v1886_v30, %v1779_v29  ;;  %v1781_v34 = vld [vmem:[%s2546_s9 + $0x18] sm:$0xf0]  ;;  %v1904_v29 = vld [vmem:[%s2548_s11 + $0x68] sm:$0xff] }
 0x6ac   : > { %v1894_v30 = vld [vmem:[%s2548_s11 + $0x18] sm:$0xff] }
 0x6ad   : > { %1369 = vmatpush.bf16.msra.mxu1 %v1780_v32  ;;  %v1893_v32 = vld [vmem:[%s2548_s11 + $0x10] sm:$0xff] }
 0x6c3   : > { %v1172_v35 = vpop.f32.mrf.mxu3 }
 0x6c4   : > { %v1177_v37 = vpack.c.bf16 %v1172_v35, %v1172_v35  ;;  %v1784_v35 = vor.u32 %v1885_v22, %v1781_v34  ;;  %v1903_v22 = vld [vmem:[%s2548_s11 + $0x60] sm:$0xff]  ;;  %v1902_v34 = vld [vmem:[%s2548_s11 + $0x58] sm:$0xff] }
 0x6c6   : > { %1768 = vmatmul.msk.bf16.gmra.mxu0 %vm648_vm13, %v1177_v37  ;;  %1387 = vmatpush.bf16.msra.mxu2 %v1784_v35  ;;  %v1311_v35 = vld [vmem:[%s2547_s10] sm:$0x3] }
 0x6cb   : > { %v1174_v38 = vpop.f32.mrf.mxu3 }
 0x708   : > { %v1199_v40 = vpop.f32.mrf.mxu0 }
 0x710   : > { %v1201_v23 = vpop.f32.mrf.mxu0 }
 0x718   : > { %v1056_v41 = vpop.f32.mrf.mxu1 }
 0x719   : > { %v1065_v42 = vadd.f32 %v1056_v41, %v917_v39  ;;  %v1771_v39 = vld [vmem:[%s2546_s9] sm:$0xf]  ;;  %v1883_v41 = vld [vmem:[%s2546_s9 + $0x4] sm:$0xf] }
 0x71b   : > { %v1208_v36 = vadd.f32 %v1199_v40, %v1065_v42  ;;  %v1884_v40 = vld [vmem:[%s2546_s9 + $0x4] sm:$0xf0] }
 0x71c   : > { %v1772_v42 = vor.u32 %v1884_v40, %v1771_v39  ;;  %v1901_v39 = vld [vmem:[%s2548_s11 + $0x50] sm:$0xff]  ;;  %v1891_v40 = vld [vmem:[%s2548_s11] sm:$0xff] }
 0x71d   : > { %v1211_v43 = vadd.f32 %v1208_v36, %v2118_v0  ;;  %v1773_v36 = vld [vmem:[%s2546_s9 + $0x8] sm:$0xf0] }
 0x71e   : > { %1370 = vmatpush.bf16.msra.mxu1 %v1772_v42 }
 0x71f   : > { %v2369_v45 = vadd.f32 %v1933_v31, %v1211_v43  ;;  %v1776_v43 = vor.u32 %v1883_v41, %v1773_v36  ;;  %v1900_v36 = vld [vmem:[%s2548_s11 + $0x48] sm:$0xff] }
 0x720   : > { %v1058_v46 = vpop.f32.mrf.mxu1 }
 0x721   : > { %v1066_v52 = vadd.f32 %v1058_v46, %v919_v44  ;;  %v1223_v25 = vsel %vm447_vm0, %v2369_v45, 0.0  ;;  %1388 = vmatpush.bf16.msra.mxu2 %v1776_v43  ;;  %v1314_v43 = vperm.slane %v1311_v35, 1 }
 0x722   : > { %1224 = vadd.xlane.f32.xlu0 %v1223_v25 }
 0x723   : > { %v1209_v47 = vadd.f32 %v1201_v23, %v1066_v52 }
 0x725   : > { %v1212_v48 = vadd.f32 %v1209_v47, %v2125_v4 }
 0x727   : > { %v2374_v49 = vadd.f32 %v1933_v31, %v1212_v48 }
 0x728   : > { %v1061_v50 = vpop.f32.mrf.mxu1 }
 0x729   : > { %v1226_v0 = vsel %vm447_vm0, %v2374_v49, 0.0  ;;  %v1067_v54 = vadd.f32 %v1061_v50, %v922_v53 }
 0x72a   : > { %1227 = vadd.xlane.f32.xlu2 %v1226_v0 }
 0x730   : > { %v1063_v28 = vpop.f32.mrf.mxu1 }
 0x743   : > { %v1204_v55 = vpop.f32.mrf.mxu0 }
 0x744   : > { %v1210_v56 = vadd.f32 %v1204_v55, %v1067_v54 }
 0x746   : > { %v1213_v60 = vadd.f32 %v2011_v58, %v1210_v56 }
 0x748   : > { %v2380_v61 = vadd.f32 %v1933_v31, %v1213_v60  ;;  %v1934_v60 = vld [vmem:[%s2544_s7] ss:$0 sm:$0xff] }
 0x74a   : > { %v1229_v4 = vsel %vm454_vm1, %v2380_v61, 0.0 }
 0x74b   : > { %1230 = vadd.xlane.f32.xlu2 %v1229_v4  ;;  %v1206_v62 = vpop.f32.mrf.mxu0 }
 0x795   : > { %v1225_v63 = vpop.xlane.xlu0 %1224 }
 0x796   : > { %v1232_v1 = vmul.f32 %v1225_v63, %v2129_v12 }
 0x798   : > { %v2386_v2 = vsub.f32 %v2369_v45, %v1232_v1  ;;  %v1935_v1 = vld [vmem:[%s2545_s8] ss:$0 sm:$0xff] }
 0x79a   : > { %v1238_v33 = vmul.f32 %v2386_v2, %v2386_v2 }
 0x79c   : > { %v1241_v3 = vsel %vm447_vm0, %v1238_v33, 0.0 }
 0x79d   : > { %v1228_v5 = vpop.xlane.xlu2 %1227  ;;  %1242 = vadd.xlane.f32.xlu2 %v1241_v3 }
 0x79e   : > { %v1233_v6 = vmul.f32 %v1228_v5, %v2129_v12 }
 0x7a0   : > { %v2393_v7 = vsub.f32 %v2374_v49, %v1233_v6 }
 0x7a2   : > { %v1239_v8 = vmul.f32 %v2393_v7, %v2393_v7 }
 0x7a4   : > { %v1244_v9 = vsel %vm447_vm0, %v1239_v8, 0.0 }
 0x7a5   : > { %1245 = vadd.xlane.f32.xlu2 %v1244_v9 }
 0x7be   : > { %v1231_v51 = vpop.xlane.xlu2 %1230 }
 0x7bf   : > { %v1234_v10 = vmul.f32 %v1231_v51, %v2129_v12 }
 0x7c1   : > { %v2400_v11 = vsub.f32 %v2380_v61, %v1234_v10 }
 0x7c3   : > { %v1240_v59 = vmul.f32 %v2400_v11, %v2400_v11 }
 0x7c5   : > { %v1247_v13 = vsel %vm454_vm1, %v1240_v59, 0.0 }
 0x7c6   : > { %1248 = vadd.xlane.f32.xlu2 %v1247_v13 }
 0x810   : > { %v1243_v37 = vpop.xlane.xlu2 %1242 }
 0x811   : > { %v1250_v38 = vmul.f32 %v1243_v37, %v2129_v12  ;;  %v1892_v37 = vld [vmem:[%s2548_s11 + $0x8] sm:$0xff] }
 0x813   : > { %v1253_v31 = vadd.f32 1e-06, %v1250_v38  ;;  %v1313_v38 = vperm.slane %v1311_v35, 0 }
 0x815   : > { %1993 = vrsqrt.f32 %v1253_v31  ;;  %vm1262_vm3 = vweird.f32 %v1253_v31 }
 0x818   : > { %v1246_v44 = vpop.xlane.xlu2 %1245 }
 0x819   : > { %v1251_v46 = vmul.f32 %v1246_v44, %v2129_v12 }
 0x81b   : > { %v1994_v52 = vpop.eup %1993  ;;  %v1254_v25 = vadd.f32 1e-06, %v1251_v46  ;;  %v1899_v46 = vld [vmem:[%s2548_s11 + $0x40] sm:$0xff] }
 0x81c   : > { %v1257_v23 = vmul.f32 %v1994_v52, %v1253_v31  ;;  %vm1263_vm2 = vweird.f32 %v1994_v52 }
 0x81d   : > { %1995 = vrsqrt.f32 %v1254_v25  ;;  %vm1264_vm4 = vmor %vm1262_vm3, %vm1263_vm2  ;;  %vm1272_vm6 = vweird.f32 %v1254_v25 }
 0x81e   : > { %v1258_v47 = vmul.f32 %v1994_v52, %v1257_v23 }
 0x820   : > { %v1259_v48 = vmul.f32 0.5, %v1258_v47 }
 0x822   : > { %v1260_v50 = vsub.f32 1.5, %v1259_v48 }
 0x823   : > { %v1996_v0 = vpop.eup %1995 }
 0x824   : > { %v1261_v28 = vmul.f32 %v1994_v52, %v1260_v50  ;;  %v1267_v53 = vmul.f32 %v1996_v0, %v1254_v25  ;;  %vm1273_vm5 = vweird.f32 %v1996_v0 }
 0x825   : > { %vm1274_vm7 = vmor %vm1272_vm6, %vm1273_vm5 }
 0x826   : > { %v1268_v54 = vmul.f32 %v1996_v0, %v1267_v53  ;;  %v1265_v55 = vsel %vm1264_vm4, %v1994_v52, %v1261_v28 }
 0x827   : > { %v1286_v4 = vmul.f32 %v1265_v55, %v2386_v2 }
 0x828   : > { %v1269_v56 = vmul.f32 0.5, %v1268_v54 }
 0x829   : > { %v1292_v33 = vmul.f32 %v1934_v60, %v1286_v4 }
 0x82a   : > { %v1270_v58 = vsub.f32 1.5, %v1269_v56 }
 0x82b   : > { %v1298_v6 = vadd.f32 %v1935_v1, %v1292_v33 }
 0x82c   : > { %v1271_v62 = vmul.f32 %v1996_v0, %v1270_v58 }
 0x82e   : > { %v1275_v63 = vsel %vm1274_vm7, %v1996_v0, %v1271_v62 }
 0x82f   : > { %v1287_v3 = vmul.f32 %v1275_v63, %v2393_v7 }
 0x831   : > { %v1293_v5 = vmul.f32 %v1934_v60, %v1287_v3 }
 0x833   : > { %v1299_v8 = vadd.f32 %v1935_v1, %v1293_v5 }
 0x835   : > { %v1309_v9 = vpack.c.bf16 %v1299_v8, %v1298_v6 }
 0x837   : > { %1801 = vmatmul.msk.bf16.vlgmr.msra.gmra.mxu1 %vm447_vm0, %v1309_v9  ;;  %1803 = vmatmul.msk.bf16.vlgmr.msra.gmra.mxu2 %vm447_vm0, %v1309_v9 }
 0x839   : > { %v1249_v2 = vpop.xlane.xlu2 %1248 }
 0x83a   : > { %v1252_v51 = vmul.f32 %v1249_v2, %v2129_v12  ;;  %v1898_v12 = vld [vmem:[%s2548_s11 + $0x38] sm:$0xff] }
 0x83b   : > { %1589 = vmatpush.bf16.msra.mxu3 %v1898_v12 }
 0x83c   : > { %v1255_v10 = vadd.f32 1e-06, %v1252_v51 }
 0x83e   : > { %1997 = vrsqrt.f32 %v1255_v10  ;;  %vm1282_vm9 = vweird.f32 %v1255_v10 }
 0x83f   : > { %1590 = vmatpush.bf16.msra.mxu3 %v1897_v14 }
 0x843   : > { %1591 = vmatpush.bf16.msra.mxu3 %v1896_v15 }
 0x844   : > { %v1998_v59 = vpop.eup %1997 }
 0x845   : > { %v1277_v13 = vmul.f32 %v1998_v59, %v1255_v10  ;;  %vm1283_vm8 = vweird.f32 %v1998_v59 }
 0x846   : > { %vm1284_vm10 = vmor %vm1282_vm9, %vm1283_vm8 }
 0x847   : > { %v1278_v16 = vmul.f32 %v1998_v59, %v1277_v13  ;;  %1592 = vmatpush.bf16.msra.mxu3 %v1895_v27 }
 0x849   : > { %v1279_v17 = vmul.f32 0.5, %v1278_v16 }
 0x84b   : > { %v1280_v18 = vsub.f32 1.5, %v1279_v17  ;;  %1593 = vmatpush.bf16.msra.mxu3 %v1894_v30 }
 0x84d   : > { %v1281_v7 = vmul.f32 %v1998_v59, %v1280_v18 }
 0x84f   : > { %v1285_v57 = vsel %vm1284_vm10, %v1998_v59, %v1281_v7  ;;  %1594 = vmatpush.bf16.msra.mxu3 %v1893_v32 }
 0x850   : > { %v1288_v19 = vmul.f32 %v1285_v57, %v2400_v11  ;;  %v1906_v11 = vld [vmem:[%s2548_s11 + $0x78] sm:$0xff] }
 0x851   : > { %1607 = vmatpush.bf16.msra.mxu0 %v1906_v11 }
 0x852   : > { %v1294_v20 = vmul.f32 %v1934_v60, %v1288_v19 }
 0x853   : > { %1595 = vmatpush.bf16.msra.mxu3 %v1892_v37 }
 0x854   : > { %v1300_v21 = vadd.f32 %v1935_v1, %v1294_v20 }
 0x855   : > { %1608 = vmatpush.bf16.msra.mxu0 %v1905_v26 }
 0x856   : > { %v1310_v24 = vpack.c.bf16 %v1300_v21, %v1300_v21 }
 0x857   : > { %1596 = vmatpush.bf16.msra.mxu3 %v1891_v40 }
 0x858   : > { %1802 = vmatmul.msk.bf16.gmra.mxu1 %vm447_vm0, %v1310_v24  ;;  %1804 = vmatmul.msk.bf16.gmra.mxu2 %vm447_vm0, %v1310_v24 }
 0x859   : > { %1609 = vmatpush.bf16.msra.mxu0 %v1904_v29 }
 0x85d   : > { %1610 = vmatpush.bf16.msra.mxu0 %v1903_v22 }
 0x861   : > { %1611 = vmatpush.bf16.msra.mxu0 %v1902_v34 }
 0x865   : > { %1612 = vmatpush.bf16.msra.mxu0 %v1901_v39 }
 0x869   : > { %1613 = vmatpush.bf16.msra.mxu0 %v1900_v36 }
 0x86d   : > { %1614 = vmatpush.bf16.msra.mxu0 %v1899_v46 }
 0x8b4   : > { %v1372_v41 = vpop.f32.mrf.mxu1 }
 0x8b5   : > { %v1373_v42 = vadd.f32 %v1372_v41, %v1313_v38 }
 0x8b7   : > { %v1399_v31 = vmul.f32 %v1373_v42, %v1373_v42 }
 0x8b9   : > { %v1405_v44 = vmul.f32 %v1399_v31, %v1373_v42 }
 0x8ba   : > { %v1390_v52 = vpop.f32.mrf.mxu2 }
 0x8bb   : > { %v1411_v25 = vmul.f32 0.044715, %v1405_v44  ;;  %v1391_v23 = vadd.f32 %v1390_v52, %v1314_v43 }
 0x8bc   : > { %v1374_v47 = vpop.f32.mrf.mxu1 }
 0x8bd   : > { %v1417_v48 = vadd.f32 %v1411_v25, %v1373_v42  ;;  %v1400_v50 = vmul.f32 %v1391_v23, %v1391_v23  ;;  %v1375_v0 = vadd.f32 %v1374_v47, %v1313_v38 }
 0x8bf   : > { %v1423_v28 = vmul.f32 0.7978846, %v1417_v48  ;;  %v1406_v53 = vmul.f32 %v1400_v50, %v1391_v23  ;;  %v1401_v54 = vmul.f32 %v1375_v0, %v1375_v0 }
 0x8c1   : > { %v1412_v55 = vmul.f32 0.044715, %v1406_v53  ;;  %v1407_v56 = vmul.f32 %v1401_v54, %v1375_v0  ;;  %1999 = vtanh.f32 %v1423_v28  ;;  %v1936_v28 = vld [vmem:[%s2549_s12] ss:$0 sm:$0xff] }
 0x8c2   : > { %v1392_v58 = vpop.f32.mrf.mxu2 }
 0x8c3   : > { %v1418_v60 = vadd.f32 %v1412_v55, %v1391_v23  ;;  %v1413_v4 = vmul.f32 0.044715, %v1407_v56  ;;  %v1393_v62 = vadd.f32 %v1392_v58, %v1314_v43 }
 0x8c5   : > { %v1424_v63 = vmul.f32 0.7978846, %v1418_v60  ;;  %v1419_v1 = vadd.f32 %v1413_v4, %v1375_v0  ;;  %v1402_v33 = vmul.f32 %v1393_v62, %v1393_v62 }
 0x8c7   : > { %v1425_v3 = vmul.f32 0.7978846, %v1419_v1  ;;  %v1408_v5 = vmul.f32 %v1402_v33, %v1393_v62  ;;  %2001 = vtanh.f32 %v1424_v63  ;;  %v2000_v6 = vpop.eup %1999 }
 0x8c8   : > { %v1435_v2 = vadd.f32 1.0, %v2000_v6 }
 0x8c9   : > { %2003 = vtanh.f32 %v1425_v3  ;;  %v1414_v8 = vmul.f32 0.044715, %v1408_v5 }
 0x8ca   : > { %v1441_v13 = vmul.f32 0.5, %v1435_v2 }
 0x8cb   : > { %v1420_v9 = vadd.f32 %v1414_v8, %v1393_v62 }
 0x8cc   : > { %v1447_v7 = vmul.f32 %v1441_v13, %v1373_v42 }
 0x8cd   : > { %v1426_v51 = vmul.f32 0.7978846, %v1420_v9  ;;  %v2002_v10 = vpop.eup %2001 }
 0x8ce   : > { %v1436_v17 = vadd.f32 1.0, %v2002_v10 }
 0x8cf   : > { %v2004_v59 = vpop.eup %2003  ;;  %2005 = vtanh.f32 %v1426_v51 }
 0x8d0   : > { %v1437_v16 = vadd.f32 1.0, %v2004_v59  ;;  %v1442_v21 = vmul.f32 0.5, %v1436_v17 }
 0x8d2   : > { %v1443_v18 = vmul.f32 0.5, %v1437_v16  ;;  %v1448_v26 = vmul.f32 %v1442_v21, %v1391_v23 }
 0x8d4   : > { %v1449_v57 = vmul.f32 %v1443_v18, %v1375_v0 }
 0x8d5   : > { %v2006_v19 = vpop.eup %2005  ;;  %v1377_v20 = vpop.f32.mrf.mxu1 }
 0x8d6   : > { %v1438_v24 = vadd.f32 1.0, %v2006_v19  ;;  %v1378_v12 = vadd.f32 %v1377_v20, %v1313_v38  ;;  %v1485_v14 = vpack.c.bf16 %v1449_v57, %v1447_v7 }
 0x8d8   : > { %v1444_v11 = vmul.f32 0.5, %v1438_v24  ;;  %v1403_v15 = vmul.f32 %v1378_v12, %v1378_v12  ;;  %1597 = vmatmul.bf16.vlgmr.msra.gmra.mxu3 %v1485_v14 }
 0x8da   : > { %v1450_v27 = vmul.f32 %v1444_v11, %v1393_v62  ;;  %v1409_v29 = vmul.f32 %v1403_v15, %v1378_v12 }
 0x8db   : > { %v1395_v30 = vpop.f32.mrf.mxu2 }
 0x8dc   : > { %v1415_v22 = vmul.f32 0.044715, %v1409_v29  ;;  %v1396_v32 = vadd.f32 %v1395_v30, %v1314_v43  ;;  %v1486_v34 = vpack.c.bf16 %v1450_v27, %v1448_v26 }
 0x8dd   : > { %v1379_v35 = vpop.f32.mrf.mxu1 }
 0x8de   : > { %v1404_v37 = vmul.f32 %v1396_v32, %v1396_v32  ;;  %1615 = vmatmul.bf16.vlgmr.msra.gmra.mxu0 %v1486_v34  ;;  %v1421_v39 = vadd.f32 %v1415_v22, %v1378_v12 }
 0x8e0   : > { %v1410_v40 = vmul.f32 %v1404_v37, %v1396_v32  ;;  %v1427_v41 = vmul.f32 0.7978846, %v1421_v39 }
 0x8e2   : > { %v1416_v42 = vmul.f32 0.044715, %v1410_v40  ;;  %2007 = vtanh.f32 %v1427_v41 }
 0x8e3   : > { %v1397_v38 = vpop.f32.mrf.mxu2 }
 0x8e4   : > { %v1422_v36 = vadd.f32 %v1416_v42, %v1396_v32 }
 0x8e6   : > { %v1428_v31 = vmul.f32 0.7978846, %v1422_v36 }
 0x8e8   : > { %v2008_v44 = vpop.eup %2007  ;;  %2009 = vtanh.f32 %v1428_v31 }
 0x8e9   : > { %v1439_v46 = vadd.f32 1.0, %v2008_v44 }
 0x8eb   : > { %v1445_v52 = vmul.f32 0.5, %v1439_v46 }
 0x8ed   : > { %v1451_v25 = vmul.f32 %v1445_v52, %v1378_v12 }
 0x8ee   : > { %v2010_v23 = vpop.eup %2009 }
 0x8ef   : > { %v1487_v43 = vpack.c.bf16 %v1451_v25, %v1451_v25  ;;  %v1440_v47 = vadd.f32 1.0, %v2010_v23 }
 0x8f1   : > { %1602 = vmatmul.bf16.gmra.mxu3 %v1487_v43  ;;  %v1446_v48 = vmul.f32 0.5, %v1440_v47 }
 0x8f3   : > { %v1452_v50 = vmul.f32 %v1446_v48, %v1396_v32 }
 0x8f5   : > { %v1488_v0 = vpack.c.bf16 %v1452_v50, %v1452_v50 }
 0x8f7   : > { %1620 = vmatmul.bf16.gmra.mxu0 %v1488_v0 }
 0x95b   : > { %v1598_v53 = vpop.f32.mrf.mxu3  ;;  %v1616_v54 = vpop.f32.mrf.mxu0 }
 0x95c   : > { %v1599_v55 = vadd.f32 %v1936_v28, %v1598_v53 }
 0x95e   : > { %v1617_v56 = vadd.f32 %v1616_v54, %v1599_v55 }
 0x960   : > { %v1625_v58 = vadd.f32 %v1617_v56, %v2369_v45 }
 0x962   : > { %1628 = vst.msk [vmem:[%s440_s20] sm:$0xff] %vm447_vm0, %v1625_v58 }
 0x963   : > { %v1600_v60 = vpop.f32.mrf.mxu3  ;;  %v1618_v62 = vpop.f32.mrf.mxu0 }
 0x964   : > { %v1601_v4 = vadd.f32 %v1936_v28, %v1600_v60 }
 0x966   : > { %v1619_v63 = vadd.f32 %v1618_v62, %v1601_v4 }
 0x968   : > { %v1626_v1 = vadd.f32 %v1619_v63, %v2374_v49 }
 0x96a   : > { %1629 = vst.msk [vmem:[%s440_s20 + $0x8] sm:$0xff] %vm447_vm0, %v1626_v1 }
 0x974   : > { %v1603_v33 = vpop.f32.mrf.mxu3  ;;  %v1621_v3 = vpop.f32.mrf.mxu0 }
 0x975   : > { %v1604_v5 = vadd.f32 %v1936_v28, %v1603_v33 }
 0x977   : > { %v1622_v6 = vadd.f32 %v1621_v3, %v1604_v5 }
 0x979   : > { %v1627_v8 = vadd.f32 %v1622_v6, %v2380_v61 }
 0x97b   : > { %1630 = vst.msk [vmem:[%s440_s20 + $0x10] sm:$0x1] %vm454_vm1, %v1627_v8 }
 0x97c   : > { %v1605_v9 = vpop.f32.mrf.mxu3  ;;  %v1623_v45 = vpop.f32.mrf.mxu0 }
 0x97d PF: > { %s23_s25 = sadd.s32 1, %s2018_s25  }
 0x97e   : > { %p20_p4 = scmp.ge.s32.totalorder %s23_s25, 4  }
 0x980   :  { %22 = sbr.rel (!%p20_p4) target bundleno = 1 (0x1), region = 102 }

// kernel: _lambda_.16
= control target key start
LH: loop header
LB: loop body
LE: loop exit
PB: predicated region body
PF: predicated region fallthrough
CT: control target
= control target key end

     0   :  { %vm69_vm0 = vcmask 523264   ;;  %s1219_s1 = inlined_call_operand.vmem [shape: bf16[9,64,64], index: 1, kind: input, shape index: {}]   ;;  %s1220_s0 = inlined_call_operand.vmem [shape: f32[9,32,64], index: 0, kind: input, shape index: {}]   ;;  %s1221_s2 = inlined_call_operand.vmem [shape: f32[1,64], index: 2, kind: input, shape index: {}]   ;;  %s1222_s3 = inlined_call_operand.vmem [shape: f32[32,64], index: 3, kind: output, shape index: {}]  }
   0x1   :  { %v912_v0 = vld [vmem:[%s1219_s1 + $0x38] sm:$0xff]  ;;  %v911_v3 = vld [vmem:[%s1219_s1 + $0x30] sm:$0xff]  ;;  %v910_v6 = vld [vmem:[%s1219_s1 + $0x28] sm:$0xff] }
   0x2   :  { %v916_v1 = vld [vmem:[%s1219_s1 + $0x58] sm:$0xff]  ;;  %80 = vmatpush.bf16.msra.mxu0 %v912_v0  ;;  %941 = vmatpush.bf16.msra.mxu1 %v912_v0  ;;  %v915_v4 = vld [vmem:[%s1219_s1 + $0x50] sm:$0xff]  ;;  %v914_v7 = vld [vmem:[%s1219_s1 + $0x48] sm:$0xff] }
   0x3   :  { %v920_v2 = vld [vmem:[%s1219_s1 + $0x78] sm:$0xff]  ;;  %194 = vmatpush.bf16.msra.mxu2 %v916_v1  ;;  %v919_v5 = vld [vmem:[%s1219_s1 + $0x70] sm:$0xff]  ;;  %v918_v8 = vld [vmem:[%s1219_s1 + $0x68] sm:$0xff] }
   0x4   :  { %263 = vmatpush.bf16.msra.mxu3 %v920_v2  ;;  %v909_v9 = vld [vmem:[%s1219_s1 + $0x20] sm:$0xff]  ;;  %v648_v11 = vld [vmem:[%s1220_s0 + $0x28] sm:$0xff]  ;;  %v649_v12 = vld [vmem:[%s1220_s0 + $0x30] sm:$0xff] }
   0x5   :  { %v647_v10 = vld [vmem:[%s1220_s0 + $0x20] sm:$0xff]  ;;  %v650_v13 = vld [vmem:[%s1220_s0 + $0x38] sm:$0xff]  ;;  %v696_v18 = vld [vmem:[%s1220_s0 + $0x48] sm:$0xff] }
   0x6   :  { %81 = vmatpush.bf16.msra.mxu0 %v911_v3  ;;  %942 = vmatpush.bf16.msra.mxu1 %v911_v3  ;;  %v908_v14 = vld [vmem:[%s1219_s1 + $0x18] sm:$0xff]  ;;  %v913_v15 = vld [vmem:[%s1219_s1 + $0x40] sm:$0xff]  ;;  %v726_v21 = vld [vmem:[%s1220_s0 + $0x68] sm:$0xff]  ;;  %v43_v22 = vpack.c.bf16 %v648_v11, %v647_v10  ;;  %v44_v23 = vpack.c.bf16 %v650_v13, %v649_v12 }
   0x7   :  { %195 = vmatpush.bf16.msra.mxu2 %v915_v4  ;;  %v924_v16 = vld [vmem:[%s1219_s1 + $0x98] sm:$0xff]  ;;  %v695_v17 = vld [vmem:[%s1220_s0 + $0x40] sm:$0xff]  ;;  %v907_v26 = vld [vmem:[%s1219_s1 + $0x10] sm:$0xff] }
   0x8   :  { %264 = vmatpush.bf16.msra.mxu3 %v919_v5  ;;  %v917_v19 = vld [vmem:[%s1219_s1 + $0x60] sm:$0xff]  ;;  %v158_v24 = vpack.c.bf16 %v696_v18, %v695_v17  ;;  %v936_v25 = vld [vmem:[%s1219_s1 + $0xf8] sm:$0xff]  ;;  %v923_v28 = vld [vmem:[%s1219_s1 + $0x90] sm:$0xff] }
   0x9   :  { %v725_v20 = vld [vmem:[%s1220_s0 + $0x60] sm:$0xff]  ;;  %v932_v29 = vld [vmem:[%s1219_s1 + $0xd8] sm:$0xff]  ;;  %v935_v30 = vld [vmem:[%s1219_s1 + $0xf0] sm:$0xff] }
   0xa   :  { %82 = vmatpush.bf16.msra.mxu0 %v910_v6  ;;  %943 = vmatpush.bf16.msra.mxu1 %v910_v6  ;;  %v227_v27 = vpack.c.bf16 %v726_v21, %v725_v20  ;;  %v906_v31 = vld [vmem:[%s1219_s1 + $0x8] sm:$0xff]  ;;  %v931_v33 = vld [vmem:[%s1219_s1 + $0xd0] sm:$0xff]  ;;  %v905_v35 = vld [vmem:[%s1219_s1] sm:$0xff] }
   0xb   :  { %196 = vmatpush.bf16.msra.mxu2 %v914_v7  ;;  %v922_v32 = vld [vmem:[%s1219_s1 + $0x88] sm:$0xff]  ;;  %v921_v36 = vld [vmem:[%s1219_s1 + $0x80] sm:$0xff]  ;;  %v928_v38 = vld [vmem:[%s1219_s1 + $0xb8] sm:$0xff] }
   0xc   :  { %265 = vmatpush.bf16.msra.mxu3 %v918_v8  ;;  %v934_v34 = vld [vmem:[%s1219_s1 + $0xe8] sm:$0xff]  ;;  %v15_v37 = vld [vmem:[%s1220_s0] sm:$0xff]  ;;  %v940_v40 = vld [vmem:[%s1219_s1 + $0x118] sm:$0xff] }
   0xd   :  { %v16_v39 = vld [vmem:[%s1220_s0 + $0x8] sm:$0xff]  ;;  %v755_v42 = vld [vmem:[%s1220_s0 + $0x80] sm:$0xff]  ;;  %v697_v45 = vld [vmem:[%s1220_s0 + $0x50] sm:$0xff] }
   0xe   :  { %83 = vmatpush.bf16.msra.mxu0 %v909_v9  ;;  %944 = vmatpush.bf16.msra.mxu1 %v909_v9  ;;  %v930_v41 = vld [vmem:[%s1219_s1 + $0xc8] sm:$0xff]  ;;  %v933_v44 = vld [vmem:[%s1219_s1 + $0xe0] sm:$0xff]  ;;  %v698_v46 = vld [vmem:[%s1220_s0 + $0x58] sm:$0xff]  ;;  %v27_v50 = vpack.c.bf16 %v16_v39, %v15_v37 }
   0xf   :  { %197 = vmatpush.bf16.msra.mxu2 %v913_v15  ;;  %v756_v43 = vld [vmem:[%s1220_s0 + $0x88] sm:$0xff]  ;;  %v727_v47 = vld [vmem:[%s1220_s0 + $0x70] sm:$0xff]  ;;  %v728_v48 = vld [vmem:[%s1220_s0 + $0x78] sm:$0xff]  ;;  %v159_v52 = vpack.c.bf16 %v698_v46, %v697_v45 }
  0x10   :  { %266 = vmatpush.bf16.msra.mxu3 %v917_v19  ;;  %v927_v49 = vld [vmem:[%s1219_s1 + $0xb0] sm:$0xff]  ;;  %v296_v51 = vpack.c.bf16 %v756_v43, %v755_v42  ;;  %v228_v54 = vpack.c.bf16 %v728_v48, %v727_v47  ;;  %v929_v55 = vld [vmem:[%s1219_s1 + $0xc0] sm:$0xff]  ;;  %v926_v56 = vld [vmem:[%s1219_s1 + $0xa8] sm:$0xff] }
  0x11   :  { %675 = vmatmul.msk.bf16.vlgmr.msra.gmra.mxu0 %vm69_vm0, %v43_v22  ;;  %676 = vmatmul.msk.bf16.vlgmr.msra.gmra.mxu1 %vm69_vm0, %v44_v23  ;;  %v939_v53 = vld [vmem:[%s1219_s1 + $0x110] sm:$0xff]  ;;  %v938_v57 = vld [vmem:[%s1219_s1 + $0x108] sm:$0xff]  ;;  %v925_v58 = vld [vmem:[%s1219_s1 + $0xa0] sm:$0xff] }
  0x12   :  { %129 = vmatpush.bf16.msrb.mxu1 %v908_v14  ;;  %332 = vmatpush.bf16.msrb.mxu0 %v924_v16  ;;  %v937_v59 = vld [vmem:[%s1219_s1 + $0x100] sm:$0xff]  ;;  %v17_v60 = vld [vmem:[%s1220_s0 + $0x10] sm:$0xff]  ;;  %v18_v61 = vld [vmem:[%s1220_s0 + $0x18] sm:$0xff] }
  0x13   :  { %723 = vmatmul.msk.bf16.vlgmr.msra.gmra.mxu2 %vm69_vm0, %v158_v24  ;;  %753 = vmatmul.msk.bf16.vlgmr.msra.gmra.mxu3 %vm69_vm0, %v227_v27  ;;  %v757_v62 = vld [vmem:[%s1220_s0 + $0x90] sm:$0xff]  ;;  %v758_v63 = vld [vmem:[%s1220_s0 + $0x98] sm:$0xff]  ;;  %v815_v0 = vld [vmem:[%s1220_s0 + $0xc0] sm:$0xff]  ;;  %v28_v4 = vpack.c.bf16 %v18_v61, %v17_v60 }
  0x14   :  { %539 = vmatpush.bf16.msrb.mxu3 %v936_v25  ;;  %470 = vmatpush.bf16.msrb.mxu2 %v932_v29  ;;  %v816_v1 = vld [vmem:[%s1220_s0 + $0xc8] sm:$0xff]  ;;  %v845_v2 = vld [vmem:[%s1220_s0 + $0xe0] sm:$0xff]  ;;  %v297_v5 = vpack.c.bf16 %v758_v63, %v757_v62  ;;  %v817_v12 = vld [vmem:[%s1220_s0 + $0xd0] sm:$0xff] }
  0x15   :  { %v846_v3 = vld [vmem:[%s1220_s0 + $0xe8] sm:$0xff]  ;;  %v434_v6 = vpack.c.bf16 %v816_v1, %v815_v0  ;;  %v785_v8 = vld [vmem:[%s1220_s0 + $0xa0] sm:$0xff]  ;;  %v818_v13 = vld [vmem:[%s1220_s0 + $0xd8] sm:$0xff] }
  0x16   :  { %130 = vmatpush.bf16.msrb.mxu1 %v907_v26  ;;  %333 = vmatpush.bf16.msrb.mxu0 %v923_v28  ;;  %v503_v7 = vpack.c.bf16 %v846_v3, %v845_v2  ;;  %v786_v9 = vld [vmem:[%s1220_s0 + $0xa8] sm:$0xff]  ;;  %v875_v10 = vld [vmem:[%s1220_s0 + $0x100] sm:$0xff]  ;;  %v847_v14 = vld [vmem:[%s1220_s0 + $0xf0] sm:$0xff]  ;;  %v435_v18 = vpack.c.bf16 %v818_v13, %v817_v12 }
  0x17   :  { %v876_v11 = vld [vmem:[%s1220_s0 + $0x108] sm:$0xff]  ;;  %v848_v15 = vld [vmem:[%s1220_s0 + $0xf8] sm:$0xff]  ;;  %v365_v16 = vpack.c.bf16 %v786_v9, %v785_v8  ;;  %v787_v20 = vld [vmem:[%s1220_s0 + $0xb0] sm:$0xff] }
  0x18   :  { %540 = vmatpush.bf16.msrb.mxu3 %v935_v30  ;;  %471 = vmatpush.bf16.msrb.mxu2 %v931_v33  ;;  %v572_v17 = vpack.c.bf16 %v876_v11, %v875_v10  ;;  %v504_v19 = vpack.c.bf16 %v848_v15, %v847_v14  ;;  %v788_v21 = vld [vmem:[%s1220_s0 + $0xb8] sm:$0xff]  ;;  %v877_v22 = vld [vmem:[%s1220_s0 + $0x110] sm:$0xff]  ;;  %v945_v61 = vld [vmem:[%s1221_s2] ss:$0 sm:$0xff] }
  0x19   :  { %v878_v23 = vld [vmem:[%s1220_s0 + $0x118] sm:$0xff]  ;;  %v366_v24 = vpack.c.bf16 %v788_v21, %v787_v20 }
  0x1a   :  { %131 = vmatpush.bf16.msrb.mxu1 %v906_v31  ;;  %334 = vmatpush.bf16.msrb.mxu0 %v922_v32  ;;  %v573_v25 = vpack.c.bf16 %v878_v23, %v877_v22 }
  0x1c   :  { %541 = vmatpush.bf16.msrb.mxu3 %v934_v34  ;;  %472 = vmatpush.bf16.msrb.mxu2 %v930_v41 }
  0x1e   :  { %132 = vmatpush.bf16.msrb.mxu1 %v905_v35  ;;  %335 = vmatpush.bf16.msrb.mxu0 %v921_v36 }
  0x20   :  { %542 = vmatpush.bf16.msrb.mxu3 %v933_v44  ;;  %473 = vmatpush.bf16.msrb.mxu2 %v929_v55 }
  0x21   :  { %693 = vmatmul.msk.bf16.vlgmr.msrb.gmra.mxu1 %vm69_vm0, %v27_v50  ;;  %783 = vmatmul.msk.bf16.vlgmr.msrb.gmra.mxu0 %vm69_vm0, %v296_v51 }
  0x22   :  { %401 = vmatpush.bf16.msra.mxu1 %v928_v38  ;;  %608 = vmatpush.bf16.msra.mxu0 %v940_v40 }
  0x23   :  { %724 = vmatmul.msk.bf16.gmra.mxu2 %vm69_vm0, %v159_v52  ;;  %754 = vmatmul.msk.bf16.gmra.mxu3 %vm69_vm0, %v228_v54 }
  0x26   :  { %402 = vmatpush.bf16.msra.mxu1 %v927_v49  ;;  %609 = vmatpush.bf16.msra.mxu0 %v939_v53 }
  0x2a   :  { %403 = vmatpush.bf16.msra.mxu1 %v926_v56  ;;  %610 = vmatpush.bf16.msra.mxu0 %v938_v57 }
  0x2e   :  { %404 = vmatpush.bf16.msra.mxu1 %v925_v58  ;;  %611 = vmatpush.bf16.msra.mxu0 %v937_v59 }
  0x31   :  { %694 = vmatmul.msk.bf16.gmra.mxu1 %vm69_vm0, %v28_v4  ;;  %784 = vmatmul.msk.bf16.gmra.mxu0 %vm69_vm0, %v297_v5 }
  0x33   :  { %843 = vmatmul.msk.bf16.vlgmr.msrb.gmra.mxu2 %vm69_vm0, %v434_v6  ;;  %873 = vmatmul.msk.bf16.vlgmr.msrb.gmra.mxu3 %vm69_vm0, %v503_v7 }
  0x41   :  { %813 = vmatmul.msk.bf16.vlgmr.msra.gmra.mxu1 %vm69_vm0, %v365_v16  ;;  %903 = vmatmul.msk.bf16.vlgmr.msra.gmra.mxu0 %vm69_vm0, %v572_v17 }
  0x43   :  { %844 = vmatmul.msk.bf16.gmra.mxu2 %vm69_vm0, %v435_v18  ;;  %874 = vmatmul.msk.bf16.gmra.mxu3 %vm69_vm0, %v504_v19 }
  0x51   :  { %814 = vmatmul.msk.bf16.gmra.mxu1 %vm69_vm0, %v366_v24  ;;  %904 = vmatmul.msk.bf16.gmra.mxu0 %vm69_vm0, %v573_v25 }
  0x8e   :  { %v85_v26 = vpop.f32.mrf.mxu0  ;;  %v90_v27 = vpop.f32.mrf.mxu1 }
  0x96   :  { %v199_v28 = vpop.f32.mrf.mxu2  ;;  %v87_v29 = vpop.f32.mrf.mxu0 }
  0x97   :  { %v92_v30 = vpop.f32.mrf.mxu1  ;;  %v268_v31 = vpop.f32.mrf.mxu3 }
  0x9e   :  { %v201_v32 = vpop.f32.mrf.mxu2  ;;  %v337_v34 = vpop.f32.mrf.mxu0 }
  0x9f   :  { %v134_v33 = vpop.f32.mrf.mxu1  ;;  %v270_v35 = vpop.f32.mrf.mxu3 }
  0xa0   :  { %v135_v43 = vadd.f32 %v134_v33, %v85_v26 }
  0xa2   :  { %v209_v45 = vadd.f32 %v199_v28, %v135_v43 }
  0xa4   :  { %v278_v48 = vadd.f32 %v268_v31, %v209_v45 }
  0xa6   :  { %v204_v36 = vpop.f32.mrf.mxu2  ;;  %v339_v38 = vpop.f32.mrf.mxu0  ;;  %v347_v52 = vadd.f32 %v337_v34, %v278_v48 }
  0xa7   :  { %v136_v37 = vpop.f32.mrf.mxu1  ;;  %v273_v39 = vpop.f32.mrf.mxu3 }
  0xa8   :  { %v137_v49 = vadd.f32 %v136_v37, %v87_v29 }
  0xaa   :  { %v210_v53 = vadd.f32 %v201_v32, %v137_v49 }
  0xac   :  { %v279_v57 = vadd.f32 %v270_v35, %v210_v53 }
  0xae   :  { %v342_v41 = vpop.f32.mrf.mxu0  ;;  %v206_v42 = vpop.f32.mrf.mxu2  ;;  %v348_v63 = vadd.f32 %v339_v38, %v279_v57 }
  0xaf   :  { %v139_v40 = vpop.f32.mrf.mxu1  ;;  %v275_v44 = vpop.f32.mrf.mxu3 }
  0xb0   :  { %v140_v58 = vadd.f32 %v139_v40, %v90_v27 }
  0xb2   :  { %v211_v0 = vadd.f32 %v204_v36, %v140_v58 }
  0xb4   :  { %v280_v7 = vadd.f32 %v273_v39, %v211_v0 }
  0xb6   :  { %v344_v47 = vpop.f32.mrf.mxu0  ;;  %v475_v50 = vpop.f32.mrf.mxu2  ;;  %v349_v12 = vadd.f32 %v342_v41, %v280_v7 }
  0xb7   :  { %v141_v46 = vpop.f32.mrf.mxu1  ;;  %v544_v51 = vpop.f32.mrf.mxu3 }
  0xb8   :  { %v142_v8 = vadd.f32 %v141_v46, %v92_v30 }
  0xba   :  { %v212_v13 = vadd.f32 %v206_v42, %v142_v8 }
  0xbc   :  { %v281_v20 = vadd.f32 %v275_v44, %v212_v13 }
  0xbe   :  { %v613_v55 = vpop.f32.mrf.mxu0  ;;  %v477_v62 = vpop.f32.mrf.mxu2  ;;  %v350_v25 = vadd.f32 %v344_v47, %v281_v20 }
  0xbf   :  { %v406_v54 = vpop.f32.mrf.mxu1  ;;  %v546_v2 = vpop.f32.mrf.mxu3 }
  0xc0   :  { %v416_v56 = vadd.f32 %v406_v54, %v347_v52 }
  0xc2   :  { %v485_v59 = vadd.f32 %v475_v50, %v416_v56 }
  0xc4   :  { %v554_v60 = vadd.f32 %v544_v51, %v485_v59 }
  0xc6   :  { %v623_v1 = vadd.f32 %v613_v55, %v554_v60  ;;  %v615_v6 = vpop.f32.mrf.mxu0  ;;  %v480_v15 = vpop.f32.mrf.mxu2 }
  0xc7   :  { %v408_v3 = vpop.f32.mrf.mxu1  ;;  %v549_v19 = vpop.f32.mrf.mxu3 }
  0xc8   :  { %v631_v4 = vadd.f32 %v945_v61, %v623_v1  ;;  %v417_v5 = vadd.f32 %v408_v3, %v348_v63 }
  0xca   :  { %v635_v9 = vmax.f32 %v631_v4, 0.0  ;;  %v486_v10 = vadd.f32 %v477_v62, %v417_v5 }
  0xcc   :  { %639 = vst.msk [vmem:[%s1222_s3] sm:$0xff] %vm69_vm0, %v635_v9  ;;  %v555_v11 = vadd.f32 %v546_v2, %v486_v10 }
  0xce   :  { %v624_v14 = vadd.f32 %v615_v6, %v555_v11  ;;  %v618_v23 = vpop.f32.mrf.mxu0  ;;  %v482_v30 = vpop.f32.mrf.mxu2 }
  0xcf   :  { %v411_v16 = vpop.f32.mrf.mxu1  ;;  %v551_v33 = vpop.f32.mrf.mxu3 }
  0xd0   :  { %v632_v17 = vadd.f32 %v945_v61, %v624_v14  ;;  %v418_v18 = vadd.f32 %v411_v16, %v349_v12 }
  0xd2   :  { %v636_v21 = vmax.f32 %v632_v17, 0.0  ;;  %v487_v22 = vadd.f32 %v480_v15, %v418_v18 }
  0xd4   :  { %640 = vst.msk [vmem:[%s1222_s3 + $0x8] sm:$0xff] %vm69_vm0, %v636_v21  ;;  %v556_v24 = vadd.f32 %v549_v19, %v487_v22 }
  0xd6   :  { %v625_v26 = vadd.f32 %v618_v23, %v556_v24  ;;  %v620_v35 = vpop.f32.mrf.mxu0 }
  0xd7   :  { %v413_v27 = vpop.f32.mrf.mxu1 }
  0xd8   :  { %v633_v28 = vadd.f32 %v945_v61, %v625_v26  ;;  %v419_v29 = vadd.f32 %v413_v27, %v350_v25 }
  0xda   :  { %v637_v31 = vmax.f32 %v633_v28, 0.0  ;;  %v488_v32 = vadd.f32 %v482_v30, %v419_v29 }
  0xdc   :  { %641 = vst.msk [vmem:[%s1222_s3 + $0x10] sm:$0xff] %vm69_vm0, %v637_v31  ;;  %v557_v34 = vadd.f32 %v551_v33, %v488_v32 }
  0xde   :  { %v626_v36 = vadd.f32 %v620_v35, %v557_v34 }
  0xe0   :  { %v634_v37 = vadd.f32 %v945_v61, %v626_v36 }
  0xe2   :  { %v638_v38 = vmax.f32 %v634_v37, 0.0 }
  0xe4   :  { %642 = vst.msk [vmem:[%s1222_s3 + $0x18] sm:$0xff] %vm69_vm0, %v638_v38 }

// kernel: _lambda_.19
= control target key start
LH: loop header
LB: loop body
LE: loop exit
PB: predicated region body
PF: predicated region fallthrough
CT: control target
= control target key end

     0   :  { %vm75_vm0 = vcmask 523264   ;;  %vm677_vm1 = vcmask 261120   ;;  %s1539_s1 = inlined_call_operand.vmem [shape: bf16[9,64,32], index: 1, kind: input, shape index: {}]   ;;  %s1540_s0 = inlined_call_operand.vmem [shape: f32[9,32,64], index: 0, kind: input, shape index: {}]   ;;  %s1541_s2 = inlined_call_operand.vmem [shape: f32[1,32], index: 2, kind: input, shape index: {}]   ;;  %s1542_s3 = inlined_call_operand.vmem [shape: bf16[32,256], index: 3, kind: input, shape index: {}]   ;;  %s1543_s4 = inlined_call_operand.vmem [shape: f32[1,256], index: 4, kind: input, shape index: {}]   ;;  %s1544_s5 = inlined_call_operand.vmem [shape: f32[32,256], index: 5, kind: output, shape index: {}]  }
   0x1   :  { %v1131_v0 = vld [vmem:[%s1539_s1 + $0x38] sm:$0xff]  ;;  %v1130_v3 = vld [vmem:[%s1539_s1 + $0x30] sm:$0xff]  ;;  %v1129_v6 = vld [vmem:[%s1539_s1 + $0x28] sm:$0xff] }
   0x2   :  { %v1127_v1 = vld [vmem:[%s1539_s1 + $0x18] sm:$0xff]  ;;  %86 = vmatpush.bf16.msra.mxu0 %v1131_v0  ;;  %1164 = vmatpush.bf16.msra.mxu3 %v1131_v0  ;;  %v1126_v4 = vld [vmem:[%s1539_s1 + $0x10] sm:$0xff]  ;;  %v1125_v7 = vld [vmem:[%s1539_s1 + $0x8] sm:$0xff] }
   0x3   :  { %v1135_v2 = vld [vmem:[%s1539_s1 + $0x58] sm:$0xff]  ;;  %135 = vmatpush.bf16.msra.mxu1 %v1127_v1  ;;  %v1134_v5 = vld [vmem:[%s1539_s1 + $0x50] sm:$0xff]  ;;  %v1133_v8 = vld [vmem:[%s1539_s1 + $0x48] sm:$0xff] }
   0x4   :  { %200 = vmatpush.bf16.msra.mxu2 %v1135_v2  ;;  %v1128_v9 = vld [vmem:[%s1539_s1 + $0x20] sm:$0xff]  ;;  %v847_v13 = vld [vmem:[%s1540_s0 + $0x28] sm:$0xff]  ;;  %v848_v14 = vld [vmem:[%s1540_s0 + $0x30] sm:$0xff] }
   0x5   :  { %v1124_v10 = vld [vmem:[%s1539_s1] sm:$0xff]  ;;  %v849_v15 = vld [vmem:[%s1540_s0 + $0x38] sm:$0xff]  ;;  %v22_v17 = vld [vmem:[%s1540_s0 + $0x8] sm:$0xff] }
   0x6   :  { %87 = vmatpush.bf16.msra.mxu0 %v1130_v3  ;;  %1165 = vmatpush.bf16.msra.mxu3 %v1130_v3  ;;  %v1132_v11 = vld [vmem:[%s1539_s1 + $0x40] sm:$0xff]  ;;  %v895_v19 = vld [vmem:[%s1540_s0 + $0x48] sm:$0xff]  ;;  %v1139_v20 = vld [vmem:[%s1539_s1 + $0x78] sm:$0xff]  ;;  %v50_v23 = vpack.c.bf16 %v849_v15, %v848_v14 }
   0x7   :  { %136 = vmatpush.bf16.msra.mxu1 %v1126_v4  ;;  %v846_v12 = vld [vmem:[%s1540_s0 + $0x20] sm:$0xff]  ;;  %v1143_v21 = vld [vmem:[%s1539_s1 + $0x98] sm:$0xff]  ;;  %v1138_v28 = vld [vmem:[%s1539_s1 + $0x70] sm:$0xff] }
   0x8   :  { %201 = vmatpush.bf16.msra.mxu2 %v1134_v5  ;;  %v21_v16 = vld [vmem:[%s1540_s0] sm:$0xff]  ;;  %v49_v22 = vpack.c.bf16 %v847_v13, %v846_v12  ;;  %v1151_v26 = vld [vmem:[%s1539_s1 + $0xd8] sm:$0xff]  ;;  %v1142_v29 = vld [vmem:[%s1539_s1 + $0x90] sm:$0xff] }
   0x9   :  { %v894_v18 = vld [vmem:[%s1540_s0 + $0x40] sm:$0xff]  ;;  %v33_v24 = vpack.c.bf16 %v22_v17, %v21_v16  ;;  %v1147_v27 = vld [vmem:[%s1539_s1 + $0xb8] sm:$0xff]  ;;  %v1146_v30 = vld [vmem:[%s1539_s1 + $0xb0] sm:$0xff] }
   0xa   :  { %88 = vmatpush.bf16.msra.mxu0 %v1129_v6  ;;  %1166 = vmatpush.bf16.msra.mxu3 %v1129_v6  ;;  %v164_v25 = vpack.c.bf16 %v895_v19, %v894_v18  ;;  %v1150_v31 = vld [vmem:[%s1539_s1 + $0xd0] sm:$0xff]  ;;  %v1137_v32 = vld [vmem:[%s1539_s1 + $0x68] sm:$0xff]  ;;  %v1136_v36 = vld [vmem:[%s1539_s1 + $0x60] sm:$0xff] }
   0xb   :  { %137 = vmatpush.bf16.msra.mxu1 %v1125_v7  ;;  %v1141_v33 = vld [vmem:[%s1539_s1 + $0x88] sm:$0xff]  ;;  %v1140_v37 = vld [vmem:[%s1539_s1 + $0x80] sm:$0xff]  ;;  %v23_v38 = vld [vmem:[%s1540_s0 + $0x10] sm:$0xff] }
   0xc   :  { %202 = vmatpush.bf16.msra.mxu2 %v1133_v8  ;;  %v1145_v34 = vld [vmem:[%s1539_s1 + $0xa8] sm:$0xff]  ;;  %v24_v39 = vld [vmem:[%s1540_s0 + $0x18] sm:$0xff]  ;;  %v896_v40 = vld [vmem:[%s1540_s0 + $0x50] sm:$0xff] }
   0xd   :  { %v1149_v35 = vld [vmem:[%s1539_s1 + $0xc8] sm:$0xff]  ;;  %v924_v41 = vld [vmem:[%s1540_s0 + $0x60] sm:$0xff]  ;;  %v1155_v42 = vld [vmem:[%s1539_s1 + $0xf8] sm:$0xff]  ;;  %v34_v52 = vpack.c.bf16 %v24_v39, %v23_v38 }
   0xe   :  { %89 = vmatpush.bf16.msra.mxu0 %v1128_v9  ;;  %1167 = vmatpush.bf16.msra.mxu3 %v1128_v9  ;;  %v1159_v43 = vld [vmem:[%s1539_s1 + $0x118] sm:$0xff]  ;;  %v925_v44 = vld [vmem:[%s1540_s0 + $0x68] sm:$0xff]  ;;  %v954_v45 = vld [vmem:[%s1540_s0 + $0x80] sm:$0xff] }
   0xf   :  { %138 = vmatpush.bf16.msra.mxu1 %v1124_v10  ;;  %v955_v46 = vld [vmem:[%s1540_s0 + $0x88] sm:$0xff]  ;;  %v897_v47 = vld [vmem:[%s1540_s0 + $0x58] sm:$0xff]  ;;  %v1144_v48 = vld [vmem:[%s1539_s1 + $0xa0] sm:$0xff]  ;;  %v233_v50 = vpack.c.bf16 %v925_v44, %v924_v41 }
  0x10   :  { %203 = vmatpush.bf16.msra.mxu2 %v1132_v11  ;;  %v1148_v49 = vld [vmem:[%s1539_s1 + $0xc0] sm:$0xff]  ;;  %v302_v51 = vpack.c.bf16 %v955_v46, %v954_v45  ;;  %v165_v53 = vpack.c.bf16 %v897_v47, %v896_v40  ;;  %v1154_v54 = vld [vmem:[%s1539_s1 + $0xf0] sm:$0xff]  ;;  %v1153_v56 = vld [vmem:[%s1539_s1 + $0xe8] sm:$0xff] }
  0x11   :  { %874 = vmatmul.msk.bf16.vlgmr.msra.gmra.mxu0 %vm75_vm0, %v49_v22  ;;  %875 = vmatmul.msk.bf16.vlgmr.msra.gmra.mxu3 %vm75_vm0, %v50_v23  ;;  %v1158_v55 = vld [vmem:[%s1539_s1 + $0x110] sm:$0xff]  ;;  %v1157_v57 = vld [vmem:[%s1539_s1 + $0x108] sm:$0xff]  ;;  %v1152_v58 = vld [vmem:[%s1539_s1 + $0xe0] sm:$0xff] }
  0x12   :  { %269 = vmatpush.bf16.msrb.mxu3 %v1139_v20  ;;  %338 = vmatpush.bf16.msrb.mxu0 %v1143_v21  ;;  %v1156_v59 = vld [vmem:[%s1539_s1 + $0x100] sm:$0xff]  ;;  %v926_v60 = vld [vmem:[%s1540_s0 + $0x70] sm:$0xff]  ;;  %v927_v61 = vld [vmem:[%s1540_s0 + $0x78] sm:$0xff] }
  0x13   :  { %892 = vmatmul.msk.bf16.vlgmr.msra.gmra.mxu1 %vm75_vm0, %v33_v24  ;;  %922 = vmatmul.msk.bf16.vlgmr.msra.gmra.mxu2 %vm75_vm0, %v164_v25  ;;  %v956_v62 = vld [vmem:[%s1540_s0 + $0x90] sm:$0xff]  ;;  %v957_v63 = vld [vmem:[%s1540_s0 + $0x98] sm:$0xff]  ;;  %v984_v0 = vld [vmem:[%s1540_s0 + $0xa0] sm:$0xff]  ;;  %v234_v4 = vpack.c.bf16 %v927_v61, %v926_v60 }
  0x14   :  { %476 = vmatpush.bf16.msrb.mxu2 %v1151_v26  ;;  %407 = vmatpush.bf16.msrb.mxu1 %v1147_v27  ;;  %v985_v1 = vld [vmem:[%s1540_s0 + $0xa8] sm:$0xff]  ;;  %v1014_v2 = vld [vmem:[%s1540_s0 + $0xc0] sm:$0xff]  ;;  %v303_v5 = vpack.c.bf16 %v957_v63, %v956_v62  ;;  %v986_v8 = vld [vmem:[%s1540_s0 + $0xb0] sm:$0xff] }
  0x15   :  { %v1015_v3 = vld [vmem:[%s1540_s0 + $0xc8] sm:$0xff]  ;;  %v371_v6 = vpack.c.bf16 %v985_v1, %v984_v0  ;;  %v1044_v9 = vld [vmem:[%s1540_s0 + $0xe0] sm:$0xff]  ;;  %v987_v13 = vld [vmem:[%s1540_s0 + $0xb8] sm:$0xff] }
  0x16   :  { %270 = vmatpush.bf16.msrb.mxu3 %v1138_v28  ;;  %339 = vmatpush.bf16.msrb.mxu0 %v1142_v29  ;;  %v440_v7 = vpack.c.bf16 %v1015_v3, %v1014_v2  ;;  %v1045_v10 = vld [vmem:[%s1540_s0 + $0xe8] sm:$0xff]  ;;  %v1074_v11 = vld [vmem:[%s1540_s0 + $0x100] sm:$0xff]  ;;  %v1016_v14 = vld [vmem:[%s1540_s0 + $0xd0] sm:$0xff]  ;;  %v372_v18 = vpack.c.bf16 %v987_v13, %v986_v8 }
  0x17   :  { %v1075_v12 = vld [vmem:[%s1540_s0 + $0x108] sm:$0xff]  ;;  %v1017_v15 = vld [vmem:[%s1540_s0 + $0xd8] sm:$0xff]  ;;  %v509_v16 = vpack.c.bf16 %v1045_v10, %v1044_v9  ;;  %v1046_v20 = vld [vmem:[%s1540_s0 + $0xf0] sm:$0xff] }
  0x18   :  { %408 = vmatpush.bf16.msrb.mxu1 %v1146_v30  ;;  %477 = vmatpush.bf16.msrb.mxu2 %v1150_v31  ;;  %v578_v17 = vpack.c.bf16 %v1075_v12, %v1074_v11  ;;  %v441_v19 = vpack.c.bf16 %v1017_v15, %v1016_v14  ;;  %v1047_v21 = vld [vmem:[%s1540_s0 + $0xf8] sm:$0xff]  ;;  %v1076_v22 = vld [vmem:[%s1540_s0 + $0x110] sm:$0xff]  ;;  %v1160_v45 = vld [vmem:[%s1542_s3 + $0x4] sm:$0xf] }
  0x19   :  { %v1077_v23 = vld [vmem:[%s1540_s0 + $0x118] sm:$0xff]  ;;  %v510_v24 = vpack.c.bf16 %v1047_v21, %v1046_v20  ;;  %v1162_v31 = vld [vmem:[%s1542_s3 + $0x14] sm:$0xf]  ;;  %v1114_v38 = vld [vmem:[%s1542_s3 + $0x10] sm:$0xf] }
  0x1a   :  { %271 = vmatpush.bf16.msrb.mxu3 %v1137_v32  ;;  %340 = vmatpush.bf16.msrb.mxu0 %v1141_v33  ;;  %v579_v25 = vpack.c.bf16 %v1077_v23, %v1076_v22  ;;  %v1116_v32 = vld [vmem:[%s1542_s3 + $0x18] sm:$0xf0]  ;;  %v1163_v39 = vld [vmem:[%s1542_s3 + $0x14] sm:$0xf0]  ;;  %v1108_v46 = vld [vmem:[%s1542_s3 + $0x8] sm:$0xf0] }
  0x1b   :  { %v1119_v33 = vor.u32 %v1162_v31, %v1116_v32  ;;  %v1115_v40 = vor.u32 %v1163_v39, %v1114_v38 }
  0x1c   :  { %409 = vmatpush.bf16.msrb.mxu1 %v1145_v34  ;;  %478 = vmatpush.bf16.msrb.mxu2 %v1149_v35 }
  0x1e   :  { %272 = vmatpush.bf16.msrb.mxu3 %v1136_v36  ;;  %341 = vmatpush.bf16.msrb.mxu0 %v1140_v37 }
  0x20   :  { %410 = vmatpush.bf16.msrb.mxu1 %v1144_v48  ;;  %479 = vmatpush.bf16.msrb.mxu2 %v1148_v49  ;;  %v1111_v48 = vor.u32 %v1160_v45, %v1108_v46 }
  0x21   :  { %952 = vmatmul.msk.bf16.vlgmr.msrb.gmra.mxu3 %vm75_vm0, %v233_v50  ;;  %982 = vmatmul.msk.bf16.vlgmr.msrb.gmra.mxu0 %vm75_vm0, %v302_v51 }
  0x22   :  { %545 = vmatpush.bf16.msra.mxu3 %v1155_v42  ;;  %614 = vmatpush.bf16.msra.mxu0 %v1159_v43 }
  0x23   :  { %893 = vmatmul.msk.bf16.gmra.mxu1 %vm75_vm0, %v34_v52  ;;  %923 = vmatmul.msk.bf16.gmra.mxu2 %vm75_vm0, %v165_v53  ;;  %v1106_v52 = vld [vmem:[%s1542_s3] sm:$0xf]  ;;  %v1161_v53 = vld [vmem:[%s1542_s3 + $0x4] sm:$0xf0] }
  0x24   :  { %709 = vmatpush.bf16.msra.mxu2 %v1119_v33  ;;  %690 = vmatpush.bf16.msra.mxu1 %v1115_v40 }
  0x26   :  { %546 = vmatpush.bf16.msra.mxu3 %v1154_v54  ;;  %615 = vmatpush.bf16.msra.mxu0 %v1158_v55  ;;  %v1107_v54 = vor.u32 %v1161_v53, %v1106_v52  ;;  %v651_v53 = vld [vmem:[%s1543_s4] sm:$0x3] }
  0x28   :  { %710 = vmatpush.bf16.msra.mxu2 %v1111_v48  ;;  %691 = vmatpush.bf16.msra.mxu1 %v1107_v54 }
  0x2a   :  { %547 = vmatpush.bf16.msra.mxu3 %v1153_v56  ;;  %616 = vmatpush.bf16.msra.mxu0 %v1157_v57 }
  0x2e   :  { %548 = vmatpush.bf16.msra.mxu3 %v1152_v58  ;;  %617 = vmatpush.bf16.msra.mxu0 %v1156_v59 }
  0x31   :  { %953 = vmatmul.msk.bf16.gmra.mxu3 %vm75_vm0, %v234_v4  ;;  %983 = vmatmul.msk.bf16.gmra.mxu0 %vm75_vm0, %v303_v5 }
  0x33   :  { %1012 = vmatmul.msk.bf16.vlgmr.msrb.gmra.mxu1 %vm75_vm0, %v371_v6  ;;  %1042 = vmatmul.msk.bf16.vlgmr.msrb.gmra.mxu2 %vm75_vm0, %v440_v7 }
  0x41   :  { %1072 = vmatmul.msk.bf16.vlgmr.msra.gmra.mxu3 %vm75_vm0, %v509_v16  ;;  %1102 = vmatmul.msk.bf16.vlgmr.msra.gmra.mxu0 %vm75_vm0, %v578_v17  ;;  %v1168_v17 = vld [vmem:[%s1541_s2] ss:$0 sm:$0xff] }
  0x43   :  { %1013 = vmatmul.msk.bf16.gmra.mxu1 %vm75_vm0, %v372_v18  ;;  %1043 = vmatmul.msk.bf16.gmra.mxu2 %vm75_vm0, %v441_v19 }
  0x51   :  { %1073 = vmatmul.msk.bf16.gmra.mxu3 %vm75_vm0, %v510_v24  ;;  %1103 = vmatmul.msk.bf16.gmra.mxu0 %vm75_vm0, %v579_v25 }
  0x8e   :  { %v91_v26 = vpop.f32.mrf.mxu0 }
  0x90   :  { %v140_v27 = vpop.f32.mrf.mxu1 }
  0x91   :  { %v141_v57 = vadd.f32 %v140_v27, %v91_v26 }
  0x94   :  { %v96_v28 = vpop.f32.mrf.mxu3 }
  0x96   :  { %v205_v29 = vpop.f32.mrf.mxu2  ;;  %v93_v30 = vpop.f32.mrf.mxu0 }
  0x97   :  { %v215_v60 = vadd.f32 %v205_v29, %v141_v57 }
  0x98   :  { %v142_v34 = vpop.f32.mrf.mxu1 }
  0x99   :  { %v143_v63 = vadd.f32 %v142_v34, %v93_v30 }
  0x9c   :  { %v98_v35 = vpop.f32.mrf.mxu3 }
  0x9e   :  { %v207_v36 = vpop.f32.mrf.mxu2  ;;  %v343_v37 = vpop.f32.mrf.mxu0 }
  0x9f   :  { %v216_v1 = vadd.f32 %v207_v36, %v143_v63 }
  0xa0   :  { %v145_v41 = vpop.f32.mrf.mxu1 }
  0xa1   :  { %v146_v11 = vadd.f32 %v145_v41, %v96_v28 }
  0xa4   :  { %v274_v42 = vpop.f32.mrf.mxu3 }
  0xa5   :  { %v284_v62 = vadd.f32 %v274_v42, %v215_v60 }
  0xa6   :  { %v210_v43 = vpop.f32.mrf.mxu2  ;;  %v345_v44 = vpop.f32.mrf.mxu0 }
  0xa7   :  { %v353_v2 = vadd.f32 %v343_v37, %v284_v62  ;;  %v217_v14 = vadd.f32 %v210_v43, %v146_v11 }
  0xa8   :  { %v147_v49 = vpop.f32.mrf.mxu1 }
  0xa9   :  { %v148_v23 = vadd.f32 %v147_v49, %v98_v35 }
  0xac   :  { %v276_v47 = vpop.f32.mrf.mxu3 }
  0xad   :  { %v285_v4 = vadd.f32 %v276_v47, %v216_v1 }
  0xae   :  { %v348_v50 = vpop.f32.mrf.mxu0  ;;  %v212_v51 = vpop.f32.mrf.mxu2 }
  0xaf   :  { %v354_v9 = vadd.f32 %v345_v44, %v285_v4  ;;  %v218_v26 = vadd.f32 %v212_v51, %v148_v23 }
  0xb0   :  { %v412_v58 = vpop.f32.mrf.mxu1 }
  0xb1   :  { %v422_v5 = vadd.f32 %v412_v58, %v353_v2 }
  0xb4   :  { %v279_v55 = vpop.f32.mrf.mxu3 }
  0xb5   :  { %v286_v20 = vadd.f32 %v279_v55, %v217_v14  ;;  %v653_v55 = vperm.slane %v651_v53, 0 }
  0xb6   :  { %v350_v56 = vpop.f32.mrf.mxu0  ;;  %v481_v59 = vpop.f32.mrf.mxu2 }
  0xb7   :  { %v491_v8 = vadd.f32 %v481_v59, %v422_v5  ;;  %v355_v27 = vadd.f32 %v348_v50, %v286_v20 }
  0xb8   :  { %v414_v3 = vpop.f32.mrf.mxu1 }
  0xb9   :  { %v423_v12 = vadd.f32 %v414_v3, %v354_v9 }
  0xbc   :  { %v281_v61 = vpop.f32.mrf.mxu3 }
  0xbd   :  { %v287_v29 = vadd.f32 %v281_v61, %v218_v26 }
  0xbe   :  { %v619_v0 = vpop.f32.mrf.mxu0  ;;  %v483_v6 = vpop.f32.mrf.mxu2 }
  0xbf   :  { %v492_v15 = vadd.f32 %v483_v6, %v423_v12  ;;  %v356_v39 = vadd.f32 %v350_v56, %v287_v29  ;;  %v654_v56 = vperm.slane %v651_v53, 1 }
  0xc0   :  { %v417_v18 = vpop.f32.mrf.mxu1 }
  0xc1   :  { %v424_v30 = vadd.f32 %v417_v18, %v355_v27 }
  0xc4   :  { %v550_v7 = vpop.f32.mrf.mxu3 }
  0xc5   :  { %v560_v10 = vadd.f32 %v550_v7, %v491_v8 }
  0xc6   :  { %v621_v13 = vpop.f32.mrf.mxu0  ;;  %v486_v22 = vpop.f32.mrf.mxu2 }
  0xc7   :  { %v629_v16 = vadd.f32 %v619_v0, %v560_v10  ;;  %v493_v36 = vadd.f32 %v486_v22, %v424_v30 }
  0xc8   :  { %v419_v38 = vpop.f32.mrf.mxu1 }
  0xc9   :  { %v637_v24 = vadd.f32 %v1168_v17, %v629_v16  ;;  %v425_v41 = vadd.f32 %v419_v38, %v356_v39 }
  0xcb   :  { %v641_v31 = vmax.f32 %v637_v24, 0.0 }
  0xcc   :  { %v552_v19 = vpop.f32.mrf.mxu3 }
  0xcd   :  { %v561_v21 = vadd.f32 %v552_v19, %v492_v15 }
  0xce   :  { %v624_v33 = vpop.f32.mrf.mxu0  ;;  %v488_v35 = vpop.f32.mrf.mxu2 }
  0xcf   :  { %v630_v25 = vadd.f32 %v621_v13, %v561_v21  ;;  %v494_v42 = vadd.f32 %v488_v35, %v425_v41 }
  0xd1   :  { %v638_v28 = vadd.f32 %v1168_v17, %v630_v25 }
  0xd3   :  { %v642_v32 = vmax.f32 %v638_v28, 0.0 }
  0xd4   :  { %v555_v34 = vpop.f32.mrf.mxu3 }
  0xd5   :  { %v649_v37 = vpack.c.bf16 %v642_v32, %v641_v31  ;;  %v562_v40 = vadd.f32 %v555_v34, %v493_v36 }
  0xd6   :  { %v626_v46 = vpop.f32.mrf.mxu0 }
  0xd7   :  { %1120 = vmatmul.msk.bf16.vlgmr.msra.gmra.mxu1 %vm677_vm1, %v649_v37  ;;  %1122 = vmatmul.msk.bf16.vlgmr.msra.gmra.mxu2 %vm677_vm1, %v649_v37  ;;  %v631_v43 = vadd.f32 %v624_v33, %v562_v40 }
  0xd9   :  { %v639_v47 = vadd.f32 %v1168_v17, %v631_v43 }
  0xdb   :  { %v643_v50 = vmax.f32 %v639_v47, 0.0 }
  0xdc   :  { %v557_v44 = vpop.f32.mrf.mxu3 }
  0xdd   :  { %v563_v45 = vadd.f32 %v557_v44, %v494_v42 }
  0xdf   :  { %v632_v48 = vadd.f32 %v626_v46, %v563_v45 }
  0xe1   :  { %v640_v49 = vadd.f32 %v1168_v17, %v632_v48 }
  0xe3   :  { %v644_v51 = vmax.f32 %v640_v49, 0.0 }
  0xe5   :  { %v650_v52 = vpack.c.bf16 %v644_v51, %v643_v50 }
  0xe7   :  { %1121 = vmatmul.msk.bf16.gmra.mxu1 %vm677_vm1, %v650_v52  ;;  %1123 = vmatmul.msk.bf16.gmra.mxu2 %vm677_vm1, %v650_v52 }
 0x154   :  { %v693_v54 = vpop.f32.mrf.mxu1 }
 0x155   :  { %v694_v58 = vadd.f32 %v693_v54, %v653_v55 }
 0x15a   :  { %v712_v57 = vpop.f32.mrf.mxu2 }
 0x15b   :  { %v713_v59 = vadd.f32 %v712_v57, %v654_v56 }
 0x15c   :  { %v695_v60 = vpop.f32.mrf.mxu1 }
 0x15d   :  { %v722_v61 = vmax.f32 %v694_v58, %v713_v59  ;;  %v696_v63 = vadd.f32 %v695_v60, %v653_v55 }
 0x15f   :  { %723 = vmax.xlane.f32.xlu0 %v722_v61 }
 0x162   :  { %v714_v62 = vpop.f32.mrf.mxu2 }
 0x163   :  { %v715_v0 = vadd.f32 %v714_v62, %v654_v56 }
 0x164   :  { %v698_v2 = vpop.f32.mrf.mxu1 }
 0x165   :  { %v725_v1 = vmax.f32 %v696_v63, %v715_v0  ;;  %v699_v4 = vadd.f32 %v698_v2, %v653_v55 }
 0x167   :  { %726 = vmax.xlane.f32.xlu0 %v725_v1 }
 0x16a   :  { %v717_v3 = vpop.f32.mrf.mxu2 }
 0x16b   :  { %v718_v5 = vadd.f32 %v717_v3, %v654_v56 }
 0x16c   :  { %v700_v7 = vpop.f32.mrf.mxu1 }
 0x16d   :  { %v728_v6 = vmax.f32 %v699_v4, %v718_v5  ;;  %v701_v9 = vadd.f32 %v700_v7, %v653_v55 }
 0x16f   :  { %729 = vmax.xlane.f32.xlu1 %v728_v6 }
 0x172   :  { %v719_v8 = vpop.f32.mrf.mxu2 }
 0x173   :  { %v720_v10 = vadd.f32 %v719_v8, %v654_v56 }
 0x175   :  { %v731_v11 = vmax.f32 %v701_v9, %v720_v10 }
 0x177   :  { %732 = vmax.xlane.f32.xlu1 %v731_v11 }
 0x1d2   :  { %v724_v12 = vpop.xlane.xlu0 %723 }
 0x1d3   :  { %v734_v13 = vsub.f32 %v694_v58, %v724_v12  ;;  %v735_v14 = vsub.f32 %v713_v59, %v724_v12 }
 0x1d5   :  { %v742_v15 = vmul.f32 1.442695, %v734_v13  ;;  %v744_v16 = vmul.f32 1.442695, %v735_v14 }
 0x1d7   :  { %1169 = vpow2.f32 %v742_v15 }
 0x1d8   :  { %1171 = vpow2.f32 %v744_v16 }
 0x1da   :  { %v727_v17 = vpop.xlane.xlu0 %726 }
 0x1db   :  { %v736_v18 = vsub.f32 %v696_v63, %v727_v17  ;;  %v737_v19 = vsub.f32 %v715_v0, %v727_v17 }
 0x1dd   :  { %v1170_v20 = vpop.eup %1169  ;;  %v746_v21 = vmul.f32 1.442695, %v736_v18  ;;  %v748_v22 = vmul.f32 1.442695, %v737_v19 }
 0x1de   :  { %v1172_v23 = vpop.eup %1171 }
 0x1df   :  { %1173 = vpow2.f32 %v746_v21  ;;  %v758_v24 = vadd.f32 %v1172_v23, %v1170_v20 }
 0x1e0   :  { %1175 = vpow2.f32 %v748_v22 }
 0x1e1   :  { %759 = vadd.xlane.f32.xlu2 %v758_v24 }
 0x1e2   :  { %v730_v25 = vpop.xlane.xlu1 %729 }
 0x1e3   :  { %v738_v26 = vsub.f32 %v699_v4, %v730_v25  ;;  %v739_v27 = vsub.f32 %v718_v5, %v730_v25 }
 0x1e5   :  { %v1491_v28 = vpop.eup %1173  ;;  %v750_v29 = vmul.f32 1.442695, %v738_v26  ;;  %v752_v30 = vmul.f32 1.442695, %v739_v27 }
 0x1e6   :  { %v1493_v31 = vpop.eup %1175 }
 0x1e7   :  { %1177 = vpow2.f32 %v750_v29  ;;  %v761_v32 = vadd.f32 %v1493_v31, %v1491_v28 }
 0x1e8   :  { %1179 = vpow2.f32 %v752_v30 }
 0x1e9   :  { %762 = vadd.xlane.f32.xlu2 %v761_v32 }
 0x1ea   :  { %v733_v33 = vpop.xlane.xlu1 %732 }
 0x1eb   :  { %v740_v34 = vsub.f32 %v701_v9, %v733_v33  ;;  %v741_v36 = vsub.f32 %v720_v10, %v733_v33 }
 0x1ed   :  { %v1497_v37 = vpop.eup %1177  ;;  %v754_v38 = vmul.f32 1.442695, %v740_v34  ;;  %v756_v39 = vmul.f32 1.442695, %v741_v36 }
 0x1ee   :  { %v1499_v40 = vpop.eup %1179 }
 0x1ef   :  { %1181 = vpow2.f32 %v754_v38  ;;  %v764_v35 = vadd.f32 %v1499_v40, %v1497_v37 }
 0x1f0   :  { %1183 = vpow2.f32 %v756_v39 }
 0x1f1   :  { %765 = vadd.xlane.f32.xlu0 %v764_v35 }
 0x1f5   :  { %v1503_v41 = vpop.eup %1181 }
 0x1f6   :  { %v1505_v42 = vpop.eup %1183 }
 0x1f7   :  { %v767_v43 = vadd.f32 %v1505_v42, %v1503_v41 }
 0x1f9   :  { %768 = vadd.xlane.f32.xlu1 %v767_v43 }
 0x254   :  { %v760_v44 = vpop.xlane.xlu2 %759 }
 0x255   :  { %1185 = vrcp.f32 %v760_v44  ;;  %v781_v49 = vand.u32 2147483648, %v760_v44  ;;  %v779_v51 = vand.u32 2147483647, %v760_v44  ;;  %vm775_vm3 = vweird.f32 %v760_v44 }
 0x257   :  { %v782_v54 = vor.u32 1.1754944e-38, %v781_v49  ;;  %vm780_vm5 = vcmp.eq.f32.partialorder %v779_v51, 8.507059e+37 }
 0x25b   :  { %v1186_v45 = vpop.eup %1185 }
 0x25c   :  { %v771_v46 = vmul.f32 %v1186_v45, %v760_v44  ;;  %v763_v47 = vpop.xlane.xlu2 %762  ;;  %vm776_vm2 = vweird.f32 %v1186_v45 }
 0x25d   :  { %1187 = vrcp.f32 %v763_v47  ;;  %vm777_vm4 = vmor %vm775_vm3, %vm776_vm2  ;;  %v795_v62 = vand.u32 2147483648, %v763_v47  ;;  %v793_v0 = vand.u32 2147483647, %v763_v47  ;;  %vm789_vm7 = vweird.f32 %v763_v47 }
 0x25e   :  { %v772_v48 = vsub.f32 1.0, %v771_v46 }
 0x25f   :  { %v796_v3 = vor.u32 1.1754944e-38, %v795_v62  ;;  %vm794_vm9 = vcmp.eq.f32.partialorder %v793_v0, 8.507059e+37 }
 0x260   :  { %v773_v50 = vmul.f32 %v1186_v45, %v772_v48 }
 0x262   :  { %v774_v52 = vadd.f32 %v1186_v45, %v773_v50 }
 0x263   :  { %v1188_v53 = vpop.eup %1187 }
 0x264   :  { %v778_v55 = vsel %vm777_vm4, %v1186_v45, %v774_v52  ;;  %v785_v56 = vmul.f32 %v1188_v53, %v763_v47  ;;  %v766_v57 = vpop.xlane.xlu0 %765  ;;  %vm790_vm6 = vweird.f32 %v1188_v53 }
 0x265   :  { %v783_v58 = vsel %vm780_vm5, %v782_v54, %v778_v55  ;;  %1189 = vrcp.f32 %v766_v57  ;;  %vm791_vm8 = vmor %vm789_vm7, %vm790_vm6  ;;  %v809_v11 = vand.u32 2147483648, %v766_v57  ;;  %v807_v13 = vand.u32 2147483647, %v766_v57 }
 0x266   :  { %v826_v59 = vmul.f32 %v1170_v20, %v783_v58  ;;  %v827_v60 = vmul.f32 %v1172_v23, %v783_v58  ;;  %v786_v61 = vsub.f32 1.0, %v785_v56  ;;  %vm803_vm11 = vweird.f32 %v766_v57 }
 0x267   :  { %v810_v16 = vor.u32 1.1754944e-38, %v809_v11  ;;  %vm808_vm13 = vcmp.eq.f32.partialorder %v807_v13, 8.507059e+37 }
 0x268   :  { %834 = vst [vmem:[%s1544_s5] sm:$0xff] %v826_v59  ;;  %v787_v63 = vmul.f32 %v1188_v53, %v786_v61 }
 0x269   :  { %835 = vst [vmem:[%s1544_s5 + $0x8] sm:$0xff] %v827_v60 }
 0x26a   :  { %v788_v1 = vadd.f32 %v1188_v53, %v787_v63 }
 0x26b   :  { %v1190_v2 = vpop.eup %1189 }
 0x26c   :  { %v792_v4 = vsel %vm791_vm8, %v1188_v53, %v788_v1  ;;  %v799_v5 = vmul.f32 %v1190_v2, %v766_v57  ;;  %v769_v6 = vpop.xlane.xlu1 %768  ;;  %vm804_vm10 = vweird.f32 %v1190_v2 }
 0x26d   :  { %v797_v7 = vsel %vm794_vm9, %v796_v3, %v792_v4  ;;  %1191 = vrcp.f32 %v769_v6  ;;  %vm805_vm12 = vmor %vm803_vm11, %vm804_vm10  ;;  %v823_v23 = vand.u32 2147483648, %v769_v6  ;;  %v821_v25 = vand.u32 2147483647, %v769_v6 }
 0x26e   :  { %v828_v8 = vmul.f32 %v1491_v28, %v797_v7  ;;  %v829_v9 = vmul.f32 %v1493_v31, %v797_v7  ;;  %v800_v10 = vsub.f32 1.0, %v799_v5  ;;  %vm817_vm15 = vweird.f32 %v769_v6 }
 0x26f   :  { %v824_v27 = vor.u32 1.1754944e-38, %v823_v23  ;;  %vm822_vm1 = vcmp.eq.f32.partialorder %v821_v25, 8.507059e+37 }
 0x270   :  { %836 = vst [vmem:[%s1544_s5 + $0x10] sm:$0xff] %v828_v8  ;;  %v801_v12 = vmul.f32 %v1190_v2, %v800_v10 }
 0x271   :  { %837 = vst [vmem:[%s1544_s5 + $0x18] sm:$0xff] %v829_v9 }
 0x272   :  { %v802_v14 = vadd.f32 %v1190_v2, %v801_v12 }
 0x273   :  { %v1192_v15 = vpop.eup %1191 }
 0x274   :  { %v806_v17 = vsel %vm805_vm12, %v1190_v2, %v802_v14  ;;  %v813_v18 = vmul.f32 %v1192_v15, %v769_v6  ;;  %vm818_vm14 = vweird.f32 %v1192_v15 }
 0x275   :  { %v811_v19 = vsel %vm808_vm13, %v810_v16, %v806_v17  ;;  %vm819_vm0 = vmor %vm817_vm15, %vm818_vm14 }
 0x276   :  { %v830_v20 = vmul.f32 %v1497_v37, %v811_v19  ;;  %v831_v21 = vmul.f32 %v1499_v40, %v811_v19  ;;  %v814_v22 = vsub.f32 1.0, %v813_v18 }
 0x278   :  { %838 = vst [vmem:[%s1544_s5 + $0x20] sm:$0xff] %v830_v20  ;;  %v815_v24 = vmul.f32 %v1192_v15, %v814_v22 }
 0x279   :  { %839 = vst [vmem:[%s1544_s5 + $0x28] sm:$0xff] %v831_v21 }
 0x27a   :  { %v816_v26 = vadd.f32 %v1192_v15, %v815_v24 }
 0x27c   :  { %v820_v28 = vsel %vm819_vm0, %v1192_v15, %v816_v26 }
 0x27d   :  { %v825_v29 = vsel %vm822_vm1, %v824_v27, %v820_v28 }
 0x27e   :  { %v832_v30 = vmul.f32 %v1503_v41, %v825_v29  ;;  %v833_v31 = vmul.f32 %v1505_v42, %v825_v29 }
 0x280   :  { %840 = vst [vmem:[%s1544_s5 + $0x30] sm:$0xff] %v832_v30 }
 0x281   :  { %841 = vst [vmem:[%s1544_s5 + $0x38] sm:$0xff] %v833_v31 }

</bundles_post_ra>
